<compile_context>
chip_gen: v7x
topology: tpu7x:2x2x1
jax: 0.10.0
libtpu: 0.0.40
codegen_flags: <defaults>
</compile_context>

<pallas_src>
import numpy as np
import jax
import jax.numpy as jnp
from jax.experimental import pallas as pl
from jax.experimental.pallas import tpu as pltpu

# ----------------------------- configuration --------------------------------
B = 2
IN_CHANS = 1
IMG_SIZE = (8, 8, 8)
PATCH_SIZE = (4, 4, 4)
GRID_SIZE = tuple(i // p for i, p in zip(IMG_SIZE, PATCH_SIZE))
L = int(np.prod(GRID_SIZE))                           # 8 patches
PVOL = IN_CHANS * int(np.prod(PATCH_SIZE))            # 64
OUT_CHANS = PVOL
MASK_RATIO = 0.5
SEL_LEN = int(L * (1 - MASK_RATIO))                   # 4
MSK_LEN = L - SEL_LEN                                 # 4

ENC_DIM = 48          # divisible by 6 for 3D sincos pos-embed
ENC_DEPTH = 12
ENC_HEADS = 4
ENC_DH = ENC_DIM // ENC_HEADS
ENC_HID = ENC_DIM * 2

DEC_DIM = 24          # divisible by 6
DEC_DEPTH = 3
DEC_HEADS = 2
DEC_DH = DEC_DIM // DEC_HEADS
DEC_HID = DEC_DIM * 2

S_ENC = 1 + SEL_LEN   # 5 tokens seen by the encoder (cls + selected patches)
S_DEC = 1 + L         # 9 tokens seen by the decoder (cls + all patches)


# ----------------------------- in-kernel helpers -----------------------------
def _layernorm(x, g, b, eps=1e-5):
    """Affine LayerNorm over the last dim. x:(M,D), g/b:(1,D)."""
    mu = jnp.mean(x, axis=-1, keepdims=True)
    var = jnp.mean(jnp.square(x - mu), axis=-1, keepdims=True)
    return (x - mu) * jax.lax.rsqrt(var + eps) * g + b


def _block_diag_mask(sq, sk):
    """Boolean (B*sq, B*sk) mask allowing attention only within the same batch item."""
    rows = jax.lax.broadcasted_iota(jnp.int32, (B * sq, B * sk), 0)
    cols = jax.lax.broadcasted_iota(jnp.int32, (B * sq, B * sk), 1)
    allow = None
    for b in range(B):
        rb = (rows >= b * sq) & (rows < (b + 1) * sq)
        cb = (cols >= b * sk) & (cols < (b + 1) * sk)
        term = rb & cb
        allow = term if allow is None else (allow | term)
    return allow


def _mha(hq, hk, nh, allow, wqkv_ref, bqkv_ref, wo_ref, bo_ref):
    """Multi-head attention on flat token slabs.
    hq:(B*Sq, Dm) queries, hk:(B*Sk, Dm) keys/values, weights stored per head:
      wqkv_ref block (1, 3*nh, Dm, dh)   [q heads | k heads | v heads]
      bqkv_ref block (1, 3*nh, 1, dh)
      wo_ref   block (1, nh, dh, Dm),  bo_ref block (1, 1, Dm)
    Cross-batch attention is removed with the block-diagonal `allow` mask."""
    dh = wqkv_ref.shape[-1]
    scale = 1.0 / float(np.sqrt(dh))
    out = jnp.zeros_like(hq)
    for h in range(nh):
        q = jnp.dot(hq, wqkv_ref[0, h], preferred_element_type=jnp.float32) + bqkv_ref[0, h]
        k = jnp.dot(hk, wqkv_ref[0, nh + h], preferred_element_type=jnp.float32) + bqkv_ref[0, nh + h]
        v = jnp.dot(hk, wqkv_ref[0, 2 * nh + h], preferred_element_type=jnp.float32) + bqkv_ref[0, 2 * nh + h]
        s = jnp.dot(q, k.T, preferred_element_type=jnp.float32) * scale
        s = jnp.where(allow, s, -1e30)
        s = s - jnp.max(s, axis=-1, keepdims=True)
        p = jnp.exp(s)
        p = p * pl.reciprocal(jnp.sum(p, axis=-1, keepdims=True), approx=True)
        oh = jnp.dot(p, v, preferred_element_type=jnp.float32)
        out = out + jnp.dot(oh, wo_ref[0, h], preferred_element_type=jnp.float32)
    return out + bo_ref[0]


# ----------------------------- fused encoder kernel --------------------------
def encoder_kernel(selx_ref, selpos_ref, pew_ref, peb_ref, cls_ref, lnf_ref,
                   lngb_ref, wqkv_ref, bqkv_ref, wo_ref, bo_ref,
                   w1_ref, b1_ref, w2_ref, b2_ref,
                   hid_ref, encout_ref, acc_ref):
    d = pl.program_id(0)

    # step 0: patch embed (conv == matmul), add pos embed, prepend cls token
    @pl.when(d == 0)
    def _init():
        tok = (jnp.dot(selx_ref[...], pew_ref[...], preferred_element_type=jnp.float32)
               + peb_ref[...] + selpos_ref[...])                      # (B*SEL, D)
        crow = cls_ref[...]                                           # (1, D)
        for b in range(B):
            acc_ref[b * S_ENC:b * S_ENC + 1, :] = crow
            acc_ref[b * S_ENC + 1:(b + 1) * S_ENC, :] = tok[b * SEL_LEN:(b + 1) * SEL_LEN, :]

    lng = lngb_ref[0]                                                 # (4, D)
    allow = _block_diag_mask(S_ENC, S_ENC)

    # pre-LN transformer block `d`
    x = acc_ref[...]                                                  # (B*S_ENC, D)
    h = _layernorm(x, lng[0:1, :], lng[1:2, :])
    x = x + _mha(h, h, ENC_HEADS, allow, wqkv_ref, bqkv_ref, wo_ref, bo_ref)
    h = _layernorm(x, lng[2:3, :], lng[3:4, :])
    m = jnp.dot(h, w1_ref[0], preferred_element_type=jnp.float32) + b1_ref[0]
    m = jax.nn.gelu(m, approximate=True)
    x = x + jnp.dot(m, w2_ref[0], preferred_element_type=jnp.float32) + b2_ref[0]
    acc_ref[...] = x

    # hidden states consumed by the decoder, stacked in cross-attention order [9, 6, 3]
    @pl.when(d == 8)
    def _h9():
        hid_ref[0] = x

    @pl.when(d == 5)
    def _h6():
        hid_ref[1] = x

    @pl.when(d == 2)
    def _h3():
        hid_ref[2] = x

    @pl.when(d == ENC_DEPTH - 1)
    def _final():
        lnf = lnf_ref[...]
        encout_ref[...] = _layernorm(x, lnf[0:1, :], lnf[1:2, :])


def encoder_fused(sel_x, sel_pos, ep):
    c2 = lambda d: (0, 0)
    c3 = lambda d: (0, 0, 0)
    p3 = lambda d: (d, 0, 0)
    p4 = lambda d: (d, 0, 0, 0)
    in_specs = [
        pl.BlockSpec((B * SEL_LEN, PVOL), c2),                               # sel_x
        pl.BlockSpec((B * SEL_LEN, ENC_DIM), c2),                            # sel_pos
        pl.BlockSpec((PVOL, ENC_DIM), c2),                                   # pe_w
        pl.BlockSpec((1, ENC_DIM), c2),                                      # pe_b
        pl.BlockSpec((1, ENC_DIM), c2),                                      # cls
        pl.BlockSpec((2, ENC_DIM), c2),                                      # lnf
        pl.BlockSpec((1, 4, ENC_DIM), p3),                                   # lngb
        pl.BlockSpec((1, 3 * ENC_HEADS, ENC_DIM, ENC_DH), p4),               # wqkv
        pl.BlockSpec((1, 3 * ENC_HEADS, 1, ENC_DH), p4),                     # bqkv
        pl.BlockSpec((1, ENC_HEADS, ENC_DH, ENC_DIM), p4),                   # wo
        pl.BlockSpec((1, 1, ENC_DIM), p3),                                   # bo
        pl.BlockSpec((1, ENC_DIM, ENC_HID), p3),                             # w1
        pl.BlockSpec((1, 1, ENC_HID), p3),                                   # b1
        pl.BlockSpec((1, ENC_HID, ENC_DIM), p3),                             # w2
        pl.BlockSpec((1, 1, ENC_DIM), p3),                                   # b2
    ]
    out_specs = [
        pl.BlockSpec((3, B * S_ENC, ENC_DIM), c3),                           # hidden states [9,6,3]
        pl.BlockSpec((B * S_ENC, ENC_DIM), c2),                              # final LN output
    ]
    out_shape = (jax.ShapeDtypeStruct((3, B * S_ENC, ENC_DIM), jnp.float32),
                 jax.ShapeDtypeStruct((B * S_ENC, ENC_DIM), jnp.float32))
    hid, enc_out = pl.pallas_call(
        encoder_kernel,
        grid=(ENC_DEPTH,),
        in_specs=in_specs,
        out_specs=out_specs,
        out_shape=out_shape,
        scratch_shapes=[pltpu.VMEM((B * S_ENC, ENC_DIM), jnp.float32)],
        compiler_params=pltpu.CompilerParams(dimension_semantics=("arbitrary",)),
    )(sel_x, sel_pos, ep['pe_w'], ep['pe_b'], ep['cls'], ep['lnf'],
      ep['lngb'], ep['wqkv'], ep['bqkv'], ep['wo'], ep['bo'],
      ep['w1'], ep['b1'], ep['w2'], ep['b2'])
    return hid, enc_out


# ----------------------------- fused decoder kernel --------------------------
def decoder_kernel(encout_ref, e12w_ref, e12b_ref, mask_ref, shufpos_ref, target_ref,
                   lnf_ref, headw_ref, headb_ref,
                   hidkv_ref, ekvw_ref, ekvb_ref, lngb_ref,
                   sawqkv_ref, sabqkv_ref, sawo_ref, sabo_ref,
                   cawqkv_ref, cabqkv_ref, cawo_ref, cabo_ref,
                   w1_ref, b1_ref, w2_ref, b2_ref,
                   loss_ref, acc_ref):
    d = pl.program_id(0)

    # step 0: encoder_to_decoder[3](enc_out) | mask tokens, + shuffled decoder pos embed
    @pl.when(d == 0)
    def _init():
        proj = (jnp.dot(encout_ref[...], e12w_ref[...], preferred_element_type=jnp.float32)
                + e12b_ref[...])                                      # (B*S_ENC, DEC_DIM)
        mrow = mask_ref[...]                                          # (1, DEC_DIM)
        for b in range(B):
            p_b = proj[b * S_ENC:(b + 1) * S_ENC, :]                  # (S_ENC, DEC_DIM)
            pos_b = shufpos_ref[b * L:(b + 1) * L, :]                 # (L, DEC_DIM)
            acc_ref[b * S_DEC:b * S_DEC + 1, :] = p_b[0:1, :]
            acc_ref[b * S_DEC + 1:b * S_DEC + S_ENC, :] = p_b[1:, :] + pos_b[0:SEL_LEN, :]
            acc_ref[b * S_DEC + S_ENC:(b + 1) * S_DEC, :] = (
                jnp.broadcast_to(mrow, (MSK_LEN, DEC_DIM)) + pos_b[SEL_LEN:, :])

    lng = lngb_ref[0]                                                 # (8, DEC_DIM)
    self_allow = _block_diag_mask(S_DEC, S_DEC)
    cross_allow = _block_diag_mask(S_DEC, S_ENC)

    # encoder_to_decoder projection of this block's skip features (layers 9/6/3)
    kv = jnp.dot(hidkv_ref[0], ekvw_ref[0], preferred_element_type=jnp.float32) + ekvb_ref[0]

    x = acc_ref[...]                                                  # (B*S_DEC, DEC_DIM)
    h = _layernorm(x, lng[0:1, :], lng[1:2, :])
    x = x + _mha(h, h, DEC_HEADS, self_allow, sawqkv_ref, sabqkv_ref, sawo_ref, sabo_ref)
    hq = _layernorm(x, lng[2:3, :], lng[3:4, :])
    hk = _layernorm(kv, lng[4:5, :], lng[5:6, :])
    x = x + _mha(hq, hk, DEC_HEADS, cross_allow, cawqkv_ref, cabqkv_ref, cawo_ref, cabo_ref)
    h = _layernorm(x, lng[6:7, :], lng[7:8, :])
    m = jnp.dot(h, w1_ref[0], preferred_element_type=jnp.float32) + b1_ref[0]
    m = jax.nn.gelu(m, approximate=True)
    x = x + jnp.dot(m, w2_ref[0], preferred_element_type=jnp.float32) + b2_ref[0]
    acc_ref[...] = x

    # fused tail: final LN + head + target patch-norm (no-affine LN, eps=1e-6) + MSE
    @pl.when(d == DEC_DEPTH - 1)
    def _tail():
        lnf = lnf_ref[...]
        xn = _layernorm(x, lnf[0:1, :], lnf[1:2, :])
        pred_full = (jnp.dot(xn, headw_ref[...], preferred_element_type=jnp.float32)
                     + headb_ref[...])                                # (B*S_DEC, OUT_CHANS)
        t = target_ref[...]                                           # (B*MSK, OUT_CHANS)
        mu = jnp.mean(t, axis=-1, keepdims=True)
        var = jnp.mean(jnp.square(t - mu), axis=-1, keepdims=True)
        tgt = (t - mu) * jax.lax.rsqrt(var + 1e-6)
        s_acc = jnp.zeros((1, 1), jnp.float32)
        for b in range(B):
            pred_b = pred_full[b * S_DEC + S_ENC:(b + 1) * S_DEC, :]  # last MSK_LEN tokens
            tgt_b = tgt[b * MSK_LEN:(b + 1) * MSK_LEN, :]
            diff = pred_b - tgt_b
            ssq = jnp.sum(diff * diff, axis=1, keepdims=True)
            s_acc = s_acc + jnp.sum(ssq, axis=0, keepdims=True)
        loss_ref[...] = s_acc * (1.0 / float(B * MSK_LEN * OUT_CHANS))


def decoder_fused(enc_out, hid, shuf_dec_pos, msk_x, params):
    dp = params['decoder']
    c2 = lambda d: (0, 0)
    p3 = lambda d: (d, 0, 0)
    p4 = lambda d: (d, 0, 0, 0)
    in_specs = [
        pl.BlockSpec((B * S_ENC, ENC_DIM), c2),                              # enc_out
        pl.BlockSpec((ENC_DIM, DEC_DIM), c2),                                # e2d12_w
        pl.BlockSpec((1, DEC_DIM), c2),                                      # e2d12_b
        pl.BlockSpec((1, DEC_DIM), c2),                                      # mask_token
        pl.BlockSpec((B * L, DEC_DIM), c2),                                  # shuf_dec_pos
        pl.BlockSpec((B * MSK_LEN, OUT_CHANS), c2),                          # msk_x target
        pl.BlockSpec((2, DEC_DIM), c2),                                      # lnf
        pl.BlockSpec((DEC_DIM, OUT_CHANS), c2),                              # head_w
        pl.BlockSpec((1, OUT_CHANS), c2),                                    # head_b
        pl.BlockSpec((1, B * S_ENC, ENC_DIM), p3),                           # hid_kv
        pl.BlockSpec((1, ENC_DIM, DEC_DIM), p3),                             # e2d_kv_w
        pl.BlockSpec((1, 1, DEC_DIM), p3),                                   # e2d_kv_b
        pl.BlockSpec((1, 8, DEC_DIM), p3),                                   # lngb
        pl.BlockSpec((1, 3 * DEC_HEADS, DEC_DIM, DEC_DH), p4),               # sa_wqkv
        pl.BlockSpec((1, 3 * DEC_HEADS, 1, DEC_DH), p4),                     # sa_bqkv
        pl.BlockSpec((1, DEC_HEADS, DEC_DH, DEC_DIM), p4),                   # sa_wo
        pl.BlockSpec((1, 1, DEC_DIM), p3),                                   # sa_bo
        pl.BlockSpec((1, 3 * DEC_HEADS, DEC_DIM, DEC_DH), p4),               # ca_wqkv
        pl.BlockSpec((1, 3 * DEC_HEADS, 1, DEC_DH), p4),                     # ca_bqkv
        pl.BlockSpec((1, DEC_HEADS, DEC_DH, DEC_DIM), p4),                   # ca_wo
        pl.BlockSpec((1, 1, DEC_DIM), p3),                                   # ca_bo
        pl.BlockSpec((1, DEC_DIM, DEC_HID), p3),                             # w1
        pl.BlockSpec((1, 1, DEC_HID), p3),                                   # b1
        pl.BlockSpec((1, DEC_HID, DEC_DIM), p3),                             # w2
        pl.BlockSpec((1, 1, DEC_DIM), p3),                                   # b2
    ]
    loss = pl.pallas_call(
        decoder_kernel,
        grid=(DEC_DEPTH,),
        in_specs=in_specs,
        out_specs=pl.BlockSpec((1, 1), c2),
        out_shape=jax.ShapeDtypeStruct((1, 1), jnp.float32),
        scratch_shapes=[pltpu.VMEM((B * S_DEC, DEC_DIM), jnp.float32)],
        compiler_params=pltpu.CompilerParams(dimension_semantics=("arbitrary",)),
    )(enc_out, params['e2d12_w'], params['e2d12_b'], params['mask_token'],
      shuf_dec_pos, msk_x, dp['lnf'], dp['head_w'], dp['head_b'],
      hid, params['e2d_kv_w'], params['e2d_kv_b'], dp['lngb'],
      dp['sa_wqkv'], dp['sa_bqkv'], dp['sa_wo'], dp['sa_bo'],
      dp['ca_wqkv'], dp['ca_bqkv'], dp['ca_wo'], dp['ca_bo'],
      dp['w1'], dp['b1'], dp['w2'], dp['b2'])
    return loss[0, 0]


# ----------------------------- XLA glue (tiny) --------------------------------
def patchify_image(x, patch_size):
    Bx, C, H, W, D = x.shape
    ph, pw, pd = patch_size
    gh, gw, gd = H // ph, W // pw, D // pd
    x = x.reshape(Bx, C, gh, ph, gw, pw, gd, pd)
    x = jnp.transpose(x, (0, 2, 4, 6, 3, 5, 7, 1))   # [..., ph, pw, pd, c]
    return x.reshape(Bx, gh * gw * gd, ph * pw * pd * C)


def build_3d_sincos_position_embedding(grid_size, embed_dim, temperature=10000.0):
    h, w, d = grid_size
    gh, gw, gd = jnp.meshgrid(jnp.arange(h, dtype=jnp.float32),
                              jnp.arange(w, dtype=jnp.float32),
                              jnp.arange(d, dtype=jnp.float32), indexing='ij')
    assert embed_dim % 6 == 0
    pos_dim = embed_dim // 6
    omega = jnp.arange(pos_dim, dtype=jnp.float32) / pos_dim
    omega = 1.0 / (temperature ** omega)
    out_h = gh.flatten()[:, None] * omega[None, :]
    out_w = gw.flatten()[:, None] * omega[None, :]
    out_d = gd.flatten()[:, None] * omega[None, :]
    pe = jnp.concatenate([jnp.sin(out_h), jnp.cos(out_h),
                          jnp.sin(out_w), jnp.cos(out_w),
                          jnp.sin(out_d), jnp.cos(out_d)], axis=1)
    return pe[None]   # (1, L, embed_dim)


def hi_end_mae_forward(params, x, shuffle_rand):
    xp = patchify_image(x, PATCH_SIZE)                                 # (B, L, OUT_CHANS)
    shuffle = jnp.argsort(shuffle_rand, axis=1)                        # batched shuffle indices
    shuffled_x = jnp.take_along_axis(xp, shuffle[:, :, None], axis=1)
    sel_x = shuffled_x[:, :SEL_LEN, :].reshape(B * SEL_LEN, OUT_CHANS)
    msk_x = shuffled_x[:, -MSK_LEN:, :].reshape(B * MSK_LEN, OUT_CHANS)
    sel_idx = shuffle[:, :SEL_LEN]

    enc_pos = jnp.broadcast_to(params['enc_pos_embed'], (B, L, ENC_DIM))
    sel_pos = jnp.take_along_axis(enc_pos, sel_idx[:, :, None],
                                  axis=1).reshape(B * SEL_LEN, ENC_DIM)
    dec_pos = jnp.broadcast_to(params['dec_pos_embed'], (B, L, DEC_DIM))
    shuf_dec_pos = jnp.take_along_axis(dec_pos, shuffle[:, :, None],
                                       axis=1).reshape(B * L, DEC_DIM)

    hid, enc_out = encoder_fused(sel_x, sel_pos, params['encoder'])
    loss = decoder_fused(enc_out, hid, shuf_dec_pos, msk_x, params)
    return loss


# ----------------------------- parameter init --------------------------------
def init_params(key):
    keys = iter(jax.random.split(key, 128))

    def nrm(shape, std=0.02):
        return std * jax.random.normal(next(keys), shape, jnp.float32)

    def zeros(shape):
        return jnp.zeros(shape, jnp.float32)

    def xavier(shape):
        a = float(np.sqrt(6.0 / (shape[-2] + shape[-1])))
        return jax.random.uniform(next(keys), shape, jnp.float32, -a, a)

    def ln_rows(dim, n_ln):
        rows = []
        for _ in range(n_ln):
            rows.append(jnp.ones((1, dim), jnp.float32))
            rows.append(jnp.zeros((1, dim), jnp.float32))
        return jnp.concatenate(rows, axis=0)          # (2*n_ln, dim)

    encoder = {
        # pe_w rows are already in [ph, pw, pd, c] order (conv3d with k==stride==patch)
        'pe_w': nrm((PVOL, ENC_DIM)),
        'pe_b': zeros((1, ENC_DIM)),
        'cls': nrm((1, ENC_DIM)),
        'lnf': ln_rows(ENC_DIM, 1),
        'lngb': jnp.tile(ln_rows(ENC_DIM, 2)[None], (ENC_DEPTH, 1, 1)),
        'wqkv': nrm((ENC_DEPTH, 3 * ENC_HEADS, ENC_DIM, ENC_DH)),
        'bqkv': zeros((ENC_DEPTH, 3 * ENC_HEADS, 1, ENC_DH)),
        'wo': nrm((ENC_DEPTH, ENC_HEADS, ENC_DH, ENC_DIM)),
        'bo': zeros((ENC_DEPTH, 1, ENC_DIM)),
        'w1': nrm((ENC_DEPTH, ENC_DIM, ENC_HID)),
        'b1': zeros((ENC_DEPTH, 1, ENC_HID)),
        'w2': nrm((ENC_DEPTH, ENC_HID, ENC_DIM)),
        'b2': zeros((ENC_DEPTH, 1, ENC_DIM)),
    }

    decoder = {
        'lngb': jnp.tile(ln_rows(DEC_DIM, 4)[None], (DEC_DEPTH, 1, 1)),
        'sa_wqkv': nrm((DEC_DEPTH, 3 * DEC_HEADS, DEC_DIM, DEC_DH)),
        'sa_bqkv': zeros((DEC_DEPTH, 3 * DEC_HEADS, 1, DEC_DH)),
        'sa_wo': nrm((DEC_DEPTH, DEC_HEADS, DEC_DH, DEC_DIM)),
        'sa_bo': zeros((DEC_DEPTH, 1, DEC_DIM)),
        'ca_wqkv': nrm((DEC_DEPTH, 3 * DEC_HEADS, DEC_DIM, DEC_DH)),
        'ca_bqkv': zeros((DEC_DEPTH, 3 * DEC_HEADS, 1, DEC_DH)),
        'ca_wo': nrm((DEC_DEPTH, DEC_HEADS, DEC_DH, DEC_DIM)),
        'ca_bo': zeros((DEC_DEPTH, 1, DEC_DIM)),
        'w1': nrm((DEC_DEPTH, DEC_DIM, DEC_HID)),
        'b1': zeros((DEC_DEPTH, 1, DEC_HID)),
        'w2': nrm((DEC_DEPTH, DEC_HID, DEC_DIM)),
        'b2': zeros((DEC_DEPTH, 1, DEC_DIM)),
        'lnf': ln_rows(DEC_DIM, 1),
        'head_w': nrm((DEC_DIM, OUT_CHANS)),
        'head_b': zeros((1, OUT_CHANS)),
    }

    params = {
        'encoder': encoder,
        'decoder': decoder,
        # encoder_to_decoder[3] (for the layer-12 / final output)
        'e2d12_w': xavier((ENC_DIM, DEC_DIM)),
        'e2d12_b': zeros((1, DEC_DIM)),
        # encoder_to_decoder for skip layers, stacked in decoder consumption order [9, 6, 3]
        'e2d_kv_w': jnp.stack([xavier((ENC_DIM, DEC_DIM)) for _ in range(DEC_DEPTH)], axis=0),
        'e2d_kv_b': zeros((DEC_DEPTH, 1, DEC_DIM)),
        'mask_token': nrm((1, DEC_DIM)),
        'enc_pos_embed': build_3d_sincos_position_embedding(GRID_SIZE, ENC_DIM),
        'dec_pos_embed': build_3d_sincos_position_embedding(GRID_SIZE, DEC_DIM),
    }
    return params


# ----------------------------- main -------------------------------------------
if __name__ == "__main__":
    key = jax.random.PRNGKey(0)
    pkey, xkey, skey = jax.random.split(key, 3)
    params = init_params(pkey)
    x = jax.random.normal(xkey, (B, IN_CHANS) + IMG_SIZE, dtype=jnp.float32)
    shuffle_rand = jax.random.uniform(skey, (B, L), dtype=jnp.float32)

    loss = jax.jit(hi_end_mae_forward)(params, x, shuffle_rand)
    loss = jax.block_until_ready(loss)
    assert loss.shape == () and bool(jnp.isfinite(loss))
    print("KERNEL_OK")
</pallas_src>

<mosaic_0001>
module attributes {stable_mosaic.version = 11 : i64} {
  func.func @encoder_kernel(%arg0: i32, %arg1: memref<8x64xf32, #tpu.memory_space<vmem>>, %arg2: memref<8x48xf32, #tpu.memory_space<vmem>>, %arg3: memref<64x48xf32, #tpu.memory_space<vmem>>, %arg4: memref<1x48xf32, #tpu.memory_space<vmem>>, %arg5: memref<1x48xf32, #tpu.memory_space<vmem>>, %arg6: memref<2x48xf32, #tpu.memory_space<vmem>>, %arg7: memref<1x4x48xf32, #tpu.memory_space<vmem>>, %arg8: memref<1x12x48x12xf32, #tpu.memory_space<vmem>>, %arg9: memref<1x12x1x12xf32, #tpu.memory_space<vmem>>, %arg10: memref<1x4x12x48xf32, #tpu.memory_space<vmem>>, %arg11: memref<1x1x48xf32, #tpu.memory_space<vmem>>, %arg12: memref<1x48x96xf32, #tpu.memory_space<vmem>>, %arg13: memref<1x1x96xf32, #tpu.memory_space<vmem>>, %arg14: memref<1x96x48xf32, #tpu.memory_space<vmem>>, %arg15: memref<1x1x48xf32, #tpu.memory_space<vmem>>, %arg16: memref<3x10x48xf32, #tpu.memory_space<vmem>>, %arg17: memref<10x48xf32, #tpu.memory_space<vmem>>, %arg18: memref<10x48xf32, #tpu.memory_space<vmem>>) attributes {dimension_semantics = [#tpu.dimension_semantics<arbitrary>], iteration_bounds = array<i64: 12>, scalar_prefetch = 0 : i64, scratch_operands = 1 : i64, tpu.core_type = #tpu.core_type<tc>, window_params = [{pipeline_mode = #tpu.pipeline_mode<synchronous>, transform_indices = @transform_0, window_bounds = array<i64: 8, 64>}, {pipeline_mode = #tpu.pipeline_mode<synchronous>, transform_indices = @transform_1, window_bounds = array<i64: 8, 48>}, {pipeline_mode = #tpu.pipeline_mode<synchronous>, transform_indices = @transform_2, window_bounds = array<i64: 64, 48>}, {pipeline_mode = #tpu.pipeline_mode<synchronous>, transform_indices = @transform_3, window_bounds = array<i64: 1, 48>}, {pipeline_mode = #tpu.pipeline_mode<synchronous>, transform_indices = @transform_4, window_bounds = array<i64: 1, 48>}, {pipeline_mode = #tpu.pipeline_mode<synchronous>, transform_indices = @transform_5, window_bounds = array<i64: 2, 48>}, {transform_indices = @transform_6, window_bounds = array<i64: 1, 4, 48>}, {transform_indices = @transform_7, window_bounds = array<i64: 1, 12, 48, 12>}, {transform_indices = @transform_8, window_bounds = array<i64: 1, 12, 1, 12>}, {transform_indices = @transform_9, window_bounds = array<i64: 1, 4, 12, 48>}, {transform_indices = @transform_10, window_bounds = array<i64: 1, 1, 48>}, {transform_indices = @transform_11, window_bounds = array<i64: 1, 48, 96>}, {transform_indices = @transform_12, window_bounds = array<i64: 1, 1, 96>}, {transform_indices = @transform_13, window_bounds = array<i64: 1, 96, 48>}, {transform_indices = @transform_14, window_bounds = array<i64: 1, 1, 48>}, {pipeline_mode = #tpu.pipeline_mode<synchronous>, transform_indices = @transform_15, window_bounds = array<i64: 3, 10, 48>}, {pipeline_mode = #tpu.pipeline_mode<synchronous>, transform_indices = @transform_16, window_bounds = array<i64: 10, 48>}]} {
    %c0_i32 = arith.constant 0 : i32
    %0 = arith.cmpi eq, %arg0, %c0_i32 : i32
    %1 = arith.extui %0 : i1 to i32
    %c0_i32_0 = arith.constant 0 : i32
    %2 = arith.cmpi ne, %1, %c0_i32_0 : i32
    scf.if %2 {
      %c0_190 = arith.constant 0 : index
      %c0_191 = arith.constant 0 : index
      %294 = vector.load %arg1[%c0_190, %c0_191] : memref<8x64xf32, #tpu.memory_space<vmem>>, vector<8x64xf32>
      %c0_192 = arith.constant 0 : index
      %c0_193 = arith.constant 0 : index
      %295 = vector.load %arg3[%c0_192, %c0_193] : memref<64x48xf32, #tpu.memory_space<vmem>>, vector<64x48xf32>
      %cst_194 = arith.constant dense<0.000000e+00> : vector<8x48xf32>
      %296 = tpu.matmul %294, %295, %cst_194 {dimension_numbers = #tpu.dot_dimension_numbers<[1], [0], [0], [1], [0, 0, 1, 1], [], []>} : vector<8x64xf32>, vector<64x48xf32>, vector<8x48xf32> -> vector<8x48xf32>
      %c0_195 = arith.constant 0 : index
      %c0_196 = arith.constant 0 : index
      %297 = vector.load %arg4[%c0_195, %c0_196] : memref<1x48xf32, #tpu.memory_space<vmem>>, vector<1x48xf32>
      %298 = vector.broadcast %297 : vector<1x48xf32> to vector<8x48xf32>
      %299 = arith.addf %296, %298 : vector<8x48xf32>
      %c0_197 = arith.constant 0 : index
      %c0_198 = arith.constant 0 : index
      %300 = vector.load %arg2[%c0_197, %c0_198] : memref<8x48xf32, #tpu.memory_space<vmem>>, vector<8x48xf32>
      %301 = arith.addf %299, %300 : vector<8x48xf32>
      %c0_199 = arith.constant 0 : index
      %c0_200 = arith.constant 0 : index
      %302 = vector.load %arg5[%c0_199, %c0_200] : memref<1x48xf32, #tpu.memory_space<vmem>>, vector<1x48xf32>
      %c0_201 = arith.constant 0 : index
      %c0_202 = arith.constant 0 : index
      %303 = vector.load %arg18[%c0_201, %c0_202] : memref<10x48xf32, #tpu.memory_space<vmem>>, vector<1x48xf32>
      tpu.vector_store %arg18[%c0_201, %c0_202], %302 {strides = array<i32>} : memref<10x48xf32, #tpu.memory_space<vmem>>, vector<1x48xf32>,
      %304 = vector.extract_strided_slice %301 {offsets = [0, 0], sizes = [4, 48], strides = [1, 1]} : vector<8x48xf32> to vector<4x48xf32>
      %c1_203 = arith.constant 1 : index
      %c0_204 = arith.constant 0 : index
      %305 = vector.load %arg18[%c1_203, %c0_204] : memref<10x48xf32, #tpu.memory_space<vmem>>, vector<4x48xf32>
      tpu.vector_store %arg18[%c1_203, %c0_204], %304 {strides = array<i32>} : memref<10x48xf32, #tpu.memory_space<vmem>>, vector<4x48xf32>,
      %c5_205 = arith.constant 5 : index
      %c0_206 = arith.constant 0 : index
      %306 = vector.load %arg18[%c5_205, %c0_206] : memref<10x48xf32, #tpu.memory_space<vmem>>, vector<1x48xf32>
      tpu.vector_store %arg18[%c5_205, %c0_206], %302 {strides = array<i32>} : memref<10x48xf32, #tpu.memory_space<vmem>>, vector<1x48xf32>,
      %307 = vector.extract_strided_slice %301 {offsets = [4, 0], sizes = [4, 48], strides = [1, 1]} : vector<8x48xf32> to vector<4x48xf32>
      %c6_207 = arith.constant 6 : index
      %c0_208 = arith.constant 0 : index
      %308 = vector.load %arg18[%c6_207, %c0_208] : memref<10x48xf32, #tpu.memory_space<vmem>>, vector<4x48xf32>
      tpu.vector_store %arg18[%c6_207, %c0_208], %307 {strides = array<i32>} : memref<10x48xf32, #tpu.memory_space<vmem>>, vector<4x48xf32>,
    } else {
    }
    %c0 = arith.constant 0 : index
    %c0_1 = arith.constant 0 : index
    %c0_2 = arith.constant 0 : index
    %3 = vector.load %arg7[%c0, %c0_1, %c0_2] : memref<1x4x48xf32, #tpu.memory_space<vmem>>, vector<1x4x48xf32>
    %4 = vector.shape_cast %3 : vector<1x4x48xf32> to vector<4x48xf32>
    %5 = tpu.iota {dimensions = array<i32: 0>} : vector<10x10xi32>
    %6 = tpu.iota {dimensions = array<i32: 1>} : vector<10x10xi32>
    %c0_i32_3 = arith.constant 0 : i32
    %7 = vector.broadcast %c0_i32_3 : i32 to vector<10x10xi32>
    %8 = arith.cmpi sge, %5, %7 : vector<10x10xi32>
    %c5_i32 = arith.constant 5 : i32
    %9 = vector.broadcast %c5_i32 : i32 to vector<10x10xi32>
    %10 = arith.cmpi slt, %5, %9 : vector<10x10xi32>
    %11 = arith.andi %8, %10 : vector<10x10xi1>
    %c0_i32_4 = arith.constant 0 : i32
    %12 = vector.broadcast %c0_i32_4 : i32 to vector<10x10xi32>
    %13 = arith.cmpi sge, %6, %12 : vector<10x10xi32>
    %c5_i32_5 = arith.constant 5 : i32
    %14 = vector.broadcast %c5_i32_5 : i32 to vector<10x10xi32>
    %15 = arith.cmpi slt, %6, %14 : vector<10x10xi32>
    %16 = arith.andi %13, %15 : vector<10x10xi1>
    %17 = arith.andi %11, %16 : vector<10x10xi1>
    %c5_i32_6 = arith.constant 5 : i32
    %18 = vector.broadcast %c5_i32_6 : i32 to vector<10x10xi32>
    %19 = arith.cmpi sge, %5, %18 : vector<10x10xi32>
    %c10_i32 = arith.constant 10 : i32
    %20 = vector.broadcast %c10_i32 : i32 to vector<10x10xi32>
    %21 = arith.cmpi slt, %5, %20 : vector<10x10xi32>
    %22 = arith.andi %19, %21 : vector<10x10xi1>
    %c5_i32_7 = arith.constant 5 : i32
    %23 = vector.broadcast %c5_i32_7 : i32 to vector<10x10xi32>
    %24 = arith.cmpi sge, %6, %23 : vector<10x10xi32>
    %c10_i32_8 = arith.constant 10 : i32
    %25 = vector.broadcast %c10_i32_8 : i32 to vector<10x10xi32>
    %26 = arith.cmpi slt, %6, %25 : vector<10x10xi32>
    %27 = arith.andi %24, %26 : vector<10x10xi1>
    %28 = arith.andi %22, %27 : vector<10x10xi1>
    %29 = arith.ori %17, %28 : vector<10x10xi1>
    %c0_9 = arith.constant 0 : index
    %c0_10 = arith.constant 0 : index
    %30 = vector.load %arg18[%c0_9, %c0_10] : memref<10x48xf32, #tpu.memory_space<vmem>>, vector<10x48xf32>
    %31 = vector.extract_strided_slice %4 {offsets = [0, 0], sizes = [1, 48], strides = [1, 1]} : vector<4x48xf32> to vector<1x48xf32>
    %32 = vector.extract_strided_slice %4 {offsets = [1, 0], sizes = [1, 48], strides = [1, 1]} : vector<4x48xf32> to vector<1x48xf32>
    %cst = arith.constant dense<0.000000e+00> : vector<10xf32>
    %33 = vector.multi_reduction <add>, %30, %cst [1] : vector<10x48xf32> to vector<10xf32>
    %34 = vector.shape_cast %33 : vector<10xf32> to vector<10x1xf32>
    %cst_11 = arith.constant 4.800000e+01 : f32
    %35 = vector.broadcast %cst_11 : f32 to vector<10x1xf32>
    %36 = arith.divf %34, %35 : vector<10x1xf32>
    %37 = vector.broadcast %36 : vector<10x1xf32> to vector<10x48xf32>
    %38 = arith.subf %30, %37 : vector<10x48xf32>
    %39 = arith.mulf %38, %38 : vector<10x48xf32>
    %cst_12 = arith.constant dense<0.000000e+00> : vector<10xf32>
    %40 = vector.multi_reduction <add>, %39, %cst_12 [1] : vector<10x48xf32> to vector<10xf32>
    %41 = vector.shape_cast %40 : vector<10xf32> to vector<10x1xf32>
    %cst_13 = arith.constant 4.800000e+01 : f32
    %42 = vector.broadcast %cst_13 : f32 to vector<10x1xf32>
    %43 = arith.divf %41, %42 : vector<10x1xf32>
    %44 = vector.broadcast %36 : vector<10x1xf32> to vector<10x48xf32>
    %45 = arith.subf %30, %44 : vector<10x48xf32>
    %cst_14 = arith.constant 9.99999974E-6 : f32
    %46 = vector.broadcast %cst_14 : f32 to vector<10x1xf32>
    %47 = arith.addf %43, %46 : vector<10x1xf32>
    %48 = math.rsqrt %47 : vector<10x1xf32>
    %49 = vector.broadcast %48 : vector<10x1xf32> to vector<10x48xf32>
    %50 = arith.mulf %45, %49 : vector<10x48xf32>
    %51 = vector.broadcast %31 : vector<1x48xf32> to vector<10x48xf32>
    %52 = arith.mulf %50, %51 : vector<10x48xf32>
    %53 = vector.broadcast %32 : vector<1x48xf32> to vector<10x48xf32>
    %54 = arith.addf %52, %53 : vector<10x48xf32>
    %cst_15 = arith.constant 0.000000e+00 : f32
    %55 = vector.broadcast %cst_15 : f32 to vector<10x48xf32>
    %c0_16 = arith.constant 0 : index
    %c0_17 = arith.constant 0 : index
    %c0_18 = arith.constant 0 : index
    %c0_19 = arith.constant 0 : index
    %56 = vector.load %arg8[%c0_16, %c0_17, %c0_18, %c0_19] : memref<1x12x48x12xf32, #tpu.memory_space<vmem>>, vector<1x1x48x12xf32>
    %57 = vector.shape_cast %56 : vector<1x1x48x12xf32> to vector<48x12xf32>
    %cst_20 = arith.constant dense<0.000000e+00> : vector<10x12xf32>
    %58 = tpu.matmul %54, %57, %cst_20 {dimension_numbers = #tpu.dot_dimension_numbers<[1], [0], [0], [1], [0, 0, 1, 1], [], []>} : vector<10x48xf32>, vector<48x12xf32>, vector<10x12xf32> -> vector<10x12xf32>
    %c0_21 = arith.constant 0 : index
    %c0_22 = arith.constant 0 : index
    %c0_23 = arith.constant 0 : index
    %c0_24 = arith.constant 0 : index
    %59 = vector.load %arg9[%c0_21, %c0_22, %c0_23, %c0_24] : memref<1x12x1x12xf32, #tpu.memory_space<vmem>>, vector<1x1x1x12xf32>
    %60 = vector.shape_cast %59 : vector<1x1x1x12xf32> to vector<1x12xf32>
    %61 = vector.broadcast %60 : vector<1x12xf32> to vector<10x12xf32>
    %62 = arith.addf %58, %61 : vector<10x12xf32>
    %c0_25 = arith.constant 0 : index
    %c4 = arith.constant 4 : index
    %c0_26 = arith.constant 0 : index
    %c0_27 = arith.constant 0 : index
    %63 = vector.load %arg8[%c0_25, %c4, %c0_26, %c0_27] : memref<1x12x48x12xf32, #tpu.memory_space<vmem>>, vector<1x1x48x12xf32>
    %64 = vector.shape_cast %63 : vector<1x1x48x12xf32> to vector<48x12xf32>
    %cst_28 = arith.constant dense<0.000000e+00> : vector<10x12xf32>
    %65 = tpu.matmul %54, %64, %cst_28 {dimension_numbers = #tpu.dot_dimension_numbers<[1], [0], [0], [1], [0, 0, 1, 1], [], []>} : vector<10x48xf32>, vector<48x12xf32>, vector<10x12xf32> -> vector<10x12xf32>
    %c0_29 = arith.constant 0 : index
    %c4_30 = arith.constant 4 : index
    %c0_31 = arith.constant 0 : index
    %c0_32 = arith.constant 0 : index
    %66 = vector.load %arg9[%c0_29, %c4_30, %c0_31, %c0_32] : memref<1x12x1x12xf32, #tpu.memory_space<vmem>>, vector<1x1x1x12xf32>
    %67 = vector.shape_cast %66 : vector<1x1x1x12xf32> to vector<1x12xf32>
    %68 = vector.broadcast %67 : vector<1x12xf32> to vector<10x12xf32>
    %69 = arith.addf %65, %68 : vector<10x12xf32>
    %c0_33 = arith.constant 0 : index
    %c8 = arith.constant 8 : index
    %c0_34 = arith.constant 0 : index
    %c0_35 = arith.constant 0 : index
    %70 = vector.load %arg8[%c0_33, %c8, %c0_34, %c0_35] : memref<1x12x48x12xf32, #tpu.memory_space<vmem>>, vector<1x1x48x12xf32>
    %71 = vector.shape_cast %70 : vector<1x1x48x12xf32> to vector<48x12xf32>
    %cst_36 = arith.constant dense<0.000000e+00> : vector<10x12xf32>
    %72 = tpu.matmul %54, %71, %cst_36 {dimension_numbers = #tpu.dot_dimension_numbers<[1], [0], [0], [1], [0, 0, 1, 1], [], []>} : vector<10x48xf32>, vector<48x12xf32>, vector<10x12xf32> -> vector<10x12xf32>
    %c0_37 = arith.constant 0 : index
    %c8_38 = arith.constant 8 : index
    %c0_39 = arith.constant 0 : index
    %c0_40 = arith.constant 0 : index
    %73 = vector.load %arg9[%c0_37, %c8_38, %c0_39, %c0_40] : memref<1x12x1x12xf32, #tpu.memory_space<vmem>>, vector<1x1x1x12xf32>
    %74 = vector.shape_cast %73 : vector<1x1x1x12xf32> to vector<1x12xf32>
    %75 = vector.broadcast %74 : vector<1x12xf32> to vector<10x12xf32>
    %76 = arith.addf %72, %75 : vector<10x12xf32>
    %77 = tpu.transpose %69, [1, 0] : vector<10x12xf32> -> vector<12x10xf32>
    %cst_41 = arith.constant dense<0.000000e+00> : vector<10x10xf32>
    %78 = tpu.matmul %62, %77, %cst_41 {dimension_numbers = #tpu.dot_dimension_numbers<[1], [0], [0], [1], [0, 0, 1, 1], [], []>} : vector<10x12xf32>, vector<12x10xf32>, vector<10x10xf32> -> vector<10x10xf32>
    %cst_42 = arith.constant 0.288675129 : f32
    %79 = vector.broadcast %cst_42 : f32 to vector<10x10xf32>
    %80 = arith.mulf %78, %79 : vector<10x10xf32>
    %cst_43 = arith.constant -1.000000e+30 : f32
    %81 = vector.broadcast %cst_43 : f32 to vector<10x10xf32>
    %82 = arith.select %29, %80, %81 : vector<10x10xi1>, vector<10x10xf32>
    %cst_44 = arith.constant dense<0xFF800000> : vector<10xf32>
    %83 = vector.multi_reduction <maximumf>, %82, %cst_44 [1] : vector<10x10xf32> to vector<10xf32>
    %84 = vector.shape_cast %83 : vector<10xf32> to vector<10x1xf32>
    %85 = vector.broadcast %84 : vector<10x1xf32> to vector<10x10xf32>
    %86 = arith.subf %82, %85 : vector<10x10xf32>
    %87 = math.exp %86 : vector<10x10xf32>
    %cst_45 = arith.constant dense<0.000000e+00> : vector<10xf32>
    %88 = vector.multi_reduction <add>, %87, %cst_45 [1] : vector<10x10xf32> to vector<10xf32>
    %89 = vector.shape_cast %88 : vector<10xf32> to vector<10x1xf32>
    %90 = tpu.reciprocal %89 {approx = true} : vector<10x1xf32> -> vector<10x1xf32>
    %91 = vector.broadcast %90 : vector<10x1xf32> to vector<10x10xf32>
    %92 = arith.mulf %87, %91 : vector<10x10xf32>
    %cst_46 = arith.constant dense<0.000000e+00> : vector<10x12xf32>
    %93 = tpu.matmul %92, %76, %cst_46 {dimension_numbers = #tpu.dot_dimension_numbers<[1], [0], [0], [1], [0, 0, 1, 1], [], []>} : vector<10x10xf32>, vector<10x12xf32>, vector<10x12xf32> -> vector<10x12xf32>
    %c0_47 = arith.constant 0 : index
    %c0_48 = arith.constant 0 : index
    %c0_49 = arith.constant 0 : index
    %c0_50 = arith.constant 0 : index
    %94 = vector.load %arg10[%c0_47, %c0_48, %c0_49, %c0_50] : memref<1x4x12x48xf32, #tpu.memory_space<vmem>>, vector<1x1x12x48xf32>
    %95 = vector.shape_cast %94 : vector<1x1x12x48xf32> to vector<12x48xf32>
    %cst_51 = arith.constant dense<0.000000e+00> : vector<10x48xf32>
    %96 = tpu.matmul %93, %95, %cst_51 {dimension_numbers = #tpu.dot_dimension_numbers<[1], [0], [0], [1], [0, 0, 1, 1], [], []>} : vector<10x12xf32>, vector<12x48xf32>, vector<10x48xf32> -> vector<10x48xf32>
    %97 = arith.addf %55, %96 : vector<10x48xf32>
    %c0_52 = arith.constant 0 : index
    %c1 = arith.constant 1 : index
    %c0_53 = arith.constant 0 : index
    %c0_54 = arith.constant 0 : index
    %98 = vector.load %arg8[%c0_52, %c1, %c0_53, %c0_54] : memref<1x12x48x12xf32, #tpu.memory_space<vmem>>, vector<1x1x48x12xf32>
    %99 = vector.shape_cast %98 : vector<1x1x48x12xf32> to vector<48x12xf32>
    %cst_55 = arith.constant dense<0.000000e+00> : vector<10x12xf32>
    %100 = tpu.matmul %54, %99, %cst_55 {dimension_numbers = #tpu.dot_dimension_numbers<[1], [0], [0], [1], [0, 0, 1, 1], [], []>} : vector<10x48xf32>, vector<48x12xf32>, vector<10x12xf32> -> vector<10x12xf32>
    %c0_56 = arith.constant 0 : index
    %c1_57 = arith.constant 1 : index
    %c0_58 = arith.constant 0 : index
    %c0_59 = arith.constant 0 : index
    %101 = vector.load %arg9[%c0_56, %c1_57, %c0_58, %c0_59] : memref<1x12x1x12xf32, #tpu.memory_space<vmem>>, vector<1x1x1x12xf32>
    %102 = vector.shape_cast %101 : vector<1x1x1x12xf32> to vector<1x12xf32>
    %103 = vector.broadcast %102 : vector<1x12xf32> to vector<10x12xf32>
    %104 = arith.addf %100, %103 : vector<10x12xf32>
    %c0_60 = arith.constant 0 : index
    %c5 = arith.constant 5 : index
    %c0_61 = arith.constant 0 : index
    %c0_62 = arith.constant 0 : index
    %105 = vector.load %arg8[%c0_60, %c5, %c0_61, %c0_62] : memref<1x12x48x12xf32, #tpu.memory_space<vmem>>, vector<1x1x48x12xf32>
    %106 = vector.shape_cast %105 : vector<1x1x48x12xf32> to vector<48x12xf32>
    %cst_63 = arith.constant dense<0.000000e+00> : vector<10x12xf32>
    %107 = tpu.matmul %54, %106, %cst_63 {dimension_numbers = #tpu.dot_dimension_numbers<[1], [0], [0], [1], [0, 0, 1, 1], [], []>} : vector<10x48xf32>, vector<48x12xf32>, vector<10x12xf32> -> vector<10x12xf32>
    %c0_64 = arith.constant 0 : index
    %c5_65 = arith.constant 5 : index
    %c0_66 = arith.constant 0 : index
    %c0_67 = arith.constant 0 : index
    %108 = vector.load %arg9[%c0_64, %c5_65, %c0_66, %c0_67] : memref<1x12x1x12xf32, #tpu.memory_space<vmem>>, vector<1x1x1x12xf32>
    %109 = vector.shape_cast %108 : vector<1x1x1x12xf32> to vector<1x12xf32>
    %110 = vector.broadcast %109 : vector<1x12xf32> to vector<10x12xf32>
    %111 = arith.addf %107, %110 : vector<10x12xf32>
    %c0_68 = arith.constant 0 : index
    %c9 = arith.constant 9 : index
    %c0_69 = arith.constant 0 : index
    %c0_70 = arith.constant 0 : index
    %112 = vector.load %arg8[%c0_68, %c9, %c0_69, %c0_70] : memref<1x12x48x12xf32, #tpu.memory_space<vmem>>, vector<1x1x48x12xf32>
    %113 = vector.shape_cast %112 : vector<1x1x48x12xf32> to vector<48x12xf32>
    %cst_71 = arith.constant dense<0.000000e+00> : vector<10x12xf32>
    %114 = tpu.matmul %54, %113, %cst_71 {dimension_numbers = #tpu.dot_dimension_numbers<[1], [0], [0], [1], [0, 0, 1, 1], [], []>} : vector<10x48xf32>, vector<48x12xf32>, vector<10x12xf32> -> vector<10x12xf32>
    %c0_72 = arith.constant 0 : index
    %c9_73 = arith.constant 9 : index
    %c0_74 = arith.constant 0 : index
    %c0_75 = arith.constant 0 : index
    %115 = vector.load %arg9[%c0_72, %c9_73, %c0_74, %c0_75] : memref<1x12x1x12xf32, #tpu.memory_space<vmem>>, vector<1x1x1x12xf32>
    %116 = vector.shape_cast %115 : vector<1x1x1x12xf32> to vector<1x12xf32>
    %117 = vector.broadcast %116 : vector<1x12xf32> to vector<10x12xf32>
    %118 = arith.addf %114, %117 : vector<10x12xf32>
    %119 = tpu.transpose %111, [1, 0] : vector<10x12xf32> -> vector<12x10xf32>
    %cst_76 = arith.constant dense<0.000000e+00> : vector<10x10xf32>
    %120 = tpu.matmul %104, %119, %cst_76 {dimension_numbers = #tpu.dot_dimension_numbers<[1], [0], [0], [1], [0, 0, 1, 1], [], []>} : vector<10x12xf32>, vector<12x10xf32>, vector<10x10xf32> -> vector<10x10xf32>
    %cst_77 = arith.constant 0.288675129 : f32
    %121 = vector.broadcast %cst_77 : f32 to vector<10x10xf32>
    %122 = arith.mulf %120, %121 : vector<10x10xf32>
    %cst_78 = arith.constant -1.000000e+30 : f32
    %123 = vector.broadcast %cst_78 : f32 to vector<10x10xf32>
    %124 = arith.select %29, %122, %123 : vector<10x10xi1>, vector<10x10xf32>
    %cst_79 = arith.constant dense<0xFF800000> : vector<10xf32>
    %125 = vector.multi_reduction <maximumf>, %124, %cst_79 [1] : vector<10x10xf32> to vector<10xf32>
    %126 = vector.shape_cast %125 : vector<10xf32> to vector<10x1xf32>
    %127 = vector.broadcast %126 : vector<10x1xf32> to vector<10x10xf32>
    %128 = arith.subf %124, %127 : vector<10x10xf32>
    %129 = math.exp %128 : vector<10x10xf32>
    %cst_80 = arith.constant dense<0.000000e+00> : vector<10xf32>
    %130 = vector.multi_reduction <add>, %129, %cst_80 [1] : vector<10x10xf32> to vector<10xf32>
    %131 = vector.shape_cast %130 : vector<10xf32> to vector<10x1xf32>
    %132 = tpu.reciprocal %131 {approx = true} : vector<10x1xf32> -> vector<10x1xf32>
    %133 = vector.broadcast %132 : vector<10x1xf32> to vector<10x10xf32>
    %134 = arith.mulf %129, %133 : vector<10x10xf32>
    %cst_81 = arith.constant dense<0.000000e+00> : vector<10x12xf32>
    %135 = tpu.matmul %134, %118, %cst_81 {dimension_numbers = #tpu.dot_dimension_numbers<[1], [0], [0], [1], [0, 0, 1, 1], [], []>} : vector<10x10xf32>, vector<10x12xf32>, vector<10x12xf32> -> vector<10x12xf32>
    %c0_82 = arith.constant 0 : index
    %c1_83 = arith.constant 1 : index
    %c0_84 = arith.constant 0 : index
    %c0_85 = arith.constant 0 : index
    %136 = vector.load %arg10[%c0_82, %c1_83, %c0_84, %c0_85] : memref<1x4x12x48xf32, #tpu.memory_space<vmem>>, vector<1x1x12x48xf32>
    %137 = vector.shape_cast %136 : vector<1x1x12x48xf32> to vector<12x48xf32>
    %cst_86 = arith.constant dense<0.000000e+00> : vector<10x48xf32>
    %138 = tpu.matmul %135, %137, %cst_86 {dimension_numbers = #tpu.dot_dimension_numbers<[1], [0], [0], [1], [0, 0, 1, 1], [], []>} : vector<10x12xf32>, vector<12x48xf32>, vector<10x48xf32> -> vector<10x48xf32>
    %139 = arith.addf %97, %138 : vector<10x48xf32>
    %c0_87 = arith.constant 0 : index
    %c2 = arith.constant 2 : index
    %c0_88 = arith.constant 0 : index
    %c0_89 = arith.constant 0 : index
    %140 = vector.load %arg8[%c0_87, %c2, %c0_88, %c0_89] : memref<1x12x48x12xf32, #tpu.memory_space<vmem>>, vector<1x1x48x12xf32>
    %141 = vector.shape_cast %140 : vector<1x1x48x12xf32> to vector<48x12xf32>
    %cst_90 = arith.constant dense<0.000000e+00> : vector<10x12xf32>
    %142 = tpu.matmul %54, %141, %cst_90 {dimension_numbers = #tpu.dot_dimension_numbers<[1], [0], [0], [1], [0, 0, 1, 1], [], []>} : vector<10x48xf32>, vector<48x12xf32>, vector<10x12xf32> -> vector<10x12xf32>
    %c0_91 = arith.constant 0 : index
    %c2_92 = arith.constant 2 : index
    %c0_93 = arith.constant 0 : index
    %c0_94 = arith.constant 0 : index
    %143 = vector.load %arg9[%c0_91, %c2_92, %c0_93, %c0_94] : memref<1x12x1x12xf32, #tpu.memory_space<vmem>>, vector<1x1x1x12xf32>
    %144 = vector.shape_cast %143 : vector<1x1x1x12xf32> to vector<1x12xf32>
    %145 = vector.broadcast %144 : vector<1x12xf32> to vector<10x12xf32>
    %146 = arith.addf %142, %145 : vector<10x12xf32>
    %c0_95 = arith.constant 0 : index
    %c6 = arith.constant 6 : index
    %c0_96 = arith.constant 0 : index
    %c0_97 = arith.constant 0 : index
    %147 = vector.load %arg8[%c0_95, %c6, %c0_96, %c0_97] : memref<1x12x48x12xf32, #tpu.memory_space<vmem>>, vector<1x1x48x12xf32>
    %148 = vector.shape_cast %147 : vector<1x1x48x12xf32> to vector<48x12xf32>
    %cst_98 = arith.constant dense<0.000000e+00> : vector<10x12xf32>
    %149 = tpu.matmul %54, %148, %cst_98 {dimension_numbers = #tpu.dot_dimension_numbers<[1], [0], [0], [1], [0, 0, 1, 1], [], []>} : vector<10x48xf32>, vector<48x12xf32>, vector<10x12xf32> -> vector<10x12xf32>
    %c0_99 = arith.constant 0 : index
    %c6_100 = arith.constant 6 : index
    %c0_101 = arith.constant 0 : index
    %c0_102 = arith.constant 0 : index
    %150 = vector.load %arg9[%c0_99, %c6_100, %c0_101, %c0_102] : memref<1x12x1x12xf32, #tpu.memory_space<vmem>>, vector<1x1x1x12xf32>
    %151 = vector.shape_cast %150 : vector<1x1x1x12xf32> to vector<1x12xf32>
    %152 = vector.broadcast %151 : vector<1x12xf32> to vector<10x12xf32>
    %153 = arith.addf %149, %152 : vector<10x12xf32>
    %c0_103 = arith.constant 0 : index
    %c10 = arith.constant 10 : index
    %c0_104 = arith.constant 0 : index
    %c0_105 = arith.constant 0 : index
    %154 = vector.load %arg8[%c0_103, %c10, %c0_104, %c0_105] : memref<1x12x48x12xf32, #tpu.memory_space<vmem>>, vector<1x1x48x12xf32>
    %155 = vector.shape_cast %154 : vector<1x1x48x12xf32> to vector<48x12xf32>
    %cst_106 = arith.constant dense<0.000000e+00> : vector<10x12xf32>
    %156 = tpu.matmul %54, %155, %cst_106 {dimension_numbers = #tpu.dot_dimension_numbers<[1], [0], [0], [1], [0, 0, 1, 1], [], []>} : vector<10x48xf32>, vector<48x12xf32>, vector<10x12xf32> -> vector<10x12xf32>
    %c0_107 = arith.constant 0 : index
    %c10_108 = arith.constant 10 : index
    %c0_109 = arith.constant 0 : index
    %c0_110 = arith.constant 0 : index
    %157 = vector.load %arg9[%c0_107, %c10_108, %c0_109, %c0_110] : memref<1x12x1x12xf32, #tpu.memory_space<vmem>>, vector<1x1x1x12xf32>
    %158 = vector.shape_cast %157 : vector<1x1x1x12xf32> to vector<1x12xf32>
    %159 = vector.broadcast %158 : vector<1x12xf32> to vector<10x12xf32>
    %160 = arith.addf %156, %159 : vector<10x12xf32>
    %161 = tpu.transpose %153, [1, 0] : vector<10x12xf32> -> vector<12x10xf32>
    %cst_111 = arith.constant dense<0.000000e+00> : vector<10x10xf32>
    %162 = tpu.matmul %146, %161, %cst_111 {dimension_numbers = #tpu.dot_dimension_numbers<[1], [0], [0], [1], [0, 0, 1, 1], [], []>} : vector<10x12xf32>, vector<12x10xf32>, vector<10x10xf32> -> vector<10x10xf32>
    %cst_112 = arith.constant 0.288675129 : f32
    %163 = vector.broadcast %cst_112 : f32 to vector<10x10xf32>
    %164 = arith.mulf %162, %163 : vector<10x10xf32>
    %cst_113 = arith.constant -1.000000e+30 : f32
    %165 = vector.broadcast %cst_113 : f32 to vector<10x10xf32>
    %166 = arith.select %29, %164, %165 : vector<10x10xi1>, vector<10x10xf32>
    %cst_114 = arith.constant dense<0xFF800000> : vector<10xf32>
    %167 = vector.multi_reduction <maximumf>, %166, %cst_114 [1] : vector<10x10xf32> to vector<10xf32>
    %168 = vector.shape_cast %167 : vector<10xf32> to vector<10x1xf32>
    %169 = vector.broadcast %168 : vector<10x1xf32> to vector<10x10xf32>
    %170 = arith.subf %166, %169 : vector<10x10xf32>
    %171 = math.exp %170 : vector<10x10xf32>
    %cst_115 = arith.constant dense<0.000000e+00> : vector<10xf32>
    %172 = vector.multi_reduction <add>, %171, %cst_115 [1] : vector<10x10xf32> to vector<10xf32>
    %173 = vector.shape_cast %172 : vector<10xf32> to vector<10x1xf32>
    %174 = tpu.reciprocal %173 {approx = true} : vector<10x1xf32> -> vector<10x1xf32>
    %175 = vector.broadcast %174 : vector<10x1xf32> to vector<10x10xf32>
    %176 = arith.mulf %171, %175 : vector<10x10xf32>
    %cst_116 = arith.constant dense<0.000000e+00> : vector<10x12xf32>
    %177 = tpu.matmul %176, %160, %cst_116 {dimension_numbers = #tpu.dot_dimension_numbers<[1], [0], [0], [1], [0, 0, 1, 1], [], []>} : vector<10x10xf32>, vector<10x12xf32>, vector<10x12xf32> -> vector<10x12xf32>
    %c0_117 = arith.constant 0 : index
    %c2_118 = arith.constant 2 : index
    %c0_119 = arith.constant 0 : index
    %c0_120 = arith.constant 0 : index
    %178 = vector.load %arg10[%c0_117, %c2_118, %c0_119, %c0_120] : memref<1x4x12x48xf32, #tpu.memory_space<vmem>>, vector<1x1x12x48xf32>
    %179 = vector.shape_cast %178 : vector<1x1x12x48xf32> to vector<12x48xf32>
    %cst_121 = arith.constant dense<0.000000e+00> : vector<10x48xf32>
    %180 = tpu.matmul %177, %179, %cst_121 {dimension_numbers = #tpu.dot_dimension_numbers<[1], [0], [0], [1], [0, 0, 1, 1], [], []>} : vector<10x12xf32>, vector<12x48xf32>, vector<10x48xf32> -> vector<10x48xf32>
    %181 = arith.addf %139, %180 : vector<10x48xf32>
    %c0_122 = arith.constant 0 : index
    %c3 = arith.constant 3 : index
    %c0_123 = arith.constant 0 : index
    %c0_124 = arith.constant 0 : index
    %182 = vector.load %arg8[%c0_122, %c3, %c0_123, %c0_124] : memref<1x12x48x12xf32, #tpu.memory_space<vmem>>, vector<1x1x48x12xf32>
    %183 = vector.shape_cast %182 : vector<1x1x48x12xf32> to vector<48x12xf32>
    %cst_125 = arith.constant dense<0.000000e+00> : vector<10x12xf32>
    %184 = tpu.matmul %54, %183, %cst_125 {dimension_numbers = #tpu.dot_dimension_numbers<[1], [0], [0], [1], [0, 0, 1, 1], [], []>} : vector<10x48xf32>, vector<48x12xf32>, vector<10x12xf32> -> vector<10x12xf32>
    %c0_126 = arith.constant 0 : index
    %c3_127 = arith.constant 3 : index
    %c0_128 = arith.constant 0 : index
    %c0_129 = arith.constant 0 : index
    %185 = vector.load %arg9[%c0_126, %c3_127, %c0_128, %c0_129] : memref<1x12x1x12xf32, #tpu.memory_space<vmem>>, vector<1x1x1x12xf32>
    %186 = vector.shape_cast %185 : vector<1x1x1x12xf32> to vector<1x12xf32>
    %187 = vector.broadcast %186 : vector<1x12xf32> to vector<10x12xf32>
    %188 = arith.addf %184, %187 : vector<10x12xf32>
    %c0_130 = arith.constant 0 : index
    %c7 = arith.constant 7 : index
    %c0_131 = arith.constant 0 : index
    %c0_132 = arith.constant 0 : index
    %189 = vector.load %arg8[%c0_130, %c7, %c0_131, %c0_132] : memref<1x12x48x12xf32, #tpu.memory_space<vmem>>, vector<1x1x48x12xf32>
    %190 = vector.shape_cast %189 : vector<1x1x48x12xf32> to vector<48x12xf32>
    %cst_133 = arith.constant dense<0.000000e+00> : vector<10x12xf32>
    %191 = tpu.matmul %54, %190, %cst_133 {dimension_numbers = #tpu.dot_dimension_numbers<[1], [0], [0], [1], [0, 0, 1, 1], [], []>} : vector<10x48xf32>, vector<48x12xf32>, vector<10x12xf32> -> vector<10x12xf32>
    %c0_134 = arith.constant 0 : index
    %c7_135 = arith.constant 7 : index
    %c0_136 = arith.constant 0 : index
    %c0_137 = arith.constant 0 : index
    %192 = vector.load %arg9[%c0_134, %c7_135, %c0_136, %c0_137] : memref<1x12x1x12xf32, #tpu.memory_space<vmem>>, vector<1x1x1x12xf32>
    %193 = vector.shape_cast %192 : vector<1x1x1x12xf32> to vector<1x12xf32>
    %194 = vector.broadcast %193 : vector<1x12xf32> to vector<10x12xf32>
    %195 = arith.addf %191, %194 : vector<10x12xf32>
    %c0_138 = arith.constant 0 : index
    %c11 = arith.constant 11 : index
    %c0_139 = arith.constant 0 : index
    %c0_140 = arith.constant 0 : index
    %196 = vector.load %arg8[%c0_138, %c11, %c0_139, %c0_140] : memref<1x12x48x12xf32, #tpu.memory_space<vmem>>, vector<1x1x48x12xf32>
    %197 = vector.shape_cast %196 : vector<1x1x48x12xf32> to vector<48x12xf32>
    %cst_141 = arith.constant dense<0.000000e+00> : vector<10x12xf32>
    %198 = tpu.matmul %54, %197, %cst_141 {dimension_numbers = #tpu.dot_dimension_numbers<[1], [0], [0], [1], [0, 0, 1, 1], [], []>} : vector<10x48xf32>, vector<48x12xf32>, vector<10x12xf32> -> vector<10x12xf32>
    %c0_142 = arith.constant 0 : index
    %c11_143 = arith.constant 11 : index
    %c0_144 = arith.constant 0 : index
    %c0_145 = arith.constant 0 : index
    %199 = vector.load %arg9[%c0_142, %c11_143, %c0_144, %c0_145] : memref<1x12x1x12xf32, #tpu.memory_space<vmem>>, vector<1x1x1x12xf32>
    %200 = vector.shape_cast %199 : vector<1x1x1x12xf32> to vector<1x12xf32>
    %201 = vector.broadcast %200 : vector<1x12xf32> to vector<10x12xf32>
    %202 = arith.addf %198, %201 : vector<10x12xf32>
    %203 = tpu.transpose %195, [1, 0] : vector<10x12xf32> -> vector<12x10xf32>
    %cst_146 = arith.constant dense<0.000000e+00> : vector<10x10xf32>
    %204 = tpu.matmul %188, %203, %cst_146 {dimension_numbers = #tpu.dot_dimension_numbers<[1], [0], [0], [1], [0, 0, 1, 1], [], []>} : vector<10x12xf32>, vector<12x10xf32>, vector<10x10xf32> -> vector<10x10xf32>
    %cst_147 = arith.constant 0.288675129 : f32
    %205 = vector.broadcast %cst_147 : f32 to vector<10x10xf32>
    %206 = arith.mulf %204, %205 : vector<10x10xf32>
    %cst_148 = arith.constant -1.000000e+30 : f32
    %207 = vector.broadcast %cst_148 : f32 to vector<10x10xf32>
    %208 = arith.select %29, %206, %207 : vector<10x10xi1>, vector<10x10xf32>
    %cst_149 = arith.constant dense<0xFF800000> : vector<10xf32>
    %209 = vector.multi_reduction <maximumf>, %208, %cst_149 [1] : vector<10x10xf32> to vector<10xf32>
    %210 = vector.shape_cast %209 : vector<10xf32> to vector<10x1xf32>
    %211 = vector.broadcast %210 : vector<10x1xf32> to vector<10x10xf32>
    %212 = arith.subf %208, %211 : vector<10x10xf32>
    %213 = math.exp %212 : vector<10x10xf32>
    %cst_150 = arith.constant dense<0.000000e+00> : vector<10xf32>
    %214 = vector.multi_reduction <add>, %213, %cst_150 [1] : vector<10x10xf32> to vector<10xf32>
    %215 = vector.shape_cast %214 : vector<10xf32> to vector<10x1xf32>
    %216 = tpu.reciprocal %215 {approx = true} : vector<10x1xf32> -> vector<10x1xf32>
    %217 = vector.broadcast %216 : vector<10x1xf32> to vector<10x10xf32>
    %218 = arith.mulf %213, %217 : vector<10x10xf32>
    %cst_151 = arith.constant dense<0.000000e+00> : vector<10x12xf32>
    %219 = tpu.matmul %218, %202, %cst_151 {dimension_numbers = #tpu.dot_dimension_numbers<[1], [0], [0], [1], [0, 0, 1, 1], [], []>} : vector<10x10xf32>, vector<10x12xf32>, vector<10x12xf32> -> vector<10x12xf32>
    %c0_152 = arith.constant 0 : index
    %c3_153 = arith.constant 3 : index
    %c0_154 = arith.constant 0 : index
    %c0_155 = arith.constant 0 : index
    %220 = vector.load %arg10[%c0_152, %c3_153, %c0_154, %c0_155] : memref<1x4x12x48xf32, #tpu.memory_space<vmem>>, vector<1x1x12x48xf32>
    %221 = vector.shape_cast %220 : vector<1x1x12x48xf32> to vector<12x48xf32>
    %cst_156 = arith.constant dense<0.000000e+00> : vector<10x48xf32>
    %222 = tpu.matmul %219, %221, %cst_156 {dimension_numbers = #tpu.dot_dimension_numbers<[1], [0], [0], [1], [0, 0, 1, 1], [], []>} : vector<10x12xf32>, vector<12x48xf32>, vector<10x48xf32> -> vector<10x48xf32>
    %223 = arith.addf %181, %222 : vector<10x48xf32>
    %c0_157 = arith.constant 0 : index
    %c0_158 = arith.constant 0 : index
    %c0_159 = arith.constant 0 : index
    %224 = vector.load %arg11[%c0_157, %c0_158, %c0_159] : memref<1x1x48xf32, #tpu.memory_space<vmem>>, vector<1x1x48xf32>
    %225 = vector.shape_cast %224 : vector<1x1x48xf32> to vector<1x48xf32>
    %226 = vector.broadcast %225 : vector<1x48xf32> to vector<10x48xf32>
    %227 = arith.addf %223, %226 : vector<10x48xf32>
    %228 = arith.addf %30, %227 : vector<10x48xf32>
    %229 = vector.extract_strided_slice %4 {offsets = [2, 0], sizes = [1, 48], strides = [1, 1]} : vector<4x48xf32> to vector<1x48xf32>
    %230 = vector.extract_strided_slice %4 {offsets = [3, 0], sizes = [1, 48], strides = [1, 1]} : vector<4x48xf32> to vector<1x48xf32>
    %cst_160 = arith.constant dense<0.000000e+00> : vector<10xf32>
    %231 = vector.multi_reduction <add>, %228, %cst_160 [1] : vector<10x48xf32> to vector<10xf32>
    %232 = vector.shape_cast %231 : vector<10xf32> to vector<10x1xf32>
    %cst_161 = arith.constant 4.800000e+01 : f32
    %233 = vector.broadcast %cst_161 : f32 to vector<10x1xf32>
    %234 = arith.divf %232, %233 : vector<10x1xf32>
    %235 = vector.broadcast %234 : vector<10x1xf32> to vector<10x48xf32>
    %236 = arith.subf %228, %235 : vector<10x48xf32>
    %237 = arith.mulf %236, %236 : vector<10x48xf32>
    %cst_162 = arith.constant dense<0.000000e+00> : vector<10xf32>
    %238 = vector.multi_reduction <add>, %237, %cst_162 [1] : vector<10x48xf32> to vector<10xf32>
    %239 = vector.shape_cast %238 : vector<10xf32> to vector<10x1xf32>
    %cst_163 = arith.constant 4.800000e+01 : f32
    %240 = vector.broadcast %cst_163 : f32 to vector<10x1xf32>
    %241 = arith.divf %239, %240 : vector<10x1xf32>
    %242 = vector.broadcast %234 : vector<10x1xf32> to vector<10x48xf32>
    %243 = arith.subf %228, %242 : vector<10x48xf32>
    %cst_164 = arith.constant 9.99999974E-6 : f32
    %244 = vector.broadcast %cst_164 : f32 to vector<10x1xf32>
    %245 = arith.addf %241, %244 : vector<10x1xf32>
    %246 = math.rsqrt %245 : vector<10x1xf32>
    %247 = vector.broadcast %246 : vector<10x1xf32> to vector<10x48xf32>
    %248 = arith.mulf %243, %247 : vector<10x48xf32>
    %249 = vector.broadcast %229 : vector<1x48xf32> to vector<10x48xf32>
    %250 = arith.mulf %248, %249 : vector<10x48xf32>
    %251 = vector.broadcast %230 : vector<1x48xf32> to vector<10x48xf32>
    %252 = arith.addf %250, %251 : vector<10x48xf32>
    %c0_165 = arith.constant 0 : index
    %c0_166 = arith.constant 0 : index
    %c0_167 = arith.constant 0 : index
    %253 = vector.load %arg12[%c0_165, %c0_166, %c0_167] : memref<1x48x96xf32, #tpu.memory_space<vmem>>, vector<1x48x96xf32>
    %254 = vector.shape_cast %253 : vector<1x48x96xf32> to vector<48x96xf32>
    %cst_168 = arith.constant dense<0.000000e+00> : vector<10x96xf32>
    %255 = tpu.matmul %252, %254, %cst_168 {dimension_numbers = #tpu.dot_dimension_numbers<[1], [0], [0], [1], [0, 0, 1, 1], [], []>} : vector<10x48xf32>, vector<48x96xf32>, vector<10x96xf32> -> vector<10x96xf32>
    %c0_169 = arith.constant 0 : index
    %c0_170 = arith.constant 0 : index
    %c0_171 = arith.constant 0 : index
    %256 = vector.load %arg13[%c0_169, %c0_170, %c0_171] : memref<1x1x96xf32, #tpu.memory_space<vmem>>, vector<1x1x96xf32>
    %257 = vector.shape_cast %256 : vector<1x1x96xf32> to vector<1x96xf32>
    %258 = vector.broadcast %257 : vector<1x96xf32> to vector<10x96xf32>
    %259 = arith.addf %255, %258 : vector<10x96xf32>
    %260 = arith.mulf %259, %259 : vector<10x96xf32>
    %261 = arith.mulf %259, %260 : vector<10x96xf32>
    %cst_172 = arith.constant 4.471500e-02 : f32
    %262 = vector.broadcast %cst_172 : f32 to vector<10x96xf32>
    %263 = arith.mulf %262, %261 : vector<10x96xf32>
    %264 = arith.addf %259, %263 : vector<10x96xf32>
    %cst_173 = arith.constant 0.797884583 : f32
    %265 = vector.broadcast %cst_173 : f32 to vector<10x96xf32>
    %266 = arith.mulf %265, %264 : vector<10x96xf32>
    %267 = math.tanh %266 : vector<10x96xf32>
    %cst_174 = arith.constant 1.000000e+00 : f32
    %268 = vector.broadcast %cst_174 : f32 to vector<10x96xf32>
    %269 = arith.addf %268, %267 : vector<10x96xf32>
    %cst_175 = arith.constant 5.000000e-01 : f32
    %270 = vector.broadcast %cst_175 : f32 to vector<10x96xf32>
    %271 = arith.mulf %270, %269 : vector<10x96xf32>
    %272 = arith.mulf %259, %271 : vector<10x96xf32>
    %c0_176 = arith.constant 0 : index
    %c0_177 = arith.constant 0 : index
    %c0_178 = arith.constant 0 : index
    %273 = vector.load %arg14[%c0_176, %c0_177, %c0_178] : memref<1x96x48xf32, #tpu.memory_space<vmem>>, vector<1x96x48xf32>
    %274 = vector.shape_cast %273 : vector<1x96x48xf32> to vector<96x48xf32>
    %cst_179 = arith.constant dense<0.000000e+00> : vector<10x48xf32>
    %275 = tpu.matmul %272, %274, %cst_179 {dimension_numbers = #tpu.dot_dimension_numbers<[1], [0], [0], [1], [0, 0, 1, 1], [], []>} : vector<10x96xf32>, vector<96x48xf32>, vector<10x48xf32> -> vector<10x48xf32>
    %276 = arith.addf %228, %275 : vector<10x48xf32>
    %c0_180 = arith.constant 0 : index
    %c0_181 = arith.constant 0 : index
    %c0_182 = arith.constant 0 : index
    %277 = vector.load %arg15[%c0_180, %c0_181, %c0_182] : memref<1x1x48xf32, #tpu.memory_space<vmem>>, vector<1x1x48xf32>
    %278 = vector.shape_cast %277 : vector<1x1x48xf32> to vector<1x48xf32>
    %279 = vector.broadcast %278 : vector<1x48xf32> to vector<10x48xf32>
    %280 = arith.addf %276, %279 : vector<10x48xf32>
    %c0_183 = arith.constant 0 : index
    %c0_184 = arith.constant 0 : index
    %281 = vector.load %arg18[%c0_183, %c0_184] : memref<10x48xf32, #tpu.memory_space<vmem>>, vector<10x48xf32>
    tpu.vector_store %arg18[%c0_183, %c0_184], %280 {strides = array<i32>} : memref<10x48xf32, #tpu.memory_space<vmem>>, vector<10x48xf32>,
    %c8_i32 = arith.constant 8 : i32
    %282 = arith.cmpi eq, %arg0, %c8_i32 : i32
    %283 = arith.extui %282 : i1 to i32
    %c0_i32_185 = arith.constant 0 : i32
    %284 = arith.cmpi ne, %283, %c0_i32_185 : i32
    scf.if %284 {
      %c0_190 = arith.constant 0 : index
      %c0_191 = arith.constant 0 : index
      %c0_192 = arith.constant 0 : index
      %294 = vector.load %arg16[%c0_190, %c0_191, %c0_192] : memref<3x10x48xf32, #tpu.memory_space<vmem>>, vector<1x10x48xf32>
      %295 = vector.shape_cast %294 : vector<1x10x48xf32> to vector<10x48xf32>
      %296 = vector.shape_cast %280 : vector<10x48xf32> to vector<1x10x48xf32>
      tpu.vector_store %arg16[%c0_190, %c0_191, %c0_192], %296 {strides = array<i32>} : memref<3x10x48xf32, #tpu.memory_space<vmem>>, vector<1x10x48xf32>,
    } else {
    }
    %c5_i32_186 = arith.constant 5 : i32
    %285 = arith.cmpi eq, %arg0, %c5_i32_186 : i32
    %286 = arith.extui %285 : i1 to i32
    %c0_i32_187 = arith.constant 0 : i32
    %287 = arith.cmpi ne, %286, %c0_i32_187 : i32
    scf.if %287 {
      %c1_190 = arith.constant 1 : index
      %c0_191 = arith.constant 0 : index
      %c0_192 = arith.constant 0 : index
      %294 = vector.load %arg16[%c1_190, %c0_191, %c0_192] : memref<3x10x48xf32, #tpu.memory_space<vmem>>, vector<1x10x48xf32>
      %295 = vector.shape_cast %294 : vector<1x10x48xf32> to vector<10x48xf32>
      %296 = vector.shape_cast %280 : vector<10x48xf32> to vector<1x10x48xf32>
      tpu.vector_store %arg16[%c1_190, %c0_191, %c0_192], %296 {strides = array<i32>} : memref<3x10x48xf32, #tpu.memory_space<vmem>>, vector<1x10x48xf32>,
    } else {
    }
    %c2_i32 = arith.constant 2 : i32
    %288 = arith.cmpi eq, %arg0, %c2_i32 : i32
    %289 = arith.extui %288 : i1 to i32
    %c0_i32_188 = arith.constant 0 : i32
    %290 = arith.cmpi ne, %289, %c0_i32_188 : i32
    scf.if %290 {
      %c2_190 = arith.constant 2 : index
      %c0_191 = arith.constant 0 : index
      %c0_192 = arith.constant 0 : index
      %294 = vector.load %arg16[%c2_190, %c0_191, %c0_192] : memref<3x10x48xf32, #tpu.memory_space<vmem>>, vector<1x10x48xf32>
      %295 = vector.shape_cast %294 : vector<1x10x48xf32> to vector<10x48xf32>
      %296 = vector.shape_cast %280 : vector<10x48xf32> to vector<1x10x48xf32>
      tpu.vector_store %arg16[%c2_190, %c0_191, %c0_192], %296 {strides = array<i32>} : memref<3x10x48xf32, #tpu.memory_space<vmem>>, vector<1x10x48xf32>,
    } else {
    }
    %c11_i32 = arith.constant 11 : i32
    %291 = arith.cmpi eq, %arg0, %c11_i32 : i32
    %292 = arith.extui %291 : i1 to i32
    %c0_i32_189 = arith.constant 0 : i32
    %293 = arith.cmpi ne, %292, %c0_i32_189 : i32
    scf.if %293 {
      %c0_190 = arith.constant 0 : index
      %c0_191 = arith.constant 0 : index
      %294 = vector.load %arg6[%c0_190, %c0_191] : memref<2x48xf32, #tpu.memory_space<vmem>>, vector<2x48xf32>
      %295 = vector.extract_strided_slice %294 {offsets = [0, 0], sizes = [1, 48], strides = [1, 1]} : vector<2x48xf32> to vector<1x48xf32>
      %296 = vector.extract_strided_slice %294 {offsets = [1, 0], sizes = [1, 48], strides = [1, 1]} : vector<2x48xf32> to vector<1x48xf32>
      %cst_192 = arith.constant dense<0.000000e+00> : vector<10xf32>
      %297 = vector.multi_reduction <add>, %280, %cst_192 [1] : vector<10x48xf32> to vector<10xf32>
      %298 = vector.shape_cast %297 : vector<10xf32> to vector<10x1xf32>
      %cst_193 = arith.constant 4.800000e+01 : f32
      %299 = vector.broadcast %cst_193 : f32 to vector<10x1xf32>
      %300 = arith.divf %298, %299 : vector<10x1xf32>
      %301 = vector.broadcast %300 : vector<10x1xf32> to vector<10x48xf32>
      %302 = arith.subf %280, %301 : vector<10x48xf32>
      %303 = arith.mulf %302, %302 : vector<10x48xf32>
      %cst_194 = arith.constant dense<0.000000e+00> : vector<10xf32>
      %304 = vector.multi_reduction <add>, %303, %cst_194 [1] : vector<10x48xf32> to vector<10xf32>
      %305 = vector.shape_cast %304 : vector<10xf32> to vector<10x1xf32>
      %cst_195 = arith.constant 4.800000e+01 : f32
      %306 = vector.broadcast %cst_195 : f32 to vector<10x1xf32>
      %307 = arith.divf %305, %306 : vector<10x1xf32>
      %308 = vector.broadcast %300 : vector<10x1xf32> to vector<10x48xf32>
      %309 = arith.subf %280, %308 : vector<10x48xf32>
      %cst_196 = arith.constant 9.99999974E-6 : f32
      %310 = vector.broadcast %cst_196 : f32 to vector<10x1xf32>
      %311 = arith.addf %307, %310 : vector<10x1xf32>
      %312 = math.rsqrt %311 : vector<10x1xf32>
      %313 = vector.broadcast %312 : vector<10x1xf32> to vector<10x48xf32>
      %314 = arith.mulf %309, %313 : vector<10x48xf32>
      %315 = vector.broadcast %295 : vector<1x48xf32> to vector<10x48xf32>
      %316 = arith.mulf %314, %315 : vector<10x48xf32>
      %317 = vector.broadcast %296 : vector<1x48xf32> to vector<10x48xf32>
      %318 = arith.addf %316, %317 : vector<10x48xf32>
      %c0_197 = arith.constant 0 : index
      %c0_198 = arith.constant 0 : index
      %319 = vector.load %arg17[%c0_197, %c0_198] : memref<10x48xf32, #tpu.memory_space<vmem>>, vector<10x48xf32>
      tpu.vector_store %arg17[%c0_197, %c0_198], %318 {strides = array<i32>} : memref<10x48xf32, #tpu.memory_space<vmem>>, vector<10x48xf32>,
    } else {
    }
    return
  }
  func.func @transform_0(%arg0: i32) -> (i32, i32) {
    %c0_i32 = arith.constant 0 : i32
    %c0_i32_0 = arith.constant 0 : i32
    %c0_i32_1 = arith.constant 0 : i32
    return %c0_i32, %c0_i32_0 : i32, i32
  }
  func.func @transform_1(%arg0: i32) -> (i32, i32) {
    %c0_i32 = arith.constant 0 : i32
    %c0_i32_0 = arith.constant 0 : i32
    %c0_i32_1 = arith.constant 0 : i32
    return %c0_i32, %c0_i32_0 : i32, i32
  }
  func.func @transform_2(%arg0: i32) -> (i32, i32) {
    %c0_i32 = arith.constant 0 : i32
    %c0_i32_0 = arith.constant 0 : i32
    %c0_i32_1 = arith.constant 0 : i32
    return %c0_i32, %c0_i32_0 : i32, i32
  }
  func.func @transform_3(%arg0: i32) -> (i32, i32) {
    %c0_i32 = arith.constant 0 : i32
    %c0_i32_0 = arith.constant 0 : i32
    %c0_i32_1 = arith.constant 0 : i32
    return %c0_i32, %c0_i32_0 : i32, i32
  }
  func.func @transform_4(%arg0: i32) -> (i32, i32) {
    %c0_i32 = arith.constant 0 : i32
    %c0_i32_0 = arith.constant 0 : i32
    %c0_i32_1 = arith.constant 0 : i32
    return %c0_i32, %c0_i32_0 : i32, i32
  }
  func.func @transform_5(%arg0: i32) -> (i32, i32) {
    %c0_i32 = arith.constant 0 : i32
    %c0_i32_0 = arith.constant 0 : i32
    %c0_i32_1 = arith.constant 0 : i32
    return %c0_i32, %c0_i32_0 : i32, i32
  }
  func.func @transform_6(%arg0: i32) -> (i32, i32, i32) {
    %c0_i32 = arith.constant 0 : i32
    %c0_i32_0 = arith.constant 0 : i32
    %c0_i32_1 = arith.constant 0 : i32
    return %arg0, %c0_i32, %c0_i32_0 : i32, i32, i32
  }
  func.func @transform_7(%arg0: i32) -> (i32, i32, i32, i32) {
    %c0_i32 = arith.constant 0 : i32
    %c0_i32_0 = arith.constant 0 : i32
    %c0_i32_1 = arith.constant 0 : i32
    %c0_i32_2 = arith.constant 0 : i32
    return %arg0, %c0_i32, %c0_i32_0, %c0_i32_1 : i32, i32, i32, i32
  }
  func.func @transform_8(%arg0: i32) -> (i32, i32, i32, i32) {
    %c0_i32 = arith.constant 0 : i32
    %c0_i32_0 = arith.constant 0 : i32
    %c0_i32_1 = arith.constant 0 : i32
    %c0_i32_2 = arith.constant 0 : i32
    return %arg0, %c0_i32, %c0_i32_0, %c0_i32_1 : i32, i32, i32, i32
  }
  func.func @transform_9(%arg0: i32) -> (i32, i32, i32, i32) {
    %c0_i32 = arith.constant 0 : i32
    %c0_i32_0 = arith.constant 0 : i32
    %c0_i32_1 = arith.constant 0 : i32
    %c0_i32_2 = arith.constant 0 : i32
    return %arg0, %c0_i32, %c0_i32_0, %c0_i32_1 : i32, i32, i32, i32
  }
  func.func @transform_10(%arg0: i32) -> (i32, i32, i32) {
    %c0_i32 = arith.constant 0 : i32
    %c0_i32_0 = arith.constant 0 : i32
    %c0_i32_1 = arith.constant 0 : i32
    return %arg0, %c0_i32, %c0_i32_0 : i32, i32, i32
  }
  func.func @transform_11(%arg0: i32) -> (i32, i32, i32) {
    %c0_i32 = arith.constant 0 : i32
    %c0_i32_0 = arith.constant 0 : i32
    %c0_i32_1 = arith.constant 0 : i32
    return %arg0, %c0_i32, %c0_i32_0 : i32, i32, i32
  }
  func.func @transform_12(%arg0: i32) -> (i32, i32, i32) {
    %c0_i32 = arith.constant 0 : i32
    %c0_i32_0 = arith.constant 0 : i32
    %c0_i32_1 = arith.constant 0 : i32
    return %arg0, %c0_i32, %c0_i32_0 : i32, i32, i32
  }
  func.func @transform_13(%arg0: i32) -> (i32, i32, i32) {
    %c0_i32 = arith.constant 0 : i32
    %c0_i32_0 = arith.constant 0 : i32
    %c0_i32_1 = arith.constant 0 : i32
    return %arg0, %c0_i32, %c0_i32_0 : i32, i32, i32
  }
  func.func @transform_14(%arg0: i32) -> (i32, i32, i32) {
    %c0_i32 = arith.constant 0 : i32
    %c0_i32_0 = arith.constant 0 : i32
    %c0_i32_1 = arith.constant 0 : i32
    return %arg0, %c0_i32, %c0_i32_0 : i32, i32, i32
  }
  func.func @transform_15(%arg0: i32) -> (i32, i32, i32) {
    %c0_i32 = arith.constant 0 : i32
    %c0_i32_0 = arith.constant 0 : i32
    %c0_i32_1 = arith.constant 0 : i32
    %c0_i32_2 = arith.constant 0 : i32
    return %c0_i32, %c0_i32_0, %c0_i32_1 : i32, i32, i32
  }
  func.func @transform_16(%arg0: i32) -> (i32, i32) {
    %c0_i32 = arith.constant 0 : i32
    %c0_i32_0 = arith.constant 0 : i32
    %c0_i32_1 = arith.constant 0 : i32
    return %c0_i32, %c0_i32_0 : i32, i32
  }
}

module attributes {stable_mosaic.version = 11 : i64} {
  func.func @decoder_kernel(%arg0: i32, %arg1: memref<10x48xf32, #tpu.memory_space<vmem>>, %arg2: memref<48x24xf32, #tpu.memory_space<vmem>>, %arg3: memref<1x24xf32, #tpu.memory_space<vmem>>, %arg4: memref<1x24xf32, #tpu.memory_space<vmem>>, %arg5: memref<16x24xf32, #tpu.memory_space<vmem>>, %arg6: memref<8x64xf32, #tpu.memory_space<vmem>>, %arg7: memref<2x24xf32, #tpu.memory_space<vmem>>, %arg8: memref<24x64xf32, #tpu.memory_space<vmem>>, %arg9: memref<1x64xf32, #tpu.memory_space<vmem>>, %arg10: memref<1x10x48xf32, #tpu.memory_space<vmem>>, %arg11: memref<1x48x24xf32, #tpu.memory_space<vmem>>, %arg12: memref<1x1x24xf32, #tpu.memory_space<vmem>>, %arg13: memref<1x8x24xf32, #tpu.memory_space<vmem>>, %arg14: memref<1x6x24x12xf32, #tpu.memory_space<vmem>>, %arg15: memref<1x6x1x12xf32, #tpu.memory_space<vmem>>, %arg16: memref<1x2x12x24xf32, #tpu.memory_space<vmem>>, %arg17: memref<1x1x24xf32, #tpu.memory_space<vmem>>, %arg18: memref<1x6x24x12xf32, #tpu.memory_space<vmem>>, %arg19: memref<1x6x1x12xf32, #tpu.memory_space<vmem>>, %arg20: memref<1x2x12x24xf32, #tpu.memory_space<vmem>>, %arg21: memref<1x1x24xf32, #tpu.memory_space<vmem>>, %arg22: memref<1x24x48xf32, #tpu.memory_space<vmem>>, %arg23: memref<1x1x48xf32, #tpu.memory_space<vmem>>, %arg24: memref<1x48x24xf32, #tpu.memory_space<vmem>>, %arg25: memref<1x1x24xf32, #tpu.memory_space<vmem>>, %arg26: memref<1x1xf32, #tpu.memory_space<vmem>>, %arg27: memref<18x24xf32, #tpu.memory_space<vmem>>) attributes {dimension_semantics = [#tpu.dimension_semantics<arbitrary>], iteration_bounds = array<i64: 3>, scalar_prefetch = 0 : i64, scratch_operands = 1 : i64, tpu.core_type = #tpu.core_type<tc>, window_params = [{pipeline_mode = #tpu.pipeline_mode<synchronous>, transform_indices = @transform_0, window_bounds = array<i64: 10, 48>}, {pipeline_mode = #tpu.pipeline_mode<synchronous>, transform_indices = @transform_1, window_bounds = array<i64: 48, 24>}, {pipeline_mode = #tpu.pipeline_mode<synchronous>, transform_indices = @transform_2, window_bounds = array<i64: 1, 24>}, {pipeline_mode = #tpu.pipeline_mode<synchronous>, transform_indices = @transform_3, window_bounds = array<i64: 1, 24>}, {pipeline_mode = #tpu.pipeline_mode<synchronous>, transform_indices = @transform_4, window_bounds = array<i64: 16, 24>}, {pipeline_mode = #tpu.pipeline_mode<synchronous>, transform_indices = @transform_5, window_bounds = array<i64: 8, 64>}, {pipeline_mode = #tpu.pipeline_mode<synchronous>, transform_indices = @transform_6, window_bounds = array<i64: 2, 24>}, {pipeline_mode = #tpu.pipeline_mode<synchronous>, transform_indices = @transform_7, window_bounds = array<i64: 24, 64>}, {pipeline_mode = #tpu.pipeline_mode<synchronous>, transform_indices = @transform_8, window_bounds = array<i64: 1, 64>}, {transform_indices = @transform_9, window_bounds = array<i64: 1, 10, 48>}, {transform_indices = @transform_10, window_bounds = array<i64: 1, 48, 24>}, {transform_indices = @transform_11, window_bounds = array<i64: 1, 1, 24>}, {transform_indices = @transform_12, window_bounds = array<i64: 1, 8, 24>}, {transform_indices = @transform_13, window_bounds = array<i64: 1, 6, 24, 12>}, {transform_indices = @transform_14, window_bounds = array<i64: 1, 6, 1, 12>}, {transform_indices = @transform_15, window_bounds = array<i64: 1, 2, 12, 24>}, {transform_indices = @transform_16, window_bounds = array<i64: 1, 1, 24>}, {transform_indices = @transform_17, window_bounds = array<i64: 1, 6, 24, 12>}, {transform_indices = @transform_18, window_bounds = array<i64: 1, 6, 1, 12>}, {transform_indices = @transform_19, window_bounds = array<i64: 1, 2, 12, 24>}, {transform_indices = @transform_20, window_bounds = array<i64: 1, 1, 24>}, {transform_indices = @transform_21, window_bounds = array<i64: 1, 24, 48>}, {transform_indices = @transform_22, window_bounds = array<i64: 1, 1, 48>}, {transform_indices = @transform_23, window_bounds = array<i64: 1, 48, 24>}, {transform_indices = @transform_24, window_bounds = array<i64: 1, 1, 24>}, {pipeline_mode = #tpu.pipeline_mode<synchronous>, transform_indices = @transform_25, window_bounds = array<i64: 1, 1>}]} {
    %c0_i32 = arith.constant 0 : i32
    %0 = arith.cmpi eq, %arg0, %c0_i32 : i32
    %1 = arith.extui %0 : i1 to i32
    %c0_i32_0 = arith.constant 0 : i32
    %2 = arith.cmpi ne, %1, %c0_i32_0 : i32
    scf.if %2 {
      %c0_222 = arith.constant 0 : index
      %c0_223 = arith.constant 0 : index
      %373 = vector.load %arg1[%c0_222, %c0_223] : memref<10x48xf32, #tpu.memory_space<vmem>>, vector<10x48xf32>
      %c0_224 = arith.constant 0 : index
      %c0_225 = arith.constant 0 : index
      %374 = vector.load %arg2[%c0_224, %c0_225] : memref<48x24xf32, #tpu.memory_space<vmem>>, vector<48x24xf32>
      %cst_226 = arith.constant dense<0.000000e+00> : vector<10x24xf32>
      %375 = tpu.matmul %373, %374, %cst_226 {dimension_numbers = #tpu.dot_dimension_numbers<[1], [0], [0], [1], [0, 0, 1, 1], [], []>} : vector<10x48xf32>, vector<48x24xf32>, vector<10x24xf32> -> vector<10x24xf32>
      %c0_227 = arith.constant 0 : index
      %c0_228 = arith.constant 0 : index
      %376 = vector.load %arg3[%c0_227, %c0_228] : memref<1x24xf32, #tpu.memory_space<vmem>>, vector<1x24xf32>
      %377 = vector.broadcast %376 : vector<1x24xf32> to vector<10x24xf32>
      %378 = arith.addf %375, %377 : vector<10x24xf32>
      %c0_229 = arith.constant 0 : index
      %c0_230 = arith.constant 0 : index
      %379 = vector.load %arg4[%c0_229, %c0_230] : memref<1x24xf32, #tpu.memory_space<vmem>>, vector<1x24xf32>
      %380 = vector.extract_strided_slice %378 {offsets = [0, 0], sizes = [5, 24], strides = [1, 1]} : vector<10x24xf32> to vector<5x24xf32>
      %c0_231 = arith.constant 0 : index
      %c0_232 = arith.constant 0 : index
      %381 = vector.load %arg5[%c0_231, %c0_232] : memref<16x24xf32, #tpu.memory_space<vmem>>, vector<8x24xf32>
      %382 = vector.extract_strided_slice %380 {offsets = [0, 0], sizes = [1, 24], strides = [1, 1]} : vector<5x24xf32> to vector<1x24xf32>
      %c0_233 = arith.constant 0 : index
      %c0_234 = arith.constant 0 : index
      %383 = vector.load %arg27[%c0_233, %c0_234] : memref<18x24xf32, #tpu.memory_space<vmem>>, vector<1x24xf32>
      tpu.vector_store %arg27[%c0_233, %c0_234], %382 {strides = array<i32>} : memref<18x24xf32, #tpu.memory_space<vmem>>, vector<1x24xf32>,
      %384 = vector.extract_strided_slice %380 {offsets = [1, 0], sizes = [4, 24], strides = [1, 1]} : vector<5x24xf32> to vector<4x24xf32>
      %385 = vector.extract_strided_slice %381 {offsets = [0, 0], sizes = [4, 24], strides = [1, 1]} : vector<8x24xf32> to vector<4x24xf32>
      %386 = arith.addf %384, %385 : vector<4x24xf32>
      %c1_235 = arith.constant 1 : index
      %c0_236 = arith.constant 0 : index
      %387 = vector.load %arg27[%c1_235, %c0_236] : memref<18x24xf32, #tpu.memory_space<vmem>>, vector<4x24xf32>
      tpu.vector_store %arg27[%c1_235, %c0_236], %386 {strides = array<i32>} : memref<18x24xf32, #tpu.memory_space<vmem>>, vector<4x24xf32>,
      %388 = vector.shape_cast %379 : vector<1x24xf32> to vector<1x24xf32>
      %389 = vector.broadcast %388 : vector<1x24xf32> to vector<4x24xf32>
      %390 = vector.extract_strided_slice %381 {offsets = [4, 0], sizes = [4, 24], strides = [1, 1]} : vector<8x24xf32> to vector<4x24xf32>
      %391 = arith.addf %389, %390 : vector<4x24xf32>
      %c5_237 = arith.constant 5 : index
      %c0_238 = arith.constant 0 : index
      %392 = vector.load %arg27[%c5_237, %c0_238] : memref<18x24xf32, #tpu.memory_space<vmem>>, vector<4x24xf32>
      tpu.vector_store %arg27[%c5_237, %c0_238], %391 {strides = array<i32>} : memref<18x24xf32, #tpu.memory_space<vmem>>, vector<4x24xf32>,
      %393 = vector.extract_strided_slice %378 {offsets = [5, 0], sizes = [5, 24], strides = [1, 1]} : vector<10x24xf32> to vector<5x24xf32>
      %c8 = arith.constant 8 : index
      %c0_239 = arith.constant 0 : index
      %394 = vector.load %arg5[%c8, %c0_239] : memref<16x24xf32, #tpu.memory_space<vmem>>, vector<8x24xf32>
      %395 = vector.extract_strided_slice %393 {offsets = [0, 0], sizes = [1, 24], strides = [1, 1]} : vector<5x24xf32> to vector<1x24xf32>
      %c9 = arith.constant 9 : index
      %c0_240 = arith.constant 0 : index
      %396 = vector.load %arg27[%c9, %c0_240] : memref<18x24xf32, #tpu.memory_space<vmem>>, vector<1x24xf32>
      tpu.vector_store %arg27[%c9, %c0_240], %395 {strides = array<i32>} : memref<18x24xf32, #tpu.memory_space<vmem>>, vector<1x24xf32>,
      %397 = vector.extract_strided_slice %393 {offsets = [1, 0], sizes = [4, 24], strides = [1, 1]} : vector<5x24xf32> to vector<4x24xf32>
      %398 = vector.extract_strided_slice %394 {offsets = [0, 0], sizes = [4, 24], strides = [1, 1]} : vector<8x24xf32> to vector<4x24xf32>
      %399 = arith.addf %397, %398 : vector<4x24xf32>
      %c10 = arith.constant 10 : index
      %c0_241 = arith.constant 0 : index
      %400 = vector.load %arg27[%c10, %c0_241] : memref<18x24xf32, #tpu.memory_space<vmem>>, vector<4x24xf32>
      tpu.vector_store %arg27[%c10, %c0_241], %399 {strides = array<i32>} : memref<18x24xf32, #tpu.memory_space<vmem>>, vector<4x24xf32>,
      %401 = vector.shape_cast %379 : vector<1x24xf32> to vector<1x24xf32>
      %402 = vector.broadcast %401 : vector<1x24xf32> to vector<4x24xf32>
      %403 = vector.extract_strided_slice %394 {offsets = [4, 0], sizes = [4, 24], strides = [1, 1]} : vector<8x24xf32> to vector<4x24xf32>
      %404 = arith.addf %402, %403 : vector<4x24xf32>
      %c14 = arith.constant 14 : index
      %c0_242 = arith.constant 0 : index
      %405 = vector.load %arg27[%c14, %c0_242] : memref<18x24xf32, #tpu.memory_space<vmem>>, vector<4x24xf32>
      tpu.vector_store %arg27[%c14, %c0_242], %404 {strides = array<i32>} : memref<18x24xf32, #tpu.memory_space<vmem>>, vector<4x24xf32>,
    } else {
    }
    %c0 = arith.constant 0 : index
    %c0_1 = arith.constant 0 : index
    %c0_2 = arith.constant 0 : index
    %3 = vector.load %arg13[%c0, %c0_1, %c0_2] : memref<1x8x24xf32, #tpu.memory_space<vmem>>, vector<1x8x24xf32>
    %4 = vector.shape_cast %3 : vector<1x8x24xf32> to vector<8x24xf32>
    %5 = tpu.iota {dimensions = array<i32: 0>} : vector<18x18xi32>
    %6 = tpu.iota {dimensions = array<i32: 1>} : vector<18x18xi32>
    %c0_i32_3 = arith.constant 0 : i32
    %7 = vector.broadcast %c0_i32_3 : i32 to vector<18x18xi32>
    %8 = arith.cmpi sge, %5, %7 : vector<18x18xi32>
    %c9_i32 = arith.constant 9 : i32
    %9 = vector.broadcast %c9_i32 : i32 to vector<18x18xi32>
    %10 = arith.cmpi slt, %5, %9 : vector<18x18xi32>
    %11 = arith.andi %8, %10 : vector<18x18xi1>
    %c0_i32_4 = arith.constant 0 : i32
    %12 = vector.broadcast %c0_i32_4 : i32 to vector<18x18xi32>
    %13 = arith.cmpi sge, %6, %12 : vector<18x18xi32>
    %c9_i32_5 = arith.constant 9 : i32
    %14 = vector.broadcast %c9_i32_5 : i32 to vector<18x18xi32>
    %15 = arith.cmpi slt, %6, %14 : vector<18x18xi32>
    %16 = arith.andi %13, %15 : vector<18x18xi1>
    %17 = arith.andi %11, %16 : vector<18x18xi1>
    %c9_i32_6 = arith.constant 9 : i32
    %18 = vector.broadcast %c9_i32_6 : i32 to vector<18x18xi32>
    %19 = arith.cmpi sge, %5, %18 : vector<18x18xi32>
    %c18_i32 = arith.constant 18 : i32
    %20 = vector.broadcast %c18_i32 : i32 to vector<18x18xi32>
    %21 = arith.cmpi slt, %5, %20 : vector<18x18xi32>
    %22 = arith.andi %19, %21 : vector<18x18xi1>
    %c9_i32_7 = arith.constant 9 : i32
    %23 = vector.broadcast %c9_i32_7 : i32 to vector<18x18xi32>
    %24 = arith.cmpi sge, %6, %23 : vector<18x18xi32>
    %c18_i32_8 = arith.constant 18 : i32
    %25 = vector.broadcast %c18_i32_8 : i32 to vector<18x18xi32>
    %26 = arith.cmpi slt, %6, %25 : vector<18x18xi32>
    %27 = arith.andi %24, %26 : vector<18x18xi1>
    %28 = arith.andi %22, %27 : vector<18x18xi1>
    %29 = arith.ori %17, %28 : vector<18x18xi1>
    %30 = tpu.iota {dimensions = array<i32: 0>} : vector<18x10xi32>
    %31 = tpu.iota {dimensions = array<i32: 1>} : vector<18x10xi32>
    %c0_i32_9 = arith.constant 0 : i32
    %32 = vector.broadcast %c0_i32_9 : i32 to vector<18x10xi32>
    %33 = arith.cmpi sge, %30, %32 : vector<18x10xi32>
    %c9_i32_10 = arith.constant 9 : i32
    %34 = vector.broadcast %c9_i32_10 : i32 to vector<18x10xi32>
    %35 = arith.cmpi slt, %30, %34 : vector<18x10xi32>
    %36 = arith.andi %33, %35 : vector<18x10xi1>
    %c0_i32_11 = arith.constant 0 : i32
    %37 = vector.broadcast %c0_i32_11 : i32 to vector<18x10xi32>
    %38 = arith.cmpi sge, %31, %37 : vector<18x10xi32>
    %c5_i32 = arith.constant 5 : i32
    %39 = vector.broadcast %c5_i32 : i32 to vector<18x10xi32>
    %40 = arith.cmpi slt, %31, %39 : vector<18x10xi32>
    %41 = arith.andi %38, %40 : vector<18x10xi1>
    %42 = arith.andi %36, %41 : vector<18x10xi1>
    %c9_i32_12 = arith.constant 9 : i32
    %43 = vector.broadcast %c9_i32_12 : i32 to vector<18x10xi32>
    %44 = arith.cmpi sge, %30, %43 : vector<18x10xi32>
    %c18_i32_13 = arith.constant 18 : i32
    %45 = vector.broadcast %c18_i32_13 : i32 to vector<18x10xi32>
    %46 = arith.cmpi slt, %30, %45 : vector<18x10xi32>
    %47 = arith.andi %44, %46 : vector<18x10xi1>
    %c5_i32_14 = arith.constant 5 : i32
    %48 = vector.broadcast %c5_i32_14 : i32 to vector<18x10xi32>
    %49 = arith.cmpi sge, %31, %48 : vector<18x10xi32>
    %c10_i32 = arith.constant 10 : i32
    %50 = vector.broadcast %c10_i32 : i32 to vector<18x10xi32>
    %51 = arith.cmpi slt, %31, %50 : vector<18x10xi32>
    %52 = arith.andi %49, %51 : vector<18x10xi1>
    %53 = arith.andi %47, %52 : vector<18x10xi1>
    %54 = arith.ori %42, %53 : vector<18x10xi1>
    %c0_15 = arith.constant 0 : index
    %c0_16 = arith.constant 0 : index
    %c0_17 = arith.constant 0 : index
    %55 = vector.load %arg10[%c0_15, %c0_16, %c0_17] : memref<1x10x48xf32, #tpu.memory_space<vmem>>, vector<1x10x48xf32>
    %56 = vector.shape_cast %55 : vector<1x10x48xf32> to vector<10x48xf32>
    %c0_18 = arith.constant 0 : index
    %c0_19 = arith.constant 0 : index
    %c0_20 = arith.constant 0 : index
    %57 = vector.load %arg11[%c0_18, %c0_19, %c0_20] : memref<1x48x24xf32, #tpu.memory_space<vmem>>, vector<1x48x24xf32>
    %58 = vector.shape_cast %57 : vector<1x48x24xf32> to vector<48x24xf32>
    %cst = arith.constant dense<0.000000e+00> : vector<10x24xf32>
    %59 = tpu.matmul %56, %58, %cst {dimension_numbers = #tpu.dot_dimension_numbers<[1], [0], [0], [1], [0, 0, 1, 1], [], []>} : vector<10x48xf32>, vector<48x24xf32>, vector<10x24xf32> -> vector<10x24xf32>
    %c0_21 = arith.constant 0 : index
    %c0_22 = arith.constant 0 : index
    %c0_23 = arith.constant 0 : index
    %60 = vector.load %arg12[%c0_21, %c0_22, %c0_23] : memref<1x1x24xf32, #tpu.memory_space<vmem>>, vector<1x1x24xf32>
    %61 = vector.shape_cast %60 : vector<1x1x24xf32> to vector<1x24xf32>
    %62 = vector.broadcast %61 : vector<1x24xf32> to vector<10x24xf32>
    %63 = arith.addf %59, %62 : vector<10x24xf32>
    %c0_24 = arith.constant 0 : index
    %c0_25 = arith.constant 0 : index
    %64 = vector.load %arg27[%c0_24, %c0_25] : memref<18x24xf32, #tpu.memory_space<vmem>>, vector<18x24xf32>
    %65 = vector.extract_strided_slice %4 {offsets = [0, 0], sizes = [1, 24], strides = [1, 1]} : vector<8x24xf32> to vector<1x24xf32>
    %66 = vector.extract_strided_slice %4 {offsets = [1, 0], sizes = [1, 24], strides = [1, 1]} : vector<8x24xf32> to vector<1x24xf32>
    %cst_26 = arith.constant dense<0.000000e+00> : vector<18xf32>
    %67 = vector.multi_reduction <add>, %64, %cst_26 [1] : vector<18x24xf32> to vector<18xf32>
    %68 = vector.shape_cast %67 : vector<18xf32> to vector<18x1xf32>
    %cst_27 = arith.constant 2.400000e+01 : f32
    %69 = vector.broadcast %cst_27 : f32 to vector<18x1xf32>
    %70 = arith.divf %68, %69 : vector<18x1xf32>
    %71 = vector.broadcast %70 : vector<18x1xf32> to vector<18x24xf32>
    %72 = arith.subf %64, %71 : vector<18x24xf32>
    %73 = arith.mulf %72, %72 : vector<18x24xf32>
    %cst_28 = arith.constant dense<0.000000e+00> : vector<18xf32>
    %74 = vector.multi_reduction <add>, %73, %cst_28 [1] : vector<18x24xf32> to vector<18xf32>
    %75 = vector.shape_cast %74 : vector<18xf32> to vector<18x1xf32>
    %cst_29 = arith.constant 2.400000e+01 : f32
    %76 = vector.broadcast %cst_29 : f32 to vector<18x1xf32>
    %77 = arith.divf %75, %76 : vector<18x1xf32>
    %78 = vector.broadcast %70 : vector<18x1xf32> to vector<18x24xf32>
    %79 = arith.subf %64, %78 : vector<18x24xf32>
    %cst_30 = arith.constant 9.99999974E-6 : f32
    %80 = vector.broadcast %cst_30 : f32 to vector<18x1xf32>
    %81 = arith.addf %77, %80 : vector<18x1xf32>
    %82 = math.rsqrt %81 : vector<18x1xf32>
    %83 = vector.broadcast %82 : vector<18x1xf32> to vector<18x24xf32>
    %84 = arith.mulf %79, %83 : vector<18x24xf32>
    %85 = vector.broadcast %65 : vector<1x24xf32> to vector<18x24xf32>
    %86 = arith.mulf %84, %85 : vector<18x24xf32>
    %87 = vector.broadcast %66 : vector<1x24xf32> to vector<18x24xf32>
    %88 = arith.addf %86, %87 : vector<18x24xf32>
    %cst_31 = arith.constant 0.000000e+00 : f32
    %89 = vector.broadcast %cst_31 : f32 to vector<18x24xf32>
    %c0_32 = arith.constant 0 : index
    %c0_33 = arith.constant 0 : index
    %c0_34 = arith.constant 0 : index
    %c0_35 = arith.constant 0 : index
    %90 = vector.load %arg14[%c0_32, %c0_33, %c0_34, %c0_35] : memref<1x6x24x12xf32, #tpu.memory_space<vmem>>, vector<1x1x24x12xf32>
    %91 = vector.shape_cast %90 : vector<1x1x24x12xf32> to vector<24x12xf32>
    %cst_36 = arith.constant dense<0.000000e+00> : vector<18x12xf32>
    %92 = tpu.matmul %88, %91, %cst_36 {dimension_numbers = #tpu.dot_dimension_numbers<[1], [0], [0], [1], [0, 0, 1, 1], [], []>} : vector<18x24xf32>, vector<24x12xf32>, vector<18x12xf32> -> vector<18x12xf32>
    %c0_37 = arith.constant 0 : index
    %c0_38 = arith.constant 0 : index
    %c0_39 = arith.constant 0 : index
    %c0_40 = arith.constant 0 : index
    %93 = vector.load %arg15[%c0_37, %c0_38, %c0_39, %c0_40] : memref<1x6x1x12xf32, #tpu.memory_space<vmem>>, vector<1x1x1x12xf32>
    %94 = vector.shape_cast %93 : vector<1x1x1x12xf32> to vector<1x12xf32>
    %95 = vector.broadcast %94 : vector<1x12xf32> to vector<18x12xf32>
    %96 = arith.addf %92, %95 : vector<18x12xf32>
    %c0_41 = arith.constant 0 : index
    %c2 = arith.constant 2 : index
    %c0_42 = arith.constant 0 : index
    %c0_43 = arith.constant 0 : index
    %97 = vector.load %arg14[%c0_41, %c2, %c0_42, %c0_43] : memref<1x6x24x12xf32, #tpu.memory_space<vmem>>, vector<1x1x24x12xf32>
    %98 = vector.shape_cast %97 : vector<1x1x24x12xf32> to vector<24x12xf32>
    %cst_44 = arith.constant dense<0.000000e+00> : vector<18x12xf32>
    %99 = tpu.matmul %88, %98, %cst_44 {dimension_numbers = #tpu.dot_dimension_numbers<[1], [0], [0], [1], [0, 0, 1, 1], [], []>} : vector<18x24xf32>, vector<24x12xf32>, vector<18x12xf32> -> vector<18x12xf32>
    %c0_45 = arith.constant 0 : index
    %c2_46 = arith.constant 2 : index
    %c0_47 = arith.constant 0 : index
    %c0_48 = arith.constant 0 : index
    %100 = vector.load %arg15[%c0_45, %c2_46, %c0_47, %c0_48] : memref<1x6x1x12xf32, #tpu.memory_space<vmem>>, vector<1x1x1x12xf32>
    %101 = vector.shape_cast %100 : vector<1x1x1x12xf32> to vector<1x12xf32>
    %102 = vector.broadcast %101 : vector<1x12xf32> to vector<18x12xf32>
    %103 = arith.addf %99, %102 : vector<18x12xf32>
    %c0_49 = arith.constant 0 : index
    %c4 = arith.constant 4 : index
    %c0_50 = arith.constant 0 : index
    %c0_51 = arith.constant 0 : index
    %104 = vector.load %arg14[%c0_49, %c4, %c0_50, %c0_51] : memref<1x6x24x12xf32, #tpu.memory_space<vmem>>, vector<1x1x24x12xf32>
    %105 = vector.shape_cast %104 : vector<1x1x24x12xf32> to vector<24x12xf32>
    %cst_52 = arith.constant dense<0.000000e+00> : vector<18x12xf32>
    %106 = tpu.matmul %88, %105, %cst_52 {dimension_numbers = #tpu.dot_dimension_numbers<[1], [0], [0], [1], [0, 0, 1, 1], [], []>} : vector<18x24xf32>, vector<24x12xf32>, vector<18x12xf32> -> vector<18x12xf32>
    %c0_53 = arith.constant 0 : index
    %c4_54 = arith.constant 4 : index
    %c0_55 = arith.constant 0 : index
    %c0_56 = arith.constant 0 : index
    %107 = vector.load %arg15[%c0_53, %c4_54, %c0_55, %c0_56] : memref<1x6x1x12xf32, #tpu.memory_space<vmem>>, vector<1x1x1x12xf32>
    %108 = vector.shape_cast %107 : vector<1x1x1x12xf32> to vector<1x12xf32>
    %109 = vector.broadcast %108 : vector<1x12xf32> to vector<18x12xf32>
    %110 = arith.addf %106, %109 : vector<18x12xf32>
    %111 = tpu.transpose %103, [1, 0] : vector<18x12xf32> -> vector<12x18xf32>
    %cst_57 = arith.constant dense<0.000000e+00> : vector<18x18xf32>
    %112 = tpu.matmul %96, %111, %cst_57 {dimension_numbers = #tpu.dot_dimension_numbers<[1], [0], [0], [1], [0, 0, 1, 1], [], []>} : vector<18x12xf32>, vector<12x18xf32>, vector<18x18xf32> -> vector<18x18xf32>
    %cst_58 = arith.constant 0.288675129 : f32
    %113 = vector.broadcast %cst_58 : f32 to vector<18x18xf32>
    %114 = arith.mulf %112, %113 : vector<18x18xf32>
    %cst_59 = arith.constant -1.000000e+30 : f32
    %115 = vector.broadcast %cst_59 : f32 to vector<18x18xf32>
    %116 = arith.select %29, %114, %115 : vector<18x18xi1>, vector<18x18xf32>
    %cst_60 = arith.constant dense<0xFF800000> : vector<18xf32>
    %117 = vector.multi_reduction <maximumf>, %116, %cst_60 [1] : vector<18x18xf32> to vector<18xf32>
    %118 = vector.shape_cast %117 : vector<18xf32> to vector<18x1xf32>
    %119 = vector.broadcast %118 : vector<18x1xf32> to vector<18x18xf32>
    %120 = arith.subf %116, %119 : vector<18x18xf32>
    %121 = math.exp %120 : vector<18x18xf32>
    %cst_61 = arith.constant dense<0.000000e+00> : vector<18xf32>
    %122 = vector.multi_reduction <add>, %121, %cst_61 [1] : vector<18x18xf32> to vector<18xf32>
    %123 = vector.shape_cast %122 : vector<18xf32> to vector<18x1xf32>
    %124 = tpu.reciprocal %123 {approx = true} : vector<18x1xf32> -> vector<18x1xf32>
    %125 = vector.broadcast %124 : vector<18x1xf32> to vector<18x18xf32>
    %126 = arith.mulf %121, %125 : vector<18x18xf32>
    %cst_62 = arith.constant dense<0.000000e+00> : vector<18x12xf32>
    %127 = tpu.matmul %126, %110, %cst_62 {dimension_numbers = #tpu.dot_dimension_numbers<[1], [0], [0], [1], [0, 0, 1, 1], [], []>} : vector<18x18xf32>, vector<18x12xf32>, vector<18x12xf32> -> vector<18x12xf32>
    %c0_63 = arith.constant 0 : index
    %c0_64 = arith.constant 0 : index
    %c0_65 = arith.constant 0 : index
    %c0_66 = arith.constant 0 : index
    %128 = vector.load %arg16[%c0_63, %c0_64, %c0_65, %c0_66] : memref<1x2x12x24xf32, #tpu.memory_space<vmem>>, vector<1x1x12x24xf32>
    %129 = vector.shape_cast %128 : vector<1x1x12x24xf32> to vector<12x24xf32>
    %cst_67 = arith.constant dense<0.000000e+00> : vector<18x24xf32>
    %130 = tpu.matmul %127, %129, %cst_67 {dimension_numbers = #tpu.dot_dimension_numbers<[1], [0], [0], [1], [0, 0, 1, 1], [], []>} : vector<18x12xf32>, vector<12x24xf32>, vector<18x24xf32> -> vector<18x24xf32>
    %131 = arith.addf %89, %130 : vector<18x24xf32>
    %c0_68 = arith.constant 0 : index
    %c1 = arith.constant 1 : index
    %c0_69 = arith.constant 0 : index
    %c0_70 = arith.constant 0 : index
    %132 = vector.load %arg14[%c0_68, %c1, %c0_69, %c0_70] : memref<1x6x24x12xf32, #tpu.memory_space<vmem>>, vector<1x1x24x12xf32>
    %133 = vector.shape_cast %132 : vector<1x1x24x12xf32> to vector<24x12xf32>
    %cst_71 = arith.constant dense<0.000000e+00> : vector<18x12xf32>
    %134 = tpu.matmul %88, %133, %cst_71 {dimension_numbers = #tpu.dot_dimension_numbers<[1], [0], [0], [1], [0, 0, 1, 1], [], []>} : vector<18x24xf32>, vector<24x12xf32>, vector<18x12xf32> -> vector<18x12xf32>
    %c0_72 = arith.constant 0 : index
    %c1_73 = arith.constant 1 : index
    %c0_74 = arith.constant 0 : index
    %c0_75 = arith.constant 0 : index
    %135 = vector.load %arg15[%c0_72, %c1_73, %c0_74, %c0_75] : memref<1x6x1x12xf32, #tpu.memory_space<vmem>>, vector<1x1x1x12xf32>
    %136 = vector.shape_cast %135 : vector<1x1x1x12xf32> to vector<1x12xf32>
    %137 = vector.broadcast %136 : vector<1x12xf32> to vector<18x12xf32>
    %138 = arith.addf %134, %137 : vector<18x12xf32>
    %c0_76 = arith.constant 0 : index
    %c3 = arith.constant 3 : index
    %c0_77 = arith.constant 0 : index
    %c0_78 = arith.constant 0 : index
    %139 = vector.load %arg14[%c0_76, %c3, %c0_77, %c0_78] : memref<1x6x24x12xf32, #tpu.memory_space<vmem>>, vector<1x1x24x12xf32>
    %140 = vector.shape_cast %139 : vector<1x1x24x12xf32> to vector<24x12xf32>
    %cst_79 = arith.constant dense<0.000000e+00> : vector<18x12xf32>
    %141 = tpu.matmul %88, %140, %cst_79 {dimension_numbers = #tpu.dot_dimension_numbers<[1], [0], [0], [1], [0, 0, 1, 1], [], []>} : vector<18x24xf32>, vector<24x12xf32>, vector<18x12xf32> -> vector<18x12xf32>
    %c0_80 = arith.constant 0 : index
    %c3_81 = arith.constant 3 : index
    %c0_82 = arith.constant 0 : index
    %c0_83 = arith.constant 0 : index
    %142 = vector.load %arg15[%c0_80, %c3_81, %c0_82, %c0_83] : memref<1x6x1x12xf32, #tpu.memory_space<vmem>>, vector<1x1x1x12xf32>
    %143 = vector.shape_cast %142 : vector<1x1x1x12xf32> to vector<1x12xf32>
    %144 = vector.broadcast %143 : vector<1x12xf32> to vector<18x12xf32>
    %145 = arith.addf %141, %144 : vector<18x12xf32>
    %c0_84 = arith.constant 0 : index
    %c5 = arith.constant 5 : index
    %c0_85 = arith.constant 0 : index
    %c0_86 = arith.constant 0 : index
    %146 = vector.load %arg14[%c0_84, %c5, %c0_85, %c0_86] : memref<1x6x24x12xf32, #tpu.memory_space<vmem>>, vector<1x1x24x12xf32>
    %147 = vector.shape_cast %146 : vector<1x1x24x12xf32> to vector<24x12xf32>
    %cst_87 = arith.constant dense<0.000000e+00> : vector<18x12xf32>
    %148 = tpu.matmul %88, %147, %cst_87 {dimension_numbers = #tpu.dot_dimension_numbers<[1], [0], [0], [1], [0, 0, 1, 1], [], []>} : vector<18x24xf32>, vector<24x12xf32>, vector<18x12xf32> -> vector<18x12xf32>
    %c0_88 = arith.constant 0 : index
    %c5_89 = arith.constant 5 : index
    %c0_90 = arith.constant 0 : index
    %c0_91 = arith.constant 0 : index
    %149 = vector.load %arg15[%c0_88, %c5_89, %c0_90, %c0_91] : memref<1x6x1x12xf32, #tpu.memory_space<vmem>>, vector<1x1x1x12xf32>
    %150 = vector.shape_cast %149 : vector<1x1x1x12xf32> to vector<1x12xf32>
    %151 = vector.broadcast %150 : vector<1x12xf32> to vector<18x12xf32>
    %152 = arith.addf %148, %151 : vector<18x12xf32>
    %153 = tpu.transpose %145, [1, 0] : vector<18x12xf32> -> vector<12x18xf32>
    %cst_92 = arith.constant dense<0.000000e+00> : vector<18x18xf32>
    %154 = tpu.matmul %138, %153, %cst_92 {dimension_numbers = #tpu.dot_dimension_numbers<[1], [0], [0], [1], [0, 0, 1, 1], [], []>} : vector<18x12xf32>, vector<12x18xf32>, vector<18x18xf32> -> vector<18x18xf32>
    %cst_93 = arith.constant 0.288675129 : f32
    %155 = vector.broadcast %cst_93 : f32 to vector<18x18xf32>
    %156 = arith.mulf %154, %155 : vector<18x18xf32>
    %cst_94 = arith.constant -1.000000e+30 : f32
    %157 = vector.broadcast %cst_94 : f32 to vector<18x18xf32>
    %158 = arith.select %29, %156, %157 : vector<18x18xi1>, vector<18x18xf32>
    %cst_95 = arith.constant dense<0xFF800000> : vector<18xf32>
    %159 = vector.multi_reduction <maximumf>, %158, %cst_95 [1] : vector<18x18xf32> to vector<18xf32>
    %160 = vector.shape_cast %159 : vector<18xf32> to vector<18x1xf32>
    %161 = vector.broadcast %160 : vector<18x1xf32> to vector<18x18xf32>
    %162 = arith.subf %158, %161 : vector<18x18xf32>
    %163 = math.exp %162 : vector<18x18xf32>
    %cst_96 = arith.constant dense<0.000000e+00> : vector<18xf32>
    %164 = vector.multi_reduction <add>, %163, %cst_96 [1] : vector<18x18xf32> to vector<18xf32>
    %165 = vector.shape_cast %164 : vector<18xf32> to vector<18x1xf32>
    %166 = tpu.reciprocal %165 {approx = true} : vector<18x1xf32> -> vector<18x1xf32>
    %167 = vector.broadcast %166 : vector<18x1xf32> to vector<18x18xf32>
    %168 = arith.mulf %163, %167 : vector<18x18xf32>
    %cst_97 = arith.constant dense<0.000000e+00> : vector<18x12xf32>
    %169 = tpu.matmul %168, %152, %cst_97 {dimension_numbers = #tpu.dot_dimension_numbers<[1], [0], [0], [1], [0, 0, 1, 1], [], []>} : vector<18x18xf32>, vector<18x12xf32>, vector<18x12xf32> -> vector<18x12xf32>
    %c0_98 = arith.constant 0 : index
    %c1_99 = arith.constant 1 : index
    %c0_100 = arith.constant 0 : index
    %c0_101 = arith.constant 0 : index
    %170 = vector.load %arg16[%c0_98, %c1_99, %c0_100, %c0_101] : memref<1x2x12x24xf32, #tpu.memory_space<vmem>>, vector<1x1x12x24xf32>
    %171 = vector.shape_cast %170 : vector<1x1x12x24xf32> to vector<12x24xf32>
    %cst_102 = arith.constant dense<0.000000e+00> : vector<18x24xf32>
    %172 = tpu.matmul %169, %171, %cst_102 {dimension_numbers = #tpu.dot_dimension_numbers<[1], [0], [0], [1], [0, 0, 1, 1], [], []>} : vector<18x12xf32>, vector<12x24xf32>, vector<18x24xf32> -> vector<18x24xf32>
    %173 = arith.addf %131, %172 : vector<18x24xf32>
    %c0_103 = arith.constant 0 : index
    %c0_104 = arith.constant 0 : index
    %c0_105 = arith.constant 0 : index
    %174 = vector.load %arg17[%c0_103, %c0_104, %c0_105] : memref<1x1x24xf32, #tpu.memory_space<vmem>>, vector<1x1x24xf32>
    %175 = vector.shape_cast %174 : vector<1x1x24xf32> to vector<1x24xf32>
    %176 = vector.broadcast %175 : vector<1x24xf32> to vector<18x24xf32>
    %177 = arith.addf %173, %176 : vector<18x24xf32>
    %178 = arith.addf %64, %177 : vector<18x24xf32>
    %179 = vector.extract_strided_slice %4 {offsets = [2, 0], sizes = [1, 24], strides = [1, 1]} : vector<8x24xf32> to vector<1x24xf32>
    %180 = vector.extract_strided_slice %4 {offsets = [3, 0], sizes = [1, 24], strides = [1, 1]} : vector<8x24xf32> to vector<1x24xf32>
    %cst_106 = arith.constant dense<0.000000e+00> : vector<18xf32>
    %181 = vector.multi_reduction <add>, %178, %cst_106 [1] : vector<18x24xf32> to vector<18xf32>
    %182 = vector.shape_cast %181 : vector<18xf32> to vector<18x1xf32>
    %cst_107 = arith.constant 2.400000e+01 : f32
    %183 = vector.broadcast %cst_107 : f32 to vector<18x1xf32>
    %184 = arith.divf %182, %183 : vector<18x1xf32>
    %185 = vector.broadcast %184 : vector<18x1xf32> to vector<18x24xf32>
    %186 = arith.subf %178, %185 : vector<18x24xf32>
    %187 = arith.mulf %186, %186 : vector<18x24xf32>
    %cst_108 = arith.constant dense<0.000000e+00> : vector<18xf32>
    %188 = vector.multi_reduction <add>, %187, %cst_108 [1] : vector<18x24xf32> to vector<18xf32>
    %189 = vector.shape_cast %188 : vector<18xf32> to vector<18x1xf32>
    %cst_109 = arith.constant 2.400000e+01 : f32
    %190 = vector.broadcast %cst_109 : f32 to vector<18x1xf32>
    %191 = arith.divf %189, %190 : vector<18x1xf32>
    %192 = vector.broadcast %184 : vector<18x1xf32> to vector<18x24xf32>
    %193 = arith.subf %178, %192 : vector<18x24xf32>
    %cst_110 = arith.constant 9.99999974E-6 : f32
    %194 = vector.broadcast %cst_110 : f32 to vector<18x1xf32>
    %195 = arith.addf %191, %194 : vector<18x1xf32>
    %196 = math.rsqrt %195 : vector<18x1xf32>
    %197 = vector.broadcast %196 : vector<18x1xf32> to vector<18x24xf32>
    %198 = arith.mulf %193, %197 : vector<18x24xf32>
    %199 = vector.broadcast %179 : vector<1x24xf32> to vector<18x24xf32>
    %200 = arith.mulf %198, %199 : vector<18x24xf32>
    %201 = vector.broadcast %180 : vector<1x24xf32> to vector<18x24xf32>
    %202 = arith.addf %200, %201 : vector<18x24xf32>
    %203 = vector.extract_strided_slice %4 {offsets = [4, 0], sizes = [1, 24], strides = [1, 1]} : vector<8x24xf32> to vector<1x24xf32>
    %204 = vector.extract_strided_slice %4 {offsets = [5, 0], sizes = [1, 24], strides = [1, 1]} : vector<8x24xf32> to vector<1x24xf32>
    %cst_111 = arith.constant dense<0.000000e+00> : vector<10xf32>
    %205 = vector.multi_reduction <add>, %63, %cst_111 [1] : vector<10x24xf32> to vector<10xf32>
    %206 = vector.shape_cast %205 : vector<10xf32> to vector<10x1xf32>
    %cst_112 = arith.constant 2.400000e+01 : f32
    %207 = vector.broadcast %cst_112 : f32 to vector<10x1xf32>
    %208 = arith.divf %206, %207 : vector<10x1xf32>
    %209 = vector.broadcast %208 : vector<10x1xf32> to vector<10x24xf32>
    %210 = arith.subf %63, %209 : vector<10x24xf32>
    %211 = arith.mulf %210, %210 : vector<10x24xf32>
    %cst_113 = arith.constant dense<0.000000e+00> : vector<10xf32>
    %212 = vector.multi_reduction <add>, %211, %cst_113 [1] : vector<10x24xf32> to vector<10xf32>
    %213 = vector.shape_cast %212 : vector<10xf32> to vector<10x1xf32>
    %cst_114 = arith.constant 2.400000e+01 : f32
    %214 = vector.broadcast %cst_114 : f32 to vector<10x1xf32>
    %215 = arith.divf %213, %214 : vector<10x1xf32>
    %216 = vector.broadcast %208 : vector<10x1xf32> to vector<10x24xf32>
    %217 = arith.subf %63, %216 : vector<10x24xf32>
    %cst_115 = arith.constant 9.99999974E-6 : f32
    %218 = vector.broadcast %cst_115 : f32 to vector<10x1xf32>
    %219 = arith.addf %215, %218 : vector<10x1xf32>
    %220 = math.rsqrt %219 : vector<10x1xf32>
    %221 = vector.broadcast %220 : vector<10x1xf32> to vector<10x24xf32>
    %222 = arith.mulf %217, %221 : vector<10x24xf32>
    %223 = vector.broadcast %203 : vector<1x24xf32> to vector<10x24xf32>
    %224 = arith.mulf %222, %223 : vector<10x24xf32>
    %225 = vector.broadcast %204 : vector<1x24xf32> to vector<10x24xf32>
    %226 = arith.addf %224, %225 : vector<10x24xf32>
    %cst_116 = arith.constant 0.000000e+00 : f32
    %227 = vector.broadcast %cst_116 : f32 to vector<18x24xf32>
    %c0_117 = arith.constant 0 : index
    %c0_118 = arith.constant 0 : index
    %c0_119 = arith.constant 0 : index
    %c0_120 = arith.constant 0 : index
    %228 = vector.load %arg18[%c0_117, %c0_118, %c0_119, %c0_120] : memref<1x6x24x12xf32, #tpu.memory_space<vmem>>, vector<1x1x24x12xf32>
    %229 = vector.shape_cast %228 : vector<1x1x24x12xf32> to vector<24x12xf32>
    %cst_121 = arith.constant dense<0.000000e+00> : vector<18x12xf32>
    %230 = tpu.matmul %202, %229, %cst_121 {dimension_numbers = #tpu.dot_dimension_numbers<[1], [0], [0], [1], [0, 0, 1, 1], [], []>} : vector<18x24xf32>, vector<24x12xf32>, vector<18x12xf32> -> vector<18x12xf32>
    %c0_122 = arith.constant 0 : index
    %c0_123 = arith.constant 0 : index
    %c0_124 = arith.constant 0 : index
    %c0_125 = arith.constant 0 : index
    %231 = vector.load %arg19[%c0_122, %c0_123, %c0_124, %c0_125] : memref<1x6x1x12xf32, #tpu.memory_space<vmem>>, vector<1x1x1x12xf32>
    %232 = vector.shape_cast %231 : vector<1x1x1x12xf32> to vector<1x12xf32>
    %233 = vector.broadcast %232 : vector<1x12xf32> to vector<18x12xf32>
    %234 = arith.addf %230, %233 : vector<18x12xf32>
    %c0_126 = arith.constant 0 : index
    %c2_127 = arith.constant 2 : index
    %c0_128 = arith.constant 0 : index
    %c0_129 = arith.constant 0 : index
    %235 = vector.load %arg18[%c0_126, %c2_127, %c0_128, %c0_129] : memref<1x6x24x12xf32, #tpu.memory_space<vmem>>, vector<1x1x24x12xf32>
    %236 = vector.shape_cast %235 : vector<1x1x24x12xf32> to vector<24x12xf32>
    %cst_130 = arith.constant dense<0.000000e+00> : vector<10x12xf32>
    %237 = tpu.matmul %226, %236, %cst_130 {dimension_numbers = #tpu.dot_dimension_numbers<[1], [0], [0], [1], [0, 0, 1, 1], [], []>} : vector<10x24xf32>, vector<24x12xf32>, vector<10x12xf32> -> vector<10x12xf32>
    %c0_131 = arith.constant 0 : index
    %c2_132 = arith.constant 2 : index
    %c0_133 = arith.constant 0 : index
    %c0_134 = arith.constant 0 : index
    %238 = vector.load %arg19[%c0_131, %c2_132, %c0_133, %c0_134] : memref<1x6x1x12xf32, #tpu.memory_space<vmem>>, vector<1x1x1x12xf32>
    %239 = vector.shape_cast %238 : vector<1x1x1x12xf32> to vector<1x12xf32>
    %240 = vector.broadcast %239 : vector<1x12xf32> to vector<10x12xf32>
    %241 = arith.addf %237, %240 : vector<10x12xf32>
    %c0_135 = arith.constant 0 : index
    %c4_136 = arith.constant 4 : index
    %c0_137 = arith.constant 0 : index
    %c0_138 = arith.constant 0 : index
    %242 = vector.load %arg18[%c0_135, %c4_136, %c0_137, %c0_138] : memref<1x6x24x12xf32, #tpu.memory_space<vmem>>, vector<1x1x24x12xf32>
    %243 = vector.shape_cast %242 : vector<1x1x24x12xf32> to vector<24x12xf32>
    %cst_139 = arith.constant dense<0.000000e+00> : vector<10x12xf32>
    %244 = tpu.matmul %226, %243, %cst_139 {dimension_numbers = #tpu.dot_dimension_numbers<[1], [0], [0], [1], [0, 0, 1, 1], [], []>} : vector<10x24xf32>, vector<24x12xf32>, vector<10x12xf32> -> vector<10x12xf32>
    %c0_140 = arith.constant 0 : index
    %c4_141 = arith.constant 4 : index
    %c0_142 = arith.constant 0 : index
    %c0_143 = arith.constant 0 : index
    %245 = vector.load %arg19[%c0_140, %c4_141, %c0_142, %c0_143] : memref<1x6x1x12xf32, #tpu.memory_space<vmem>>, vector<1x1x1x12xf32>
    %246 = vector.shape_cast %245 : vector<1x1x1x12xf32> to vector<1x12xf32>
    %247 = vector.broadcast %246 : vector<1x12xf32> to vector<10x12xf32>
    %248 = arith.addf %244, %247 : vector<10x12xf32>
    %249 = tpu.transpose %241, [1, 0] : vector<10x12xf32> -> vector<12x10xf32>
    %cst_144 = arith.constant dense<0.000000e+00> : vector<18x10xf32>
    %250 = tpu.matmul %234, %249, %cst_144 {dimension_numbers = #tpu.dot_dimension_numbers<[1], [0], [0], [1], [0, 0, 1, 1], [], []>} : vector<18x12xf32>, vector<12x10xf32>, vector<18x10xf32> -> vector<18x10xf32>
    %cst_145 = arith.constant 0.288675129 : f32
    %251 = vector.broadcast %cst_145 : f32 to vector<18x10xf32>
    %252 = arith.mulf %250, %251 : vector<18x10xf32>
    %cst_146 = arith.constant -1.000000e+30 : f32
    %253 = vector.broadcast %cst_146 : f32 to vector<18x10xf32>
    %254 = arith.select %54, %252, %253 : vector<18x10xi1>, vector<18x10xf32>
    %cst_147 = arith.constant dense<0xFF800000> : vector<18xf32>
    %255 = vector.multi_reduction <maximumf>, %254, %cst_147 [1] : vector<18x10xf32> to vector<18xf32>
    %256 = vector.shape_cast %255 : vector<18xf32> to vector<18x1xf32>
    %257 = vector.broadcast %256 : vector<18x1xf32> to vector<18x10xf32>
    %258 = arith.subf %254, %257 : vector<18x10xf32>
    %259 = math.exp %258 : vector<18x10xf32>
    %cst_148 = arith.constant dense<0.000000e+00> : vector<18xf32>
    %260 = vector.multi_reduction <add>, %259, %cst_148 [1] : vector<18x10xf32> to vector<18xf32>
    %261 = vector.shape_cast %260 : vector<18xf32> to vector<18x1xf32>
    %262 = tpu.reciprocal %261 {approx = true} : vector<18x1xf32> -> vector<18x1xf32>
    %263 = vector.broadcast %262 : vector<18x1xf32> to vector<18x10xf32>
    %264 = arith.mulf %259, %263 : vector<18x10xf32>
    %cst_149 = arith.constant dense<0.000000e+00> : vector<18x12xf32>
    %265 = tpu.matmul %264, %248, %cst_149 {dimension_numbers = #tpu.dot_dimension_numbers<[1], [0], [0], [1], [0, 0, 1, 1], [], []>} : vector<18x10xf32>, vector<10x12xf32>, vector<18x12xf32> -> vector<18x12xf32>
    %c0_150 = arith.constant 0 : index
    %c0_151 = arith.constant 0 : index
    %c0_152 = arith.constant 0 : index
    %c0_153 = arith.constant 0 : index
    %266 = vector.load %arg20[%c0_150, %c0_151, %c0_152, %c0_153] : memref<1x2x12x24xf32, #tpu.memory_space<vmem>>, vector<1x1x12x24xf32>
    %267 = vector.shape_cast %266 : vector<1x1x12x24xf32> to vector<12x24xf32>
    %cst_154 = arith.constant dense<0.000000e+00> : vector<18x24xf32>
    %268 = tpu.matmul %265, %267, %cst_154 {dimension_numbers = #tpu.dot_dimension_numbers<[1], [0], [0], [1], [0, 0, 1, 1], [], []>} : vector<18x12xf32>, vector<12x24xf32>, vector<18x24xf32> -> vector<18x24xf32>
    %269 = arith.addf %227, %268 : vector<18x24xf32>
    %c0_155 = arith.constant 0 : index
    %c1_156 = arith.constant 1 : index
    %c0_157 = arith.constant 0 : index
    %c0_158 = arith.constant 0 : index
    %270 = vector.load %arg18[%c0_155, %c1_156, %c0_157, %c0_158] : memref<1x6x24x12xf32, #tpu.memory_space<vmem>>, vector<1x1x24x12xf32>
    %271 = vector.shape_cast %270 : vector<1x1x24x12xf32> to vector<24x12xf32>
    %cst_159 = arith.constant dense<0.000000e+00> : vector<18x12xf32>
    %272 = tpu.matmul %202, %271, %cst_159 {dimension_numbers = #tpu.dot_dimension_numbers<[1], [0], [0], [1], [0, 0, 1, 1], [], []>} : vector<18x24xf32>, vector<24x12xf32>, vector<18x12xf32> -> vector<18x12xf32>
    %c0_160 = arith.constant 0 : index
    %c1_161 = arith.constant 1 : index
    %c0_162 = arith.constant 0 : index
    %c0_163 = arith.constant 0 : index
    %273 = vector.load %arg19[%c0_160, %c1_161, %c0_162, %c0_163] : memref<1x6x1x12xf32, #tpu.memory_space<vmem>>, vector<1x1x1x12xf32>
    %274 = vector.shape_cast %273 : vector<1x1x1x12xf32> to vector<1x12xf32>
    %275 = vector.broadcast %274 : vector<1x12xf32> to vector<18x12xf32>
    %276 = arith.addf %272, %275 : vector<18x12xf32>
    %c0_164 = arith.constant 0 : index
    %c3_165 = arith.constant 3 : index
    %c0_166 = arith.constant 0 : index
    %c0_167 = arith.constant 0 : index
    %277 = vector.load %arg18[%c0_164, %c3_165, %c0_166, %c0_167] : memref<1x6x24x12xf32, #tpu.memory_space<vmem>>, vector<1x1x24x12xf32>
    %278 = vector.shape_cast %277 : vector<1x1x24x12xf32> to vector<24x12xf32>
    %cst_168 = arith.constant dense<0.000000e+00> : vector<10x12xf32>
    %279 = tpu.matmul %226, %278, %cst_168 {dimension_numbers = #tpu.dot_dimension_numbers<[1], [0], [0], [1], [0, 0, 1, 1], [], []>} : vector<10x24xf32>, vector<24x12xf32>, vector<10x12xf32> -> vector<10x12xf32>
    %c0_169 = arith.constant 0 : index
    %c3_170 = arith.constant 3 : index
    %c0_171 = arith.constant 0 : index
    %c0_172 = arith.constant 0 : index
    %280 = vector.load %arg19[%c0_169, %c3_170, %c0_171, %c0_172] : memref<1x6x1x12xf32, #tpu.memory_space<vmem>>, vector<1x1x1x12xf32>
    %281 = vector.shape_cast %280 : vector<1x1x1x12xf32> to vector<1x12xf32>
    %282 = vector.broadcast %281 : vector<1x12xf32> to vector<10x12xf32>
    %283 = arith.addf %279, %282 : vector<10x12xf32>
    %c0_173 = arith.constant 0 : index
    %c5_174 = arith.constant 5 : index
    %c0_175 = arith.constant 0 : index
    %c0_176 = arith.constant 0 : index
    %284 = vector.load %arg18[%c0_173, %c5_174, %c0_175, %c0_176] : memref<1x6x24x12xf32, #tpu.memory_space<vmem>>, vector<1x1x24x12xf32>
    %285 = vector.shape_cast %284 : vector<1x1x24x12xf32> to vector<24x12xf32>
    %cst_177 = arith.constant dense<0.000000e+00> : vector<10x12xf32>
    %286 = tpu.matmul %226, %285, %cst_177 {dimension_numbers = #tpu.dot_dimension_numbers<[1], [0], [0], [1], [0, 0, 1, 1], [], []>} : vector<10x24xf32>, vector<24x12xf32>, vector<10x12xf32> -> vector<10x12xf32>
    %c0_178 = arith.constant 0 : index
    %c5_179 = arith.constant 5 : index
    %c0_180 = arith.constant 0 : index
    %c0_181 = arith.constant 0 : index
    %287 = vector.load %arg19[%c0_178, %c5_179, %c0_180, %c0_181] : memref<1x6x1x12xf32, #tpu.memory_space<vmem>>, vector<1x1x1x12xf32>
    %288 = vector.shape_cast %287 : vector<1x1x1x12xf32> to vector<1x12xf32>
    %289 = vector.broadcast %288 : vector<1x12xf32> to vector<10x12xf32>
    %290 = arith.addf %286, %289 : vector<10x12xf32>
    %291 = tpu.transpose %283, [1, 0] : vector<10x12xf32> -> vector<12x10xf32>
    %cst_182 = arith.constant dense<0.000000e+00> : vector<18x10xf32>
    %292 = tpu.matmul %276, %291, %cst_182 {dimension_numbers = #tpu.dot_dimension_numbers<[1], [0], [0], [1], [0, 0, 1, 1], [], []>} : vector<18x12xf32>, vector<12x10xf32>, vector<18x10xf32> -> vector<18x10xf32>
    %cst_183 = arith.constant 0.288675129 : f32
    %293 = vector.broadcast %cst_183 : f32 to vector<18x10xf32>
    %294 = arith.mulf %292, %293 : vector<18x10xf32>
    %cst_184 = arith.constant -1.000000e+30 : f32
    %295 = vector.broadcast %cst_184 : f32 to vector<18x10xf32>
    %296 = arith.select %54, %294, %295 : vector<18x10xi1>, vector<18x10xf32>
    %cst_185 = arith.constant dense<0xFF800000> : vector<18xf32>
    %297 = vector.multi_reduction <maximumf>, %296, %cst_185 [1] : vector<18x10xf32> to vector<18xf32>
    %298 = vector.shape_cast %297 : vector<18xf32> to vector<18x1xf32>
    %299 = vector.broadcast %298 : vector<18x1xf32> to vector<18x10xf32>
    %300 = arith.subf %296, %299 : vector<18x10xf32>
    %301 = math.exp %300 : vector<18x10xf32>
    %cst_186 = arith.constant dense<0.000000e+00> : vector<18xf32>
    %302 = vector.multi_reduction <add>, %301, %cst_186 [1] : vector<18x10xf32> to vector<18xf32>
    %303 = vector.shape_cast %302 : vector<18xf32> to vector<18x1xf32>
    %304 = tpu.reciprocal %303 {approx = true} : vector<18x1xf32> -> vector<18x1xf32>
    %305 = vector.broadcast %304 : vector<18x1xf32> to vector<18x10xf32>
    %306 = arith.mulf %301, %305 : vector<18x10xf32>
    %cst_187 = arith.constant dense<0.000000e+00> : vector<18x12xf32>
    %307 = tpu.matmul %306, %290, %cst_187 {dimension_numbers = #tpu.dot_dimension_numbers<[1], [0], [0], [1], [0, 0, 1, 1], [], []>} : vector<18x10xf32>, vector<10x12xf32>, vector<18x12xf32> -> vector<18x12xf32>
    %c0_188 = arith.constant 0 : index
    %c1_189 = arith.constant 1 : index
    %c0_190 = arith.constant 0 : index
    %c0_191 = arith.constant 0 : index
    %308 = vector.load %arg20[%c0_188, %c1_189, %c0_190, %c0_191] : memref<1x2x12x24xf32, #tpu.memory_space<vmem>>, vector<1x1x12x24xf32>
    %309 = vector.shape_cast %308 : vector<1x1x12x24xf32> to vector<12x24xf32>
    %cst_192 = arith.constant dense<0.000000e+00> : vector<18x24xf32>
    %310 = tpu.matmul %307, %309, %cst_192 {dimension_numbers = #tpu.dot_dimension_numbers<[1], [0], [0], [1], [0, 0, 1, 1], [], []>} : vector<18x12xf32>, vector<12x24xf32>, vector<18x24xf32> -> vector<18x24xf32>
    %311 = arith.addf %269, %310 : vector<18x24xf32>
    %c0_193 = arith.constant 0 : index
    %c0_194 = arith.constant 0 : index
    %c0_195 = arith.constant 0 : index
    %312 = vector.load %arg21[%c0_193, %c0_194, %c0_195] : memref<1x1x24xf32, #tpu.memory_space<vmem>>, vector<1x1x24xf32>
    %313 = vector.shape_cast %312 : vector<1x1x24xf32> to vector<1x24xf32>
    %314 = vector.broadcast %313 : vector<1x24xf32> to vector<18x24xf32>
    %315 = arith.addf %311, %314 : vector<18x24xf32>
    %316 = arith.addf %178, %315 : vector<18x24xf32>
    %317 = vector.extract_strided_slice %4 {offsets = [6, 0], sizes = [1, 24], strides = [1, 1]} : vector<8x24xf32> to vector<1x24xf32>
    %318 = vector.extract_strided_slice %4 {offsets = [7, 0], sizes = [1, 24], strides = [1, 1]} : vector<8x24xf32> to vector<1x24xf32>
    %cst_196 = arith.constant dense<0.000000e+00> : vector<18xf32>
    %319 = vector.multi_reduction <add>, %316, %cst_196 [1] : vector<18x24xf32> to vector<18xf32>
    %320 = vector.shape_cast %319 : vector<18xf32> to vector<18x1xf32>
    %cst_197 = arith.constant 2.400000e+01 : f32
    %321 = vector.broadcast %cst_197 : f32 to vector<18x1xf32>
    %322 = arith.divf %320, %321 : vector<18x1xf32>
    %323 = vector.broadcast %322 : vector<18x1xf32> to vector<18x24xf32>
    %324 = arith.subf %316, %323 : vector<18x24xf32>
    %325 = arith.mulf %324, %324 : vector<18x24xf32>
    %cst_198 = arith.constant dense<0.000000e+00> : vector<18xf32>
    %326 = vector.multi_reduction <add>, %325, %cst_198 [1] : vector<18x24xf32> to vector<18xf32>
    %327 = vector.shape_cast %326 : vector<18xf32> to vector<18x1xf32>
    %cst_199 = arith.constant 2.400000e+01 : f32
    %328 = vector.broadcast %cst_199 : f32 to vector<18x1xf32>
    %329 = arith.divf %327, %328 : vector<18x1xf32>
    %330 = vector.broadcast %322 : vector<18x1xf32> to vector<18x24xf32>
    %331 = arith.subf %316, %330 : vector<18x24xf32>
    %cst_200 = arith.constant 9.99999974E-6 : f32
    %332 = vector.broadcast %cst_200 : f32 to vector<18x1xf32>
    %333 = arith.addf %329, %332 : vector<18x1xf32>
    %334 = math.rsqrt %333 : vector<18x1xf32>
    %335 = vector.broadcast %334 : vector<18x1xf32> to vector<18x24xf32>
    %336 = arith.mulf %331, %335 : vector<18x24xf32>
    %337 = vector.broadcast %317 : vector<1x24xf32> to vector<18x24xf32>
    %338 = arith.mulf %336, %337 : vector<18x24xf32>
    %339 = vector.broadcast %318 : vector<1x24xf32> to vector<18x24xf32>
    %340 = arith.addf %338, %339 : vector<18x24xf32>
    %c0_201 = arith.constant 0 : index
    %c0_202 = arith.constant 0 : index
    %c0_203 = arith.constant 0 : index
    %341 = vector.load %arg22[%c0_201, %c0_202, %c0_203] : memref<1x24x48xf32, #tpu.memory_space<vmem>>, vector<1x24x48xf32>
    %342 = vector.shape_cast %341 : vector<1x24x48xf32> to vector<24x48xf32>
    %cst_204 = arith.constant dense<0.000000e+00> : vector<18x48xf32>
    %343 = tpu.matmul %340, %342, %cst_204 {dimension_numbers = #tpu.dot_dimension_numbers<[1], [0], [0], [1], [0, 0, 1, 1], [], []>} : vector<18x24xf32>, vector<24x48xf32>, vector<18x48xf32> -> vector<18x48xf32>
    %c0_205 = arith.constant 0 : index
    %c0_206 = arith.constant 0 : index
    %c0_207 = arith.constant 0 : index
    %344 = vector.load %arg23[%c0_205, %c0_206, %c0_207] : memref<1x1x48xf32, #tpu.memory_space<vmem>>, vector<1x1x48xf32>
    %345 = vector.shape_cast %344 : vector<1x1x48xf32> to vector<1x48xf32>
    %346 = vector.broadcast %345 : vector<1x48xf32> to vector<18x48xf32>
    %347 = arith.addf %343, %346 : vector<18x48xf32>
    %348 = arith.mulf %347, %347 : vector<18x48xf32>
    %349 = arith.mulf %347, %348 : vector<18x48xf32>
    %cst_208 = arith.constant 4.471500e-02 : f32
    %350 = vector.broadcast %cst_208 : f32 to vector<18x48xf32>
    %351 = arith.mulf %350, %349 : vector<18x48xf32>
    %352 = arith.addf %347, %351 : vector<18x48xf32>
    %cst_209 = arith.constant 0.797884583 : f32
    %353 = vector.broadcast %cst_209 : f32 to vector<18x48xf32>
    %354 = arith.mulf %353, %352 : vector<18x48xf32>
    %355 = math.tanh %354 : vector<18x48xf32>
    %cst_210 = arith.constant 1.000000e+00 : f32
    %356 = vector.broadcast %cst_210 : f32 to vector<18x48xf32>
    %357 = arith.addf %356, %355 : vector<18x48xf32>
    %cst_211 = arith.constant 5.000000e-01 : f32
    %358 = vector.broadcast %cst_211 : f32 to vector<18x48xf32>
    %359 = arith.mulf %358, %357 : vector<18x48xf32>
    %360 = arith.mulf %347, %359 : vector<18x48xf32>
    %c0_212 = arith.constant 0 : index
    %c0_213 = arith.constant 0 : index
    %c0_214 = arith.constant 0 : index
    %361 = vector.load %arg24[%c0_212, %c0_213, %c0_214] : memref<1x48x24xf32, #tpu.memory_space<vmem>>, vector<1x48x24xf32>
    %362 = vector.shape_cast %361 : vector<1x48x24xf32> to vector<48x24xf32>
    %cst_215 = arith.constant dense<0.000000e+00> : vector<18x24xf32>
    %363 = tpu.matmul %360, %362, %cst_215 {dimension_numbers = #tpu.dot_dimension_numbers<[1], [0], [0], [1], [0, 0, 1, 1], [], []>} : vector<18x48xf32>, vector<48x24xf32>, vector<18x24xf32> -> vector<18x24xf32>
    %364 = arith.addf %316, %363 : vector<18x24xf32>
    %c0_216 = arith.constant 0 : index
    %c0_217 = arith.constant 0 : index
    %c0_218 = arith.constant 0 : index
    %365 = vector.load %arg25[%c0_216, %c0_217, %c0_218] : memref<1x1x24xf32, #tpu.memory_space<vmem>>, vector<1x1x24xf32>
    %366 = vector.shape_cast %365 : vector<1x1x24xf32> to vector<1x24xf32>
    %367 = vector.broadcast %366 : vector<1x24xf32> to vector<18x24xf32>
    %368 = arith.addf %364, %367 : vector<18x24xf32>
    %c0_219 = arith.constant 0 : index
    %c0_220 = arith.constant 0 : index
    %369 = vector.load %arg27[%c0_219, %c0_220] : memref<18x24xf32, #tpu.memory_space<vmem>>, vector<18x24xf32>
    tpu.vector_store %arg27[%c0_219, %c0_220], %368 {strides = array<i32>} : memref<18x24xf32, #tpu.memory_space<vmem>>, vector<18x24xf32>,
    %c2_i32 = arith.constant 2 : i32
    %370 = arith.cmpi eq, %arg0, %c2_i32 : i32
    %371 = arith.extui %370 : i1 to i32
    %c0_i32_221 = arith.constant 0 : i32
    %372 = arith.cmpi ne, %371, %c0_i32_221 : i32
    scf.if %372 {
      %c0_222 = arith.constant 0 : index
      %c0_223 = arith.constant 0 : index
      %373 = vector.load %arg7[%c0_222, %c0_223] : memref<2x24xf32, #tpu.memory_space<vmem>>, vector<2x24xf32>
      %374 = vector.extract_strided_slice %373 {offsets = [0, 0], sizes = [1, 24], strides = [1, 1]} : vector<2x24xf32> to vector<1x24xf32>
      %375 = vector.extract_strided_slice %373 {offsets = [1, 0], sizes = [1, 24], strides = [1, 1]} : vector<2x24xf32> to vector<1x24xf32>
      %cst_224 = arith.constant dense<0.000000e+00> : vector<18xf32>
      %376 = vector.multi_reduction <add>, %368, %cst_224 [1] : vector<18x24xf32> to vector<18xf32>
      %377 = vector.shape_cast %376 : vector<18xf32> to vector<18x1xf32>
      %cst_225 = arith.constant 2.400000e+01 : f32
      %378 = vector.broadcast %cst_225 : f32 to vector<18x1xf32>
      %379 = arith.divf %377, %378 : vector<18x1xf32>
      %380 = vector.broadcast %379 : vector<18x1xf32> to vector<18x24xf32>
      %381 = arith.subf %368, %380 : vector<18x24xf32>
      %382 = arith.mulf %381, %381 : vector<18x24xf32>
      %cst_226 = arith.constant dense<0.000000e+00> : vector<18xf32>
      %383 = vector.multi_reduction <add>, %382, %cst_226 [1] : vector<18x24xf32> to vector<18xf32>
      %384 = vector.shape_cast %383 : vector<18xf32> to vector<18x1xf32>
      %cst_227 = arith.constant 2.400000e+01 : f32
      %385 = vector.broadcast %cst_227 : f32 to vector<18x1xf32>
      %386 = arith.divf %384, %385 : vector<18x1xf32>
      %387 = vector.broadcast %379 : vector<18x1xf32> to vector<18x24xf32>
      %388 = arith.subf %368, %387 : vector<18x24xf32>
      %cst_228 = arith.constant 9.99999974E-6 : f32
      %389 = vector.broadcast %cst_228 : f32 to vector<18x1xf32>
      %390 = arith.addf %386, %389 : vector<18x1xf32>
      %391 = math.rsqrt %390 : vector<18x1xf32>
      %392 = vector.broadcast %391 : vector<18x1xf32> to vector<18x24xf32>
      %393 = arith.mulf %388, %392 : vector<18x24xf32>
      %394 = vector.broadcast %374 : vector<1x24xf32> to vector<18x24xf32>
      %395 = arith.mulf %393, %394 : vector<18x24xf32>
      %396 = vector.broadcast %375 : vector<1x24xf32> to vector<18x24xf32>
      %397 = arith.addf %395, %396 : vector<18x24xf32>
      %c0_229 = arith.constant 0 : index
      %c0_230 = arith.constant 0 : index
      %398 = vector.load %arg8[%c0_229, %c0_230] : memref<24x64xf32, #tpu.memory_space<vmem>>, vector<24x64xf32>
      %cst_231 = arith.constant dense<0.000000e+00> : vector<18x64xf32>
      %399 = tpu.matmul %397, %398, %cst_231 {dimension_numbers = #tpu.dot_dimension_numbers<[1], [0], [0], [1], [0, 0, 1, 1], [], []>} : vector<18x24xf32>, vector<24x64xf32>, vector<18x64xf32> -> vector<18x64xf32>
      %c0_232 = arith.constant 0 : index
      %c0_233 = arith.constant 0 : index
      %400 = vector.load %arg9[%c0_232, %c0_233] : memref<1x64xf32, #tpu.memory_space<vmem>>, vector<1x64xf32>
      %401 = vector.broadcast %400 : vector<1x64xf32> to vector<18x64xf32>
      %402 = arith.addf %399, %401 : vector<18x64xf32>
      %c0_234 = arith.constant 0 : index
      %c0_235 = arith.constant 0 : index
      %403 = vector.load %arg6[%c0_234, %c0_235] : memref<8x64xf32, #tpu.memory_space<vmem>>, vector<8x64xf32>
      %cst_236 = arith.constant dense<0.000000e+00> : vector<8xf32>
      %404 = vector.multi_reduction <add>, %403, %cst_236 [1] : vector<8x64xf32> to vector<8xf32>
      %405 = vector.shape_cast %404 : vector<8xf32> to vector<8x1xf32>
      %cst_237 = arith.constant 6.400000e+01 : f32
      %406 = vector.broadcast %cst_237 : f32 to vector<8x1xf32>
      %407 = arith.divf %405, %406 : vector<8x1xf32>
      %408 = vector.broadcast %407 : vector<8x1xf32> to vector<8x64xf32>
      %409 = arith.subf %403, %408 : vector<8x64xf32>
      %410 = arith.mulf %409, %409 : vector<8x64xf32>
      %cst_238 = arith.constant dense<0.000000e+00> : vector<8xf32>
      %411 = vector.multi_reduction <add>, %410, %cst_238 [1] : vector<8x64xf32> to vector<8xf32>
      %412 = vector.shape_cast %411 : vector<8xf32> to vector<8x1xf32>
      %cst_239 = arith.constant 6.400000e+01 : f32
      %413 = vector.broadcast %cst_239 : f32 to vector<8x1xf32>
      %414 = arith.divf %412, %413 : vector<8x1xf32>
      %415 = vector.broadcast %407 : vector<8x1xf32> to vector<8x64xf32>
      %416 = arith.subf %403, %415 : vector<8x64xf32>
      %cst_240 = arith.constant 9.99999997E-7 : f32
      %417 = vector.broadcast %cst_240 : f32 to vector<8x1xf32>
      %418 = arith.addf %414, %417 : vector<8x1xf32>
      %419 = math.rsqrt %418 : vector<8x1xf32>
      %420 = vector.broadcast %419 : vector<8x1xf32> to vector<8x64xf32>
      %421 = arith.mulf %416, %420 : vector<8x64xf32>
      %cst_241 = arith.constant 0.000000e+00 : f32
      %422 = vector.broadcast %cst_241 : f32 to vector<1x1xf32>
      %423 = vector.extract_strided_slice %402 {offsets = [5, 0], sizes = [4, 64], strides = [1, 1]} : vector<18x64xf32> to vector<4x64xf32>
      %424 = vector.extract_strided_slice %421 {offsets = [0, 0], sizes = [4, 64], strides = [1, 1]} : vector<8x64xf32> to vector<4x64xf32>
      %425 = arith.subf %423, %424 : vector<4x64xf32>
      %426 = arith.mulf %425, %425 : vector<4x64xf32>
      %cst_242 = arith.constant dense<0.000000e+00> : vector<4xf32>
      %427 = vector.multi_reduction <add>, %426, %cst_242 [1] : vector<4x64xf32> to vector<4xf32>
      %428 = vector.shape_cast %427 : vector<4xf32> to vector<4x1xf32>
      %cst_243 = arith.constant dense<0.000000e+00> : vector<1xf32>
      %429 = vector.multi_reduction <add>, %428, %cst_243 [0] : vector<4x1xf32> to vector<1xf32>
      %430 = vector.shape_cast %429 : vector<1xf32> to vector<1x1xf32>
      %431 = arith.addf %422, %430 : vector<1x1xf32>
      %432 = vector.extract_strided_slice %402 {offsets = [14, 0], sizes = [4, 64], strides = [1, 1]} : vector<18x64xf32> to vector<4x64xf32>
      %433 = vector.extract_strided_slice %421 {offsets = [4, 0], sizes = [4, 64], strides = [1, 1]} : vector<8x64xf32> to vector<4x64xf32>
      %434 = arith.subf %432, %433 : vector<4x64xf32>
      %435 = arith.mulf %434, %434 : vector<4x64xf32>
      %cst_244 = arith.constant dense<0.000000e+00> : vector<4xf32>
      %436 = vector.multi_reduction <add>, %435, %cst_244 [1] : vector<4x64xf32> to vector<4xf32>
      %437 = vector.shape_cast %436 : vector<4xf32> to vector<4x1xf32>
      %cst_245 = arith.constant dense<0.000000e+00> : vector<1xf32>
      %438 = vector.multi_reduction <add>, %437, %cst_245 [0] : vector<4x1xf32> to vector<1xf32>
      %439 = vector.shape_cast %438 : vector<1xf32> to vector<1x1xf32>
      %440 = arith.addf %431, %439 : vector<1x1xf32>
      %cst_246 = arith.constant 0.001953125 : f32
      %441 = vector.broadcast %cst_246 : f32 to vector<1x1xf32>
      %442 = arith.mulf %440, %441 : vector<1x1xf32>
      %c0_247 = arith.constant 0 : index
      %c0_248 = arith.constant 0 : index
      %443 = vector.load %arg26[%c0_247, %c0_248] : memref<1x1xf32, #tpu.memory_space<vmem>>, vector<1x1xf32>
      tpu.vector_store %arg26[%c0_247, %c0_248], %442 {strides = array<i32>} : memref<1x1xf32, #tpu.memory_space<vmem>>, vector<1x1xf32>,
    } else {
    }
    return
  }
  func.func @transform_0(%arg0: i32) -> (i32, i32) {
    %c0_i32 = arith.constant 0 : i32
    %c0_i32_0 = arith.constant 0 : i32
    %c0_i32_1 = arith.constant 0 : i32
    return %c0_i32, %c0_i32_0 : i32, i32
  }
  func.func @transform_1(%arg0: i32) -> (i32, i32) {
    %c0_i32 = arith.constant 0 : i32
    %c0_i32_0 = arith.constant 0 : i32
    %c0_i32_1 = arith.constant 0 : i32
    return %c0_i32, %c0_i32_0 : i32, i32
  }
  func.func @transform_2(%arg0: i32) -> (i32, i32) {
    %c0_i32 = arith.constant 0 : i32
    %c0_i32_0 = arith.constant 0 : i32
    %c0_i32_1 = arith.constant 0 : i32
    return %c0_i32, %c0_i32_0 : i32, i32
  }
  func.func @transform_3(%arg0: i32) -> (i32, i32) {
    %c0_i32 = arith.constant 0 : i32
    %c0_i32_0 = arith.constant 0 : i32
    %c0_i32_1 = arith.constant 0 : i32
    return %c0_i32, %c0_i32_0 : i32, i32
  }
  func.func @transform_4(%arg0: i32) -> (i32, i32) {
    %c0_i32 = arith.constant 0 : i32
    %c0_i32_0 = arith.constant 0 : i32
    %c0_i32_1 = arith.constant 0 : i32
    return %c0_i32, %c0_i32_0 : i32, i32
  }
  func.func @transform_5(%arg0: i32) -> (i32, i32) {
    %c0_i32 = arith.constant 0 : i32
    %c0_i32_0 = arith.constant 0 : i32
    %c0_i32_1 = arith.constant 0 : i32
    return %c0_i32, %c0_i32_0 : i32, i32
  }
  func.func @transform_6(%arg0: i32) -> (i32, i32) {
    %c0_i32 = arith.constant 0 : i32
    %c0_i32_0 = arith.constant 0 : i32
    %c0_i32_1 = arith.constant 0 : i32
    return %c0_i32, %c0_i32_0 : i32, i32
  }
  func.func @transform_7(%arg0: i32) -> (i32, i32) {
    %c0_i32 = arith.constant 0 : i32
    %c0_i32_0 = arith.constant 0 : i32
    %c0_i32_1 = arith.constant 0 : i32
    return %c0_i32, %c0_i32_0 : i32, i32
  }
  func.func @transform_8(%arg0: i32) -> (i32, i32) {
    %c0_i32 = arith.constant 0 : i32
    %c0_i32_0 = arith.constant 0 : i32
    %c0_i32_1 = arith.constant 0 : i32
    return %c0_i32, %c0_i32_0 : i32, i32
  }
  func.func @transform_9(%arg0: i32) -> (i32, i32, i32) {
    %c0_i32 = arith.constant 0 : i32
    %c0_i32_0 = arith.constant 0 : i32
    %c0_i32_1 = arith.constant 0 : i32
    return %arg0, %c0_i32, %c0_i32_0 : i32, i32, i32
  }
  func.func @transform_10(%arg0: i32) -> (i32, i32, i32) {
    %c0_i32 = arith.constant 0 : i32
    %c0_i32_0 = arith.constant 0 : i32
    %c0_i32_1 = arith.constant 0 : i32
    return %arg0, %c0_i32, %c0_i32_0 : i32, i32, i32
  }
  func.func @transform_11(%arg0: i32) -> (i32, i32, i32) {
    %c0_i32 = arith.constant 0 : i32
    %c0_i32_0 = arith.constant 0 : i32
    %c0_i32_1 = arith.constant 0 : i32
    return %arg0, %c0_i32, %c0_i32_0 : i32, i32, i32
  }
  func.func @transform_12(%arg0: i32) -> (i32, i32, i32) {
    %c0_i32 = arith.constant 0 : i32
    %c0_i32_0 = arith.constant 0 : i32
    %c0_i32_1 = arith.constant 0 : i32
    return %arg0, %c0_i32, %c0_i32_0 : i32, i32, i32
  }
  func.func @transform_13(%arg0: i32) -> (i32, i32, i32, i32) {
    %c0_i32 = arith.constant 0 : i32
    %c0_i32_0 = arith.constant 0 : i32
    %c0_i32_1 = arith.constant 0 : i32
    %c0_i32_2 = arith.constant 0 : i32
    return %arg0, %c0_i32, %c0_i32_0, %c0_i32_1 : i32, i32, i32, i32
  }
  func.func @transform_14(%arg0: i32) -> (i32, i32, i32, i32) {
    %c0_i32 = arith.constant 0 : i32
    %c0_i32_0 = arith.constant 0 : i32
    %c0_i32_1 = arith.constant 0 : i32
    %c0_i32_2 = arith.constant 0 : i32
    return %arg0, %c0_i32, %c0_i32_0, %c0_i32_1 : i32, i32, i32, i32
  }
  func.func @transform_15(%arg0: i32) -> (i32, i32, i32, i32) {
    %c0_i32 = arith.constant 0 : i32
    %c0_i32_0 = arith.constant 0 : i32
    %c0_i32_1 = arith.constant 0 : i32
    %c0_i32_2 = arith.constant 0 : i32
    return %arg0, %c0_i32, %c0_i32_0, %c0_i32_1 : i32, i32, i32, i32
  }
  func.func @transform_16(%arg0: i32) -> (i32, i32, i32) {
    %c0_i32 = arith.constant 0 : i32
    %c0_i32_0 = arith.constant 0 : i32
    %c0_i32_1 = arith.constant 0 : i32
    return %arg0, %c0_i32, %c0_i32_0 : i32, i32, i32
  }
  func.func @transform_17(%arg0: i32) -> (i32, i32, i32, i32) {
    %c0_i32 = arith.constant 0 : i32
    %c0_i32_0 = arith.constant 0 : i32
    %c0_i32_1 = arith.constant 0 : i32
    %c0_i32_2 = arith.constant 0 : i32
    return %arg0, %c0_i32, %c0_i32_0, %c0_i32_1 : i32, i32, i32, i32
  }
  func.func @transform_18(%arg0: i32) -> (i32, i32, i32, i32) {
    %c0_i32 = arith.constant 0 : i32
    %c0_i32_0 = arith.constant 0 : i32
    %c0_i32_1 = arith.constant 0 : i32
    %c0_i32_2 = arith.constant 0 : i32
    return %arg0, %c0_i32, %c0_i32_0, %c0_i32_1 : i32, i32, i32, i32
  }
  func.func @transform_19(%arg0: i32) -> (i32, i32, i32, i32) {
    %c0_i32 = arith.constant 0 : i32
    %c0_i32_0 = arith.constant 0 : i32
    %c0_i32_1 = arith.constant 0 : i32
    %c0_i32_2 = arith.constant 0 : i32
    return %arg0, %c0_i32, %c0_i32_0, %c0_i32_1 : i32, i32, i32, i32
  }
  func.func @transform_20(%arg0: i32) -> (i32, i32, i32) {
    %c0_i32 = arith.constant 0 : i32
    %c0_i32_0 = arith.constant 0 : i32
    %c0_i32_1 = arith.constant 0 : i32
    return %arg0, %c0_i32, %c0_i32_0 : i32, i32, i32
  }
  func.func @transform_21(%arg0: i32) -> (i32, i32, i32) {
    %c0_i32 = arith.constant 0 : i32
    %c0_i32_0 = arith.constant 0 : i32
    %c0_i32_1 = arith.constant 0 : i32
    return %arg0, %c0_i32, %c0_i32_0 : i32, i32, i32
  }
  func.func @transform_22(%arg0: i32) -> (i32, i32, i32) {
    %c0_i32 = arith.constant 0 : i32
    %c0_i32_0 = arith.constant 0 : i32
    %c0_i32_1 = arith.constant 0 : i32
    return %arg0, %c0_i32, %c0_i32_0 : i32, i32, i32
  }
  func.func @transform_23(%arg0: i32) -> (i32, i32, i32) {
    %c0_i32 = arith.constant 0 : i32
    %c0_i32_0 = arith.constant 0 : i32
    %c0_i32_1 = arith.constant 0 : i32
    return %arg0, %c0_i32, %c0_i32_0 : i32, i32, i32
  }
  func.func @transform_24(%arg0: i32) -> (i32, i32, i32) {
    %c0_i32 = arith.constant 0 : i32
    %c0_i32_0 = arith.constant 0 : i32
    %c0_i32_1 = arith.constant 0 : i32
    return %arg0, %c0_i32, %c0_i32_0 : i32, i32, i32
  }
  func.func @transform_25(%arg0: i32) -> (i32, i32) {
    %c0_i32 = arith.constant 0 : i32
    %c0_i32_0 = arith.constant 0 : i32
    %c0_i32_1 = arith.constant 0 : i32
    return %c0_i32, %c0_i32_0 : i32, i32
  }
}

</mosaic_0001>

<bundles_post_ra>
// kernel: hi_end_mae_forward.2
= control target key start
LH: loop header
LB: loop body
LE: loop exit
PB: predicated region body
PF: predicated region fallthrough
CT: control target
= control target key end

     0   :  { %s4624_s21 = smov 0   ;;  %s5147_s0 = inlined_call_operand.vmem [shape: f32[8,64], index: 0, kind: input, shape index: {}]   ;;  %s5148_s1 = inlined_call_operand.vmem [shape: f32[8,48], index: 1, kind: input, shape index: {}]   ;;  %s5149_s2 = inlined_call_operand.vmem [shape: f32[64,48], index: 2, kind: input, shape index: {}]   ;;  %s5150_s3 = inlined_call_operand.vmem [shape: f32[1,48], index: 3, kind: input, shape index: {}]   ;;  %s5151_s4 = inlined_call_operand.vmem [shape: f32[1,48], index: 4, kind: input, shape index: {}]   ;;  %s5152_s5 = inlined_call_operand.vmem [shape: f32[2,48], index: 5, kind: input, shape index: {}]   ;;  %s5153_s6 = inlined_call_operand.vmem [shape: f32[12,4,48], index: 6, kind: input, shape index: {}]   ;;  %s5154_s7 = inlined_call_operand.vmem [shape: f32[12,12,48,12], index: 7, kind: input, shape index: {}]   ;;  %s5155_s8 = inlined_call_operand.vmem [shape: f32[12,12,1,12], index: 8, kind: input, shape index: {}]   ;;  %s5156_s9 = inlined_call_operand.vmem [shape: f32[12,4,12,48], index: 9, kind: input, shape index: {}]   ;;  %s5157_s10 = inlined_call_operand.vmem [shape: f32[12,1,48], index: 10, kind: input, shape index: {}]   ;;  %s5158_s11 = inlined_call_operand.vmem [shape: f32[12,48,96], index: 11, kind: input, shape index: {}]   ;;  %s5159_s12 = inlined_call_operand.vmem [shape: f32[12,1,96], index: 12, kind: input, shape index: {}]   ;;  %s5160_s13 = inlined_call_operand.vmem [shape: f32[12,96,48], index: 13, kind: input, shape index: {}]   ;;  %s5161_s14 = inlined_call_operand.vmem [shape: f32[12,1,48], index: 14, kind: input, shape index: {}]   ;;  %s5162_s15 = inlined_call_operand.vmem [shape: f32[3,10,48], index: 15, kind: output, shape index: {0}]   ;;  %s5163_s16 = inlined_call_operand.vmem [shape: f32[10,48], index: 16, kind: output, shape index: {1}]  }
   0x1   :  { %5174 = sst [smem:[#allocation6_spill]] %s5147_s0 }
   0x2   :  { %5175 = sst [smem:[#allocation7_spill]] %s5152_s5 }
   0x3   :  { %5176 = sst [smem:[#allocation8_spill]] %s5153_s6 }
   0x4   :  { %5177 = sst [smem:[#allocation9_spill]] %s5154_s7 }
   0x5   :  { %5178 = sst [smem:[#allocation10_spill]] %s5162_s15 }
   0x6   :  { %5179 = sst [smem:[#allocation11_spill]] %s5163_s16 }
   0x7 LB: > { %5180 = sst [smem:[#allocation3_spill]] %s4533_s21  ;;  %s4630_s22 = sadd.s32 4294967295, %s4533_s21   ;;  %s4533_s21 = sphi %s4624_s21, %s27_s21  }
   0x8   : > { %p3503_p0 = scmp.ge.s32.totalorder %s4533_s21, 1  ;;  %p527_p1 = scmp.lt.s32.totalorder %s4533_s21, 13 }
   0xa   : > { %p528_p2 = pnand %p3503_p0, %p527_p1 }
   0xc   : > { %531 = sbr.rel (%p528_p2) target bundleno = 5634 (0x1602), region = 80 }
  0x13   : > { %p604_p3 = scmp.lt.s32.totalorder %s4630_s22, 11  ;;  %s5181_s6 = sld [smem:[#allocation8_spill]] }
  0x14   : > { %s5183_s7 = sld [smem:[#allocation9_spill]]  ;;  %p3510_p4 = scmp.ne.s32.totalorder %s4630_s22, 0 }
  0x15   : > { %s4636_s23 = scalar_select %p604_p3, %s4630_s22, 11 }
  0x16   : > { %v646_v0 = vld [vmem:[%s5149_s2] sm:$0xff] (!%p3510_p4)  ;;  %v647_v1 = vld [vmem:[%s5149_s2 + $0x8] sm:$0xff] (!%p3510_p4)  ;;  %v648_v2 = vld [vmem:[%s5149_s2 + $0x10] sm:$0xff] (!%p3510_p4)  ;;  %v4535_v3 = vmov (!%p3510_p4), 0.0|0.0   ;;  %vm4536_vm0 = vmmov (!%p3510_p4), 0   ;;  %v4537_v6 = vmov (!%p3510_p4), 0.0  }
  0x17   : > { %s3504_s24 = sshll.u32 %s4636_s23, 2  ;;  %s4460_s25 = smul.u32 576, %s4636_s23  ;;  %4190 = vmatprep.subr.bf16.mxu0 (!%p3510_p4), %v4535_v3  ;;  %v4191_v4 = vpack.c.bf16 (!%p3510_p4), %v647_v1, %v646_v0  ;;  %v649_v5 = vld [vmem:[%s5149_s2 + $0x18] sm:$0xff] (!%p3510_p4)  ;;  %3881 = vmatprep.mubr.msk.f32.mxu0 (!%p3510_p4), %vm4536_vm0, %v4537_v6  ;;  %v650_v8 = vld [vmem:[%s5149_s2 + $0x20] sm:$0xff] (!%p3510_p4)  ;;  %v651_v9 = vld [vmem:[%s5149_s2 + $0x28] sm:$0xff] (!%p3510_p4)  ;;  %vm661_vm1 = vcmask (!%p3510_p4), 523264  }
  0x18   : > { %s4461_s29 = smul.u32 12, %s4636_s23  ;;  %s3689_s18 = sshll.u32 %s4636_s23, 6  ;;  %v4194_v7 = vpack.c.bf16 (!%p3510_p4), %v649_v5, %v648_v2  ;;  %v4197_v10 = vpack.c.bf16 (!%p3510_p4), %v651_v9, %v650_v8  ;;  %v652_v11 = vld [vmem:[%s5149_s2 + $0x30] sm:$0xff] (!%p3510_p4)  ;;  %v653_v12 = vld [vmem:[%s5149_s2 + $0x38] sm:$0xff] (!%p3510_p4)  ;;  %v737_v15 = vld [vmem:[%s5151_s4] sm:$0x1] (!%p3510_p4) }
  0x19   : > { %s4643_s28 = scalar_lea.vmem %s5181_s6, %s3504_s24  ;;  %s4660_s15 = scalar_lea.vmem %s5156_s9, %s3689_s18  ;;  %4192 = vmatpush3.bf16.msra.mxu0 (!%p3510_p4), %v4191_v4  ;;  %v4200_v13 = vpack.c.bf16 (!%p3510_p4), %v653_v12, %v652_v11  ;;  %vm738_vm2 = vcmask (!%p3510_p4), 385024   ;;  %v3511_v16 = vld [vmem:[%s5150_s3] ss:$0 sm:$0xff] (!%p3510_p4)  ;;  %vm740_vm3 = vcmask (!%p3510_p4), 388096   ;;  %vm743_vm4 = vcmask (!%p3510_p4), 392196  }
  0x1a   : > { %5182 = sst [smem:[#allocation4_spill]] %s4643_s28  ;;  %s4649_s17 = scalar_lea.vmem %s5183_s7, %s4460_s25  ;;  %4193 = vmatprep.subr.bf16.mxu0 (!%p3510_p4), %v4535_v3  ;;  %739 = vst.msk [vmem:[#allocation2] sm:$0x1] (!%p3510_p4), %vm738_vm2, %v737_v15  ;;  %742 = vst.msk [vmem:[#allocation2 + $0x5] sm:$0x1] (!%p3510_p4), %vm738_vm2, %v737_v15  ;;  %v735_v18 = vld [vmem:[%s5148_s1] sm:$0xff] (!%p3510_p4) }
  0x1b   : > { %5184 = sst [smem:[#allocation5_spill]] %s4649_s17  ;;  %s4655_s21 = scalar_lea.vmem %s5155_s8, %s4461_s29 }
  0x1c   : > { %s624_s27 = scalar_lea.vmem %s5157_s10, %s4636_s23  ;;  %s4462_s6 = smul.u32 48, %s4636_s23 }
  0x1d   : > { %s632_s25 = scalar_lea.vmem %s5159_s12, %s4636_s23  ;;  %s4463_s0 = smul.u32 96, %s4636_s23  ;;  %4195 = vmatpush3.bf16.msra.mxu0 (!%p3510_p4), %v4194_v7 }
  0x1e   : > { %s4675_s29 = scalar_lea.vmem %s5158_s11, %s4462_s6  ;;  %s640_s5 = scalar_lea.vmem %s5161_s14, %s4636_s23  ;;  %4196 = vmatprep.subr.bf16.mxu0 (!%p3510_p4), %v4535_v3 }
  0x1f   : > { %s4684_s26 = scalar_lea.vmem %s5160_s13, %s4463_s0  ;;  %644 = sbr.rel (%p3510_p4) target bundleno = 258 (0x102), region = 84 }
  0x20   : > { %s5185_s19 = sld [smem:[#allocation6_spill]] (!%p3510_p4) }
  0x21   : > { %4198 = vmatpush3.bf16.msra.mxu0 (!%p3510_p4), %v4197_v10 }
  0x22   : > { %4199 = vmatprep.subr.bf16.mxu0 (!%p3510_p4), %v4535_v3 }
  0x25   : > { %4201 = vmatpush3.bf16.msra.mxu0 (!%p3510_p4), %v4200_v13 }
  0x26   : > { %v645_v14 = vld [vmem:[%s5185_s19] sm:$0xff] }
  0x28   : > { %3882 = vmatmul.mubr.msk.f32.vlgmr.msra.gmra.mrb[0].mxu0 %vm661_vm1, %v645_v14 }
  0xfb   : > { %v731_v17 = vpop.f32.mrb[0].mxu0 }
  0xfc   : > { %v732_v19 = vadd.f32 %v3511_v16, %v731_v17  ;;  %v3883_v20 = vpop.f32.mrb[1].mxu0 }
  0xfe   : > { %v736_v21 = vadd.f32 %v735_v18, %v732_v19 }
 0x100   : > { %741 = vst.msk [vmem:[#allocation2 + $0x1] sm:$0xf] %vm740_vm3, %v736_v21 }
 0x101   : > { %744 = vst.msk [vmem:[#allocation2 + $0x2] sm:$0xf0] %vm743_vm4, %v736_v21 }
 0x102 PF: > { %vm777_vm5 = vcmask 392192   ;;  %vm5171_vm6 = vcmask 386048   ;;  %s5186_s7 = sld [smem:[#allocation5_spill]]  ;;  %s5187_s6 = sld [smem:[#allocation4_spill]]  ;;  %v746_v62 = vlaneseq  ;;  %vm5173_vm7 = vcmask 97280  }
 0x103   : > { %vm1214_vm8 = vcmask 1041408   ;;  %vm4815_vm9 = vmpackc.low %vm5173_vm7, %vm5173_vm7  ;;  %vm5172_vm10 = vmmov 1   ;;  %p3679_p5 = scmp.ne.s32.totalorder %s4630_s22, 8 }
 0x104   : > { %v4752_v2 = vshrl.u32 %v746_v62, 7  ;;  %vm4820_vm11 = vmpackc.low %vm1214_vm8, %vm5172_vm10  ;;  %s5215_s19 = sld [smem:[#allocation10_spill]] (!%p3679_p5) }
 0x106   : > { %v808_v4 = vsub.s32 0, %v4752_v2  ;;  %v814_v6 = vsub.s32 1, %v4752_v2  ;;  %vm753_vm14 = vcmp.lt.s32.totalorder %v4752_v2, 5  ;;  %vm762_vm1 = vcmp.ge.s32.totalorder %v4752_v2, 5 }
 0x108   : > { %v775_v22 = vld [vmem:[#allocation2] sm:$0xff]  ;;  %v776_v23 = vld [vmem:[#allocation2 + $0x8] sm:$0x3]  ;;  %v820_v42 = vld [vmem:[%s5186_s7 + $0x10] sm:$0xff] }
 0x109   : > { %v778_v24 = vsel %vm777_vm5, %v775_v22, 0.0  ;;  %v782_v25 = vsel %vm5171_vm6, %v776_v23, 0.0  ;;  %v818_v36 = vld [vmem:[%s5186_s7] sm:$0xff]  ;;  %v819_v37 = vld [vmem:[%s5186_s7 + $0x8] sm:$0xff]  ;;  %v821_v43 = vld [vmem:[%s5186_s7 + $0x18] sm:$0xff] }
 0x10a   : > { %779 = vadd.xlane.f32.xlu0 %v778_v24  ;;  %v3526_v38 = vld [vmem:[%s5186_s7 + $0x180] sm:$0xff]  ;;  %v4202_v39 = vpack.c.bf16 %v819_v37, %v818_v36  ;;  %v3527_v40 = vld [vmem:[%s5186_s7 + $0x188] sm:$0xff]  ;;  %v3528_v44 = vld [vmem:[%s5186_s7 + $0x190] sm:$0xff]  ;;  %v4206_v45 = vpack.c.bf16 %v821_v43, %v820_v42 }
 0x10b   : > { %v4226_v41 = vpack.c.bf16 %v3527_v40, %v3526_v38  ;;  %v3529_v46 = vld [vmem:[%s5186_s7 + $0x198] sm:$0xff]  ;;  %v822_v48 = vld [vmem:[%s5186_s7 + $0x20] sm:$0xff]  ;;  %v823_v49 = vld [vmem:[%s5186_s7 + $0x28] sm:$0xff] }
 0x10c   : > { %4203 = vmatprep.subr.bf16.mxu1 %v4202_v39  ;;  %v4230_v47 = vpack.c.bf16 %v3529_v46, %v3528_v44  ;;  %v3530_v50 = vld [vmem:[%s5186_s7 + $0x1a0] sm:$0xff]  ;;  %v4210_v51 = vpack.c.bf16 %v823_v49, %v822_v48  ;;  %v3531_v52 = vld [vmem:[%s5186_s7 + $0x1a8] sm:$0xff]  ;;  %v3543_v56 = vld [vmem:[%s5186_s7 + $0x30] sm:$0xff] }
 0x10d   : > { %4227 = vmatprep.subr.bf16.mxu0 %v4226_v41  ;;  %4205 = vmatpush3.bf16.msra.mxu1 %v4202_v39  ;;  %v4234_v53 = vpack.c.bf16 %v3531_v52, %v3530_v50  ;;  %v3516_v54 = vld [vmem:[%s5186_s7 + $0xc0] sm:$0xff]  ;;  %v3517_v55 = vld [vmem:[%s5186_s7 + $0xc8] sm:$0xff]  ;;  %v3544_v58 = vld [vmem:[%s5186_s7 + $0x38] sm:$0xff] }
 0x10e   : > { %783 = vadd.xlane.f32.xlu0 %v782_v25  ;;  %4229 = vmatpush3.bf16.msra.mxu0 %v4226_v41  ;;  %v4214_v57 = vpack.c.bf16 %v3517_v55, %v3516_v54  ;;  %v4250_v59 = vpack.c.bf16 %v3544_v58, %v3543_v56  ;;  %v745_v5 = vld [vmem:[%s5187_s6] sm:$0xf]  ;;  %v3518_v15 = vld [vmem:[%s5186_s7 + $0xd0] sm:$0xff]  ;;  %v3519_v17 = vld [vmem:[%s5186_s7 + $0xd8] sm:$0xff] }
 0x10f   : > { %4207 = vmatprep.subr.bf16.mxu1 %v4206_v45  ;;  %4231 = vmatprep.subr.bf16.mxu0 %v4230_v47  ;;  %v809_v7 = vrot.slane %v745_v5, %v808_v4  ;;  %v815_v10 = vrot.slane %v745_v5, %v814_v6  ;;  %v3545_v18 = vld [vmem:[%s5186_s7 + $0x40] sm:$0xff]  ;;  %v3546_v19 = vld [vmem:[%s5186_s7 + $0x48] sm:$0xff]  ;;  %v3547_v25 = vld [vmem:[%s5186_s7 + $0x50] sm:$0xff] }
 0x110   : > { %v3520_v21 = vld [vmem:[%s5186_s7 + $0xe0] sm:$0xff]  ;;  %v3521_v24 = vld [vmem:[%s5186_s7 + $0xe8] sm:$0xff]  ;;  %v3568_v36 = vld [vmem:[%s5186_s7 + $0x1d8] sm:$0xff] }
 0x111   : > { %4209 = vmatpush3.bf16.msra.mxu1 %v4206_v45  ;;  %v3533_v38 = vld [vmem:[%s4655_s21 + $0x8] ss:$0 sm:$0xff]  ;;  %v3513_v39 = vld [vmem:[%s4655_s21] ss:$0 sm:$0xff]  ;;  %v3523_v48 = vld [vmem:[%s4655_s21 + $0x4] ss:$0 sm:$0xff] }
 0x112   : > { %4233 = vmatpush3.bf16.msra.mxu0 %v4230_v47  ;;  %4211 = vmatprep.subr.bf16.mxu1 %v4210_v51  ;;  %v4806_v49 = vld [vmem:[%s4655_s21 + $0x1] ss:$0 sm:$0xff] }
 0x113   : > { %4235 = vmatprep.subr.bf16.mxu0 %v4234_v53 }
 0x115   : > { %4213 = vmatpush3.bf16.msra.mxu1 %v4210_v51 }
 0x116   : > { %4237 = vmatpush3.bf16.msra.mxu0 %v4234_v53  ;;  %4215 = vmatprep.subr.bf16.mxu1 %v4214_v57 }
 0x117   : > { %4251 = vmatprep.subr.bf16.mxu0 %v4250_v59 }
 0x197   : > { %v780_v26 = vpop.xlane.xlu0 %779 }
 0x198   : > { %v786_v27 = vmul.f32 0.020833334, %v780_v26  ;;  %v3548_v26 = vld [vmem:[%s5186_s7 + $0x58] sm:$0xff] }
 0x19a   : > { %v4725_v28 = vsub.f32 %v775_v22, %v786_v27  ;;  %v4218_v22 = vpack.c.bf16 %v3519_v17, %v3518_v15  ;;  %v4222_v27 = vpack.c.bf16 %v3521_v24, %v3520_v21 }
 0x19b   : > { %v784_v29 = vpop.xlane.xlu0 %783 }
 0x19c   : > { %v787_v30 = vmul.f32 0.020833334, %v784_v29  ;;  %v790_v31 = vmul.f32 %v4725_v28, %v4725_v28  ;;  %v3563_v29 = vld [vmem:[%s5186_s7 + $0x1b0] sm:$0xff] }
 0x19e   : > { %v4729_v32 = vsub.f32 %v776_v23, %v787_v30  ;;  %v792_v33 = vsel %vm777_vm5, %v790_v31, 0.0  ;;  %v4254_v23 = vpack.c.bf16 %v3546_v19, %v3545_v18  ;;  %v3564_v30 = vld [vmem:[%s5186_s7 + $0x1b8] sm:$0xff] }
 0x19f   : > { %793 = vadd.xlane.f32.xlu1 %v792_v33  ;;  %v4274_v31 = vpack.c.bf16 %v3564_v30, %v3563_v29  ;;  %v3566_v33 = vld [vmem:[%s5186_s7 + $0x1c8] sm:$0xff]  ;;  %v3553_v30 = vld [vmem:[%s5186_s7 + $0xf0] sm:$0xff] }
 0x1a0   : > { %v791_v34 = vmul.f32 %v4729_v32, %v4729_v32 }
 0x1a2   : > { %v795_v35 = vsel %vm5171_vm6, %v791_v34, 0.0  ;;  %vm1188_vm6 = vcmask 74752  }
 0x1a3   : > { %796 = vadd.xlane.f32.xlu1 %v795_v35  ;;  %v3567_v35 = vld [vmem:[%s5186_s7 + $0x1d0] sm:$0xff] }
 0x1a4   : > { %v4282_v37 = vpack.c.bf16 %v3568_v36, %v3567_v35  ;;  %v3555_v36 = vld [vmem:[%s5186_s7 + $0x100] sm:$0xff] }
 0x22c   : > { %v794_v60 = vpop.xlane.xlu1 %793 }
 0x22d   : > { %v798_v61 = vmul.f32 0.020833334, %v794_v60  ;;  %v3570_v60 = vld [vmem:[%s4655_s21 + $0x9] ss:$0 sm:$0xff] }
 0x22f   : > { %v800_v63 = vadd.f32 1e-05, %v798_v61 }
 0x230   : > { %v797_v0 = vpop.xlane.xlu1 %796 }
 0x231   : > { %4476 = vrsqrt.f32 %v800_v63  ;;  %v799_v1 = vmul.f32 0.020833334, %v797_v0 }
 0x233   : > { %v801_v3 = vadd.f32 1e-05, %v799_v1 }
 0x235   : > { %4478 = vrsqrt.f32 %v801_v3 }
 0x23b   : > { %v4477_v8 = vpop.eup %4476 }
 0x23c   : > { %v804_v9 = vmul.f32 %v4477_v8, %v4725_v28  ;;  %v4258_v28 = vpack.c.bf16 %v3548_v26, %v3547_v25  ;;  %v748_v8 = vadd.s32 8, %v4752_v2 }
 0x23e   : > { %v810_v11 = vmul.f32 %v809_v7, %v804_v9  ;;  %vm765_vm2 = vcmp.lt.s32.totalorder %v748_v8, 10 }
 0x23f   : > { %v4479_v12 = vpop.eup %4478 }
 0x240   : > { %v4762_v13 = vadd.f32 %v815_v10, %v810_v11  ;;  %v805_v14 = vmul.f32 %v4479_v12, %v4729_v32  ;;  %v3565_v32 = vld [vmem:[%s5186_s7 + $0x1c0] sm:$0xff] }
 0x241   : > { %v4278_v34 = vpack.c.bf16 %v3566_v33, %v3565_v32 }
 0x242   : > { %v811_v16 = vmul.f32 %v809_v7, %v805_v14  ;;  %3896 = vmatprep.mubr.msk.f32.mxu1 %vm777_vm5, %v4762_v13  ;;  %3926 = vmatprep.mubr.msk.f32.mxu0 %vm777_vm5, %v4762_v13  ;;  %v750_v7 = vand.u32 127, %v746_v62 }
 0x244   : > { %v4773_v20 = vadd.f32 %v815_v10, %v811_v16  ;;  %vm768_vm12 = vcmp.ge.s32.totalorder %v750_v7, 5  ;;  %vm769_vm13 = vcmp.lt.s32.totalorder %v750_v7, 10  ;;  %vm758_vm15 = vcmp.lt.s32.totalorder %v750_v7, 5 }
 0x245   : > { %vm770_vm0 = vmand %vm768_vm12, %vm769_vm13  ;;  %vm5196_vm12 = vcmask 97280  }
 0x246   : > { %3897 = vmatmul.mubr.msk.f32.vlgmr.msra.gmra.mrb[0].mxu1 %vm777_vm5, %v4773_v20  ;;  %3927 = vmatmul.mubr.msk.f32.vlgmr.msra.gmra.mrb[0].mxu0 %vm777_vm5, %v4773_v20  ;;  %vm760_vm3 = vmand %vm753_vm14, %vm758_vm15  ;;  %vm1771_vm14 = vcmask 1043456   ;;  %vm5198_vm15 = vmmov 1  }
 0x247   : > { %4217 = vmatpush3.bf16.msra.mxu1 %v4214_v57  ;;  %4253 = vmatpush3.bf16.msra.mxu0 %v4250_v59  ;;  %vm771_vm4 = vmand %vm762_vm1, %vm770_vm0 }
 0x248   : > { %3911 = vmatprep.mubr.msk.f32.mxu1 %vm777_vm5, %v4762_v13  ;;  %3955 = vmatprep.mubr.msk.f32.mxu0 %vm777_vm5, %v4762_v13  ;;  %vm4840_vm8 = vmand %vm765_vm2, %vm770_vm0 }
 0x249   : > { %4219 = vmatprep.subr.bf16.mxu1 %v4218_v22  ;;  %4255 = vmatprep.subr.bf16.mxu0 %v4254_v23  ;;  %vm4844_vm10 = vmor %vm760_vm3, %vm771_vm4 }
 0x24a   : > { %vm5197_vm13 = vmmov %vm5196_vm12 }
 0x24b   : > { %4221 = vmatpush3.bf16.msra.mxu1 %v4218_v22  ;;  %4257 = vmatpush3.bf16.msra.mxu0 %v4254_v23  ;;  %vm4901_vm0 = vmpackc.low %vm1771_vm14, %vm5198_vm15 }
 0x24c   : > { %4223 = vmatprep.subr.bf16.mxu1 %v4222_v27  ;;  %4259 = vmatprep.subr.bf16.mxu0 %v4258_v28  ;;  %vm5201_vm1 = vmmov %vm5196_vm12 }
 0x24d   : > { %vm5202_vm2 = vmmov %vm5201_vm1 }
 0x24e   : > { %vm5203_vm3 = vmmov %vm5201_vm1 }
 0x24f   : > { %4225 = vmatpush3.bf16.msra.mxu1 %v4222_v27  ;;  %4261 = vmatpush3.bf16.msra.mxu0 %v4258_v28  ;;  %vm5204_vm4 = vmmov %vm5201_vm1 }
 0x250   : > { %4275 = vmatprep.subr.bf16.mxu0 %v4274_v31  ;;  %vm5207_vm14 = vmmov %vm5201_vm1 }
 0x251   : > { %vm5208_vm15 = vmmov %vm5201_vm1 }
 0x252   : > { %3912 = vmatmul.mubr.msk.f32.vlgmr.msra.gmra.mrb[2].mxu1 %vm777_vm5, %v4773_v20  ;;  %3956 = vmatmul.mubr.msk.f32.vlgmr.msra.gmra.mrb[2].mxu0 %vm777_vm5, %v4773_v20 }
 0x253   : > { %4277 = vmatpush3.bf16.msra.mxu0 %v4274_v31  ;;  %3985 = vmatprep.mubr.msk.f32.mxu0 %vm777_vm5, %v4762_v13  ;;  %v3554_v31 = vld [vmem:[%s5186_s7 + $0xf8] sm:$0xff] }
 0x254   : > { %4279 = vmatprep.subr.bf16.mxu0 %v4278_v34  ;;  %v4262_v32 = vpack.c.bf16 %v3554_v31, %v3553_v30 }
 0x257   : > { %4281 = vmatpush3.bf16.msra.mxu0 %v4278_v34 }
 0x258   : > { %4283 = vmatprep.subr.bf16.mxu0 %v4282_v37 }
 0x25b   : > { %4285 = vmatpush3.bf16.msra.mxu0 %v4282_v37  ;;  %v3556_v37 = vld [vmem:[%s5186_s7 + $0x108] sm:$0xff] }
 0x25e   : > { %3986 = vmatmul.mubr.msk.f32.vlgmr.msra.gmra.mrb[4].mxu0 %vm777_vm5, %v4773_v20 }
 0x319   : > { %v3898_v40 = vpop.f32.mrb[0].mxu1  ;;  %v3928_v41 = vpop.f32.mrb[0].mxu0 }
 0x31a   : > { %v1089_v42 = vadd.f32 %v3928_v41, %v3533_v38  ;;  %v903_v43 = vpop.f32.mrb[1].mxu1  ;;  %v1083_v44 = vpop.f32.mrb[1].mxu0  ;;  %v909_v61 = vadd.f32 %v3898_v40, %v3513_v39  ;;  %v4266_v41 = vpack.c.bf16 %v3556_v37, %v3555_v36  ;;  %v3608_v36 = vld [vmem:[%s5186_s7 + $0x1e0] sm:$0xff]  ;;  %v3609_v37 = vld [vmem:[%s5186_s7 + $0x1e8] sm:$0xff] }
 0x31b   : > { %v904_v45 = vadd.f32 %v3513_v39, %v903_v43  ;;  %v1084_v46 = vadd.f32 %v3533_v38, %v1083_v44  ;;  %v3558_v43 = vld [vmem:[%s5186_s7 + $0x118] sm:$0xff] }
 0x31d   : > { %v4244_v47 = vpack.c.bf16 %v1089_v42, %v1084_v46  ;;  %3933 = vmatprep.mubr.msk.f32.mxu1 %vm5173_vm7, %v904_v45  ;;  %v3557_v42 = vld [vmem:[%s5186_s7 + $0x110] sm:$0xff] }
 0x31e   : > { %v4270_v44 = vpack.c.bf16 %v3558_v43, %v3557_v42  ;;  %v3612_v42 = vld [vmem:[%s5186_s7 + $0x200] sm:$0xff]  ;;  %v3613_v43 = vld [vmem:[%s5186_s7 + $0x208] sm:$0xff] }
 0x325   : > { %v3913_v50 = vpop.f32.mrb[2].mxu1  ;;  %v3957_v51 = vpop.f32.mrb[2].mxu0 }
 0x326   : > { %v999_v52 = vadd.f32 %v3913_v50, %v3523_v48  ;;  %v4809_v53 = vadd.f32 %v3957_v51, %v4806_v49  ;;  %v993_v54 = vpop.f32.mrb[3].mxu1  ;;  %v4811_v55 = vpop.f32.mrb[3].mxu0 }
 0x327   : > { %v994_v56 = vadd.f32 %v3523_v48, %v993_v54  ;;  %v1377_v45 = vadd.f32 %v4806_v49, %v4811_v55  ;;  %v3560_v48 = vld [vmem:[%s4655_s21 + $0x5] ss:$0 sm:$0xff] }
 0x329   : > { %v4238_v58 = vpack.c.bf16 %v999_v52, %v994_v56 }
 0x32b   : > { %4240 = vmatprep.subr.msk.bf16.mxu1 %vm4815_vm9, %v4238_v58 }
 0x32c   : > { %4243 = vmatpush3.bf16.xpose.msk.msra.mxu1 %vm4815_vm9, %v4238_v58 }
 0x32d   : > { %4246 = vmatprep.subr.msk.bf16.mxu1 %vm4820_vm11, %v4244_v47 }
 0x331   : > { %v3987_v63 = vpop.f32.mrb[4].mxu0 }
 0x332   : > { %v1562_v0 = vadd.f32 %v3987_v63, %v3570_v60  ;;  %v1556_v1 = vpop.f32.mrb[5].mxu0 }
 0x333   : > { %v1557_v3 = vadd.f32 %v3570_v60, %v1556_v1  ;;  %3934 = vmatmul.mubr.msk.f32.vlgmr.msra.gmra.mrb[4].mxu1 %vm5173_vm7, %v909_v61  ;;  %vm1184_vm7 = vcmask 80896  }
 0x334   : > { %4249 = vmatpush3.bf16.msk.msra.mxu1 %vm4820_vm11, %v4244_v47 }
 0x335   : > { %v4834_v5 = vpack.c.bf16 %v1562_v0, %v1557_v3  ;;  %4263 = vmatprep.subr.bf16.mxu1 %v4262_v32 }
 0x406   : > { %v3935_v9 = vpop.f32.mrb[4].mxu1 }
 0x407   : > { %v1181_v11 = vmul.f32 0.28867513, %v3935_v9  ;;  %v1171_v62 = vpop.f32.mrb[5].mxu1 }
 0x408   : > { %v1180_v14 = vmul.f32 0.28867513, %v1171_v62 }
 0x409   : > { %v1183_v15 = vsel %vm4840_vm8, %v1181_v11, -1e+30 }
 0x40a   : > { %v1189_v16 = vsel %vm1188_vm6, %v1183_v15, -inf  ;;  %v1182_v17 = vsel %vm4844_vm10, %v1180_v14, -1e+30 }
 0x40b   : > { %1190 = vmax.xlane.f32.xlu1 %v1189_v16  ;;  %v1185_v18 = vsel %vm1184_vm7, %v1182_v17, -inf  ;;  %v3588_v16 = vld [vmem:[%s5186_s7 + $0x60] sm:$0xff] }
 0x40c   : > { %1186 = vmax.xlane.f32.xlu0 %v1185_v18 }
 0x498   : > { %v1191_v19 = vpop.xlane.xlu1 %1190 }
 0x499   : > { %v1193_v21 = vsub.f32 %v1183_v15, %v1191_v19  ;;  %v1187_v22 = vpop.xlane.xlu0 %1186  ;;  %v3580_v19 = vld [vmem:[%s4660_s15 + $0x10] sm:$0xff] }
 0x49a   : > { %v1192_v23 = vsub.f32 %v1182_v17, %v1187_v22  ;;  %v3589_v17 = vld [vmem:[%s5186_s7 + $0x68] sm:$0xff] }
 0x49b   : > { %v1196_v24 = vmul.f32 1.442695, %v1193_v21  ;;  %v4310_v18 = vpack.c.bf16 %v3589_v17, %v3588_v16  ;;  %v3581_v21 = vld [vmem:[%s4660_s15 + $0x18] sm:$0xf] }
 0x49c   : > { %v1194_v25 = vmul.f32 1.442695, %v1192_v23  ;;  %v4298_v22 = vpack.c.bf16 %v3581_v21, %v3580_v19  ;;  %v4521_v23 = vld [vmem:[#allocation2] sm:$0xff] }
 0x49d   : > { %4480 = vpow2.f32 %v1196_v24 }
 0x49e   : > { %4482 = vpow2.f32 %v1194_v25  ;;  %4300 = vmatprep.subr.msk.bf16.mxu0 %vm4901_vm0, %v4298_v22 }
 0x49f   : > { %4303 = vmatpush3.bf16.msk.msra.mxu0 %vm4901_vm0, %v4298_v22 }
 0x4a7   : > { %v4481_v26 = vpop.eup %4480 }
 0x4a8   : > { %v4483_v27 = vpop.eup %4482  ;;  %v1201_v28 = vsel %vm1188_vm6, %v4481_v26, 0.0 }
 0x4a9   : > { %1202 = vadd.xlane.f32.xlu1 %v1201_v28  ;;  %v1198_v29 = vsel %vm1184_vm7, %v4483_v27, 0.0  ;;  %v3591_v28 = vld [vmem:[%s5186_s7 + $0x78] sm:$0xff] }
 0x4aa   : > { %1199 = vadd.xlane.f32.xlu0 %v1198_v29 }
 0x536   : > { %v1203_v33 = vpop.xlane.xlu1 %1202 }
 0x537   : > { %4484 = vrcp.f32 %v1203_v33  ;;  %v1200_v34 = vpop.xlane.xlu0 %1199  ;;  %v3592_v33 = vld [vmem:[%s5186_s7 + $0x80] sm:$0xff] }
 0x538   : > { %4486 = vrcp.f32 %v1200_v34  ;;  %v3593_v34 = vld [vmem:[%s5186_s7 + $0x88] sm:$0xff] }
 0x541   : > { %v4485_v35 = vpop.eup %4484 }
 0x542   : > { %v4487_v38 = vpop.eup %4486  ;;  %v1207_v40 = vmul.f32 %v4485_v35, %v4481_v26  ;;  %v4318_v35 = vpack.c.bf16 %v3593_v34, %v3592_v33 }
 0x543   : > { %v1206_v39 = vmul.f32 %v4487_v38, %v4483_v27  ;;  %v3590_v27 = vld [vmem:[%s5186_s7 + $0x70] sm:$0xff]  ;;  %v4334_v38 = vpack.c.bf16 %v3609_v37, %v3608_v36 }
 0x545   : > { %3940 = vmatprep.mubr.msk.f32.mxu1 %vm1184_vm7, %v1206_v39  ;;  %v3610_v39 = vld [vmem:[%s5186_s7 + $0x1f0] sm:$0xff] }
 0x546   : > { %3941 = vmatmul.mubr.msk.f32.vlgmr.msra.gmra.mrb[6].mxu1 %vm1184_vm7, %v1207_v40  ;;  %v3611_v40 = vld [vmem:[%s5186_s7 + $0x1f8] sm:$0xff] }
 0x547   : > { %4265 = vmatpush3.bf16.msra.mxu1 %v4262_v32  ;;  %3970 = vmatprep.mubr.msk.f32.mxu1 %vm777_vm5, %v4762_v13  ;;  %v4314_v32 = vpack.c.bf16 %v3591_v28, %v3590_v27 }
 0x548   : > { %4267 = vmatprep.subr.bf16.mxu1 %v4266_v41 }
 0x54b   : > { %4269 = vmatpush3.bf16.msra.mxu1 %v4266_v41  ;;  %v4338_v41 = vpack.c.bf16 %v3611_v40, %v3610_v39  ;;  %v3630_v40 = vld [vmem:[%s5186_s7 + $0x90] sm:$0xff] }
 0x54c   : > { %4271 = vmatprep.subr.bf16.mxu1 %v4270_v44 }
 0x54f   : > { %4273 = vmatpush3.bf16.msra.mxu1 %v4270_v44  ;;  %v4342_v44 = vpack.c.bf16 %v3613_v43, %v3612_v42  ;;  %v3625_v43 = vld [vmem:[%s4660_s15 + $0x20] sm:$0xff] }
 0x552   : > { %3971 = vmatmul.mubr.msk.f32.vlgmr.msra.gmra.mrb[8].mxu1 %vm777_vm5, %v4773_v20 }
 0x553   : > { %3992 = vmatprep.mubr.msk.f32.mxu1 %vm5196_vm12, %v1377_v45  ;;  %v1293_v45 = vld [vmem:[%s4660_s15] sm:$0xff]  ;;  %vm5205_vm12 = vmmov %vm5201_vm1 }
 0x619   : > { %v4871_v46 = vpop.f32.mrb[6].mxu1 }
 0x61a   : > { %v4873_v47 = vpop.f32.mrb[7].mxu1 }
 0x625   : > { %v3972_v50 = vpop.f32.mrb[8].mxu1 }
 0x626   : > { %v1472_v51 = vadd.f32 %v3972_v50, %v3560_v48  ;;  %v1466_v52 = vpop.f32.mrb[9].mxu1 }
 0x627   : > { %v1467_v54 = vadd.f32 %v3560_v48, %v1466_v52  ;;  %v1294_v48 = vld [vmem:[%s4660_s15 + $0x8] sm:$0xf] }
 0x628   : > { %v4304_v50 = vpack.c.bf16 %v1294_v48, %v1293_v45  ;;  %v3599_v52 = vld [vmem:[%s5186_s7 + $0x128] sm:$0xff] }
 0x629   : > { %v4286_v56 = vpack.c.bf16 %v1472_v51, %v1467_v54  ;;  %v3598_v51 = vld [vmem:[%s5186_s7 + $0x120] sm:$0xff] }
 0x62a   : > { %4306 = vmatprep.subr.msk.bf16.mxu0 %vm4901_vm0, %v4304_v50 }
 0x62b   : > { %4288 = vmatprep.subr.msk.bf16.mxu1 %vm4815_vm9, %v4286_v56 }
 0x62c   : > { %4291 = vmatpush3.bf16.xpose.msk.msra.mxu1 %vm4815_vm9, %v4286_v56 }
 0x62d   : > { %4294 = vmatprep.subr.msk.bf16.mxu1 %vm4820_vm11, %v4834_v5 }
 0x633   : > { %3993 = vmatmul.mubr.msk.f32.vlgmr.msra.gmra.mrb[10].mxu1 %vm5197_vm13, %v4809_v53  ;;  %vm5206_vm13 = vmmov %vm5201_vm1 }
 0x634   : > { %4297 = vmatpush3.bf16.msk.msra.mxu1 %vm4820_vm11, %v4834_v5 }
 0x635   : > { %4311 = vmatprep.subr.bf16.mxu1 %v4310_v18 }
 0x706   : > { %v3994_v49 = vpop.f32.mrb[10].mxu1 }
 0x707   : > { %v1653_v55 = vmul.f32 0.28867513, %v3994_v49  ;;  %v1643_v58 = vpop.f32.mrb[11].mxu1  ;;  %v4322_v49 = vpack.c.bf16 %v3599_v52, %v3598_v51  ;;  %v3632_v52 = vld [vmem:[%s5186_s7 + $0xa0] sm:$0xff] }
 0x708   : > { %v1652_v60 = vmul.f32 0.28867513, %v1643_v58  ;;  %v3601_v58 = vld [vmem:[%s5186_s7 + $0x138] sm:$0xff] }
 0x709   : > { %v1655_v61 = vsel %vm4840_vm8, %v1653_v55, -1e+30  ;;  %v3600_v55 = vld [vmem:[%s5186_s7 + $0x130] sm:$0xff] }
 0x70a   : > { %v1659_v63 = vsel %vm1188_vm6, %v1655_v61, -inf  ;;  %v1654_v0 = vsel %vm4844_vm10, %v1652_v60, -1e+30  ;;  %v4326_v60 = vpack.c.bf16 %v3601_v58, %v3600_v55 }
 0x70b   : > { %1660 = vmax.xlane.f32.xlu1 %v1659_v63  ;;  %v1656_v1 = vsel %vm1184_vm7, %v1654_v0, -inf  ;;  %v3602_v63 = vld [vmem:[%s5186_s7 + $0x140] sm:$0xff] }
 0x70c   : > { %1657 = vmax.xlane.f32.xlu0 %v1656_v1 }
 0x798   : > { %v1661_v53 = vpop.xlane.xlu1 %1660 }
 0x799   : > { %v1663_v3 = vsub.f32 %v1655_v61, %v1661_v53  ;;  %v1658_v5 = vpop.xlane.xlu0 %1657  ;;  %v3595_v61 = vld [vmem:[%s4655_s21 + $0x2] ss:$0 sm:$0xff] }
 0x79a   : > { %v1662_v7 = vsub.f32 %v1654_v0, %v1658_v5  ;;  %v3603_v0 = vld [vmem:[%s5186_s7 + $0x148] sm:$0xff] }
 0x79b   : > { %v1666_v8 = vmul.f32 1.442695, %v1663_v3 }
 0x79c   : > { %v1664_v9 = vmul.f32 1.442695, %v1662_v7  ;;  %v3615_v7 = vld [vmem:[%s4655_s21 + $0xa] ss:$0 sm:$0xff] }
 0x79d   : > { %4488 = vpow2.f32 %v1666_v8 }
 0x79e   : > { %4490 = vpow2.f32 %v1664_v9 }
 0x7a7   : > { %v4489_v11 = vpop.eup %4488 }
 0x7a8   : > { %v4491_v62 = vpop.eup %4490  ;;  %v1671_v14 = vsel %vm1188_vm6, %v4489_v11, 0.0 }
 0x7a9   : > { %1672 = vadd.xlane.f32.xlu1 %v1671_v14  ;;  %v1668_v15 = vsel %vm1184_vm7, %v4491_v62, 0.0  ;;  %v3605_v14 = vld [vmem:[%s4655_s21 + $0x6] ss:$0 sm:$0xff] }
 0x7aa   : > { %1669 = vadd.xlane.f32.xlu0 %v1668_v15 }
 0x836   : > { %v1673_v24 = vpop.xlane.xlu1 %1672 }
 0x837   : > { %4492 = vrcp.f32 %v1673_v24  ;;  %v1670_v25 = vpop.xlane.xlu0 %1669 }
 0x838   : > { %4494 = vrcp.f32 %v1670_v25 }
 0x841   : > { %v4493_v26 = vpop.eup %4492 }
 0x842   : > { %v4495_v29 = vpop.eup %4494  ;;  %v1677_v31 = vmul.f32 %v4493_v26, %v4489_v11 }
 0x843   : > { %v1676_v30 = vmul.f32 %v4495_v29, %v4491_v62 }
 0x845   : > { %3999 = vmatprep.mubr.msk.f32.mxu1 %vm1184_vm7, %v1676_v30 }
 0x846   : > { %4000 = vmatmul.mubr.msk.f32.vlgmr.msra.gmra.mrb[12].mxu1 %vm1184_vm7, %v1677_v31 }
 0x847   : > { %4313 = vmatpush3.bf16.msra.mxu1 %v4310_v18  ;;  %4028 = vmatprep.mubr.msk.f32.mxu1 %vm777_vm5, %v4762_v13 }
 0x848   : > { %4315 = vmatprep.subr.bf16.mxu1 %v4314_v32 }
 0x84b   : > { %4317 = vmatpush3.bf16.msra.mxu1 %v4314_v32 }
 0x84c   : > { %4319 = vmatprep.subr.bf16.mxu1 %v4318_v35 }
 0x84f   : > { %4321 = vmatpush3.bf16.msra.mxu1 %v4318_v35 }
 0x850   : > { %4335 = vmatprep.subr.bf16.mxu1 %v4334_v38 }
 0x852   : > { %4029 = vmatmul.mubr.msk.f32.vlgmr.msra.gmra.mrb[14].mxu1 %vm777_vm5, %v4773_v20 }
 0x853   : > { %4337 = vmatpush3.bf16.msra.mxu1 %v4334_v38  ;;  %4058 = vmatprep.mubr.msk.f32.mxu1 %vm777_vm5, %v4762_v13 }
 0x854   : > { %4339 = vmatprep.subr.bf16.mxu1 %v4338_v41 }
 0x857   : > { %4341 = vmatpush3.bf16.msra.mxu1 %v4338_v41  ;;  %v3631_v41 = vld [vmem:[%s5186_s7 + $0x98] sm:$0xff] }
 0x858   : > { %4343 = vmatprep.subr.bf16.mxu1 %v4342_v44  ;;  %v4364_v42 = vpack.c.bf16 %v3631_v41, %v3630_v40 }
 0x85b   : > { %4345 = vmatpush3.bf16.msra.mxu1 %v4342_v44  ;;  %v3626_v44 = vld [vmem:[%s4660_s15 + $0x28] sm:$0xf] }
 0x85c   : > { %v4358_v45 = vpack.c.bf16 %v3626_v44, %v3625_v43 }
 0x85e   : > { %4059 = vmatmul.mubr.msk.f32.vlgmr.msra.gmra.mrb[16].mxu1 %vm777_vm5, %v4773_v20 }
 0x919   : > { %v4001_v54 = vpop.f32.mrb[12].mxu1 }
 0x91a   : > { %v1753_v56 = vpop.f32.mrb[13].mxu1 }
 0x91b   : > { %4006 = vmatprep.mubr.msk.f32.mxu0 %vm5201_vm1, %v1753_v56 }
 0x91c   : > { %4007 = vmatmul.mubr.msk.f32.vlgmr.msra.gmra.mrb[6].mxu0 %vm5202_vm2, %v4001_v54  ;;  %v3633_v54 = vld [vmem:[%s5186_s7 + $0xa8] sm:$0xff]  ;;  %vm5209_vm2 = vmmov %vm5201_vm1 }
 0x91d   : > { %4309 = vmatpush3.bf16.msk.msra.mxu0 %vm4901_vm0, %v4304_v50  ;;  %4013 = vmatprep.mubr.msk.f32.mxu0 %vm5203_vm3, %v4873_v47  ;;  %v4330_v47 = vpack.c.bf16 %v3603_v0, %v3602_v63  ;;  %v4368_v58 = vpack.c.bf16 %v3633_v54, %v3632_v52  ;;  %v3650_v0 = vld [vmem:[%s5186_s7 + $0x210] sm:$0xff] }
 0x91e   : > { %4323 = vmatprep.subr.bf16.mxu0 %v4322_v49 }
 0x924   : > { %4014 = vmatmul.mubr.msk.f32.vlgmr.msra.gmra.mrb[6].mxu0 %vm5204_vm4, %v4871_v46 }
 0x925   : > { %v4030_v1 = vpop.f32.mrb[14].mxu1  ;;  %4325 = vmatpush3.bf16.msra.mxu0 %v4322_v49  ;;  %4043 = vmatprep.mubr.msk.f32.mxu0 %vm777_vm5, %v4762_v13 }
 0x926   : > { %v2021_v53 = vadd.f32 %v4030_v1, %v3595_v61  ;;  %v2015_v3 = vpop.f32.mrb[15].mxu1  ;;  %4327 = vmatprep.subr.bf16.mxu0 %v4326_v60  ;;  %v3651_v1 = vld [vmem:[%s5186_s7 + $0x218] sm:$0xff] }
 0x927   : > { %v2016_v5 = vadd.f32 %v3595_v61, %v2015_v3  ;;  %v3635_v61 = vld [vmem:[%s5186_s7 + $0xb8] sm:$0xff]  ;;  %v3652_v3 = vld [vmem:[%s5186_s7 + $0x220] sm:$0xff] }
 0x929   : > { %4329 = vmatpush3.bf16.msra.mxu0 %v4326_v60  ;;  %v3634_v60 = vld [vmem:[%s5186_s7 + $0xb0] sm:$0xff] }
 0x92a   : > { %4331 = vmatprep.subr.bf16.mxu0 %v4330_v47  ;;  %v4372_v63 = vpack.c.bf16 %v3635_v61, %v3634_v60 }
 0x92d   : > { %4333 = vmatpush3.bf16.msra.mxu0 %v4330_v47  ;;  %v3653_v47 = vld [vmem:[%s5186_s7 + $0x228] sm:$0xff] }
 0x930   : > { %4044 = vmatmul.mubr.msk.f32.vlgmr.msra.gmra.mrb[8].mxu0 %vm777_vm5, %v4773_v20 }
 0x931   : > { %v4060_v8 = vpop.f32.mrb[16].mxu1  ;;  %4065 = vmatprep.mubr.msk.f32.mxu0 %vm5205_vm12, %v2016_v5  ;;  %v4392_v5 = vpack.c.bf16 %v3653_v47, %v3652_v3 }
 0x932   : > { %v2201_v46 = vadd.f32 %v4060_v8, %v3615_v7  ;;  %v2195_v9 = vpop.f32.mrb[17].mxu1  ;;  %v3655_v8 = vld [vmem:[%s5186_s7 + $0x238] sm:$0xff] }
 0x933   : > { %v2196_v11 = vadd.f32 %v3615_v7, %v2195_v9  ;;  %v3654_v7 = vld [vmem:[%s5186_s7 + $0x230] sm:$0xff] }
 0x934   : > { %v3640_v9 = vld [vmem:[%s5186_s7 + $0x150] sm:$0xff] }
 0x935   : > { %v4352_v62 = vpack.c.bf16 %v2201_v46, %v2196_v11  ;;  %v4396_v46 = vpack.c.bf16 %v3655_v8, %v3654_v7  ;;  %v3641_v11 = vld [vmem:[%s5186_s7 + $0x158] sm:$0xff]  ;;  %v3672_v7 = vld [vmem:[%s624_s27] ss:$0 sm:$0xff] }
 0x937   : > { %4354 = vmatprep.subr.msk.bf16.mxu1 %vm4820_vm11, %v4352_v62 }
 0x938   : > { %4357 = vmatpush3.bf16.msk.msra.mxu1 %vm4820_vm11, %v4352_v62  ;;  %v4376_v62 = vpack.c.bf16 %v3641_v11, %v3640_v9 }
 0x939   : > { %4365 = vmatprep.subr.bf16.mxu1 %v4364_v42 }
 0xa03   : > { %v4045_v15 = vpop.f32.mrb[8].mxu0 }
 0xa04   : > { %v2111_v16 = vadd.f32 %v4045_v15, %v3605_v14  ;;  %v2105_v17 = vpop.f32.mrb[9].mxu0  ;;  %v3643_v15 = vld [vmem:[%s5186_s7 + $0x168] sm:$0xff] }
 0xa05   : > { %v2106_v18 = vadd.f32 %v3605_v14, %v2105_v17  ;;  %v3642_v14 = vld [vmem:[%s5186_s7 + $0x160] sm:$0xff] }
 0xa07   : > { %v4346_v19 = vpack.c.bf16 %v2111_v16, %v2106_v18  ;;  %v4380_v18 = vpack.c.bf16 %v3643_v15, %v3642_v14 }
 0xa09   : > { %4348 = vmatprep.subr.msk.bf16.mxu0 %vm4815_vm9, %v4346_v19 }
 0xa0a   : > { %4351 = vmatpush3.bf16.xpose.msk.msra.mxu0 %vm4815_vm9, %v4346_v19  ;;  %v3644_v19 = vld [vmem:[%s5186_s7 + $0x170] sm:$0xff] }
 0xa0b   : > { %4360 = vmatprep.subr.msk.bf16.mxu0 %vm4901_vm0, %v4358_v45 }
 0xa11   : > { %4066 = vmatmul.mubr.msk.f32.vlgmr.msra.gmra.mrb[10].mxu0 %vm5206_vm13, %v2021_v53  ;;  %v4388_v53 = vpack.c.bf16 %v3651_v1, %v3650_v0 }
 0xa12   : > { %4363 = vmatpush3.bf16.msk.msra.mxu0 %vm4901_vm0, %v4358_v45 }
 0xa13   : > { %4377 = vmatprep.subr.bf16.mxu0 %v4376_v62 }
 0xae4   : > { %v4067_v21 = vpop.f32.mrb[10].mxu0 }
 0xae5   : > { %v2292_v22 = vmul.f32 0.28867513, %v4067_v21  ;;  %v2282_v24 = vpop.f32.mrb[11].mxu0  ;;  %v3645_v21 = vld [vmem:[%s5186_s7 + $0x178] sm:$0xff] }
 0xae6   : > { %v2291_v25 = vmul.f32 0.28867513, %v2282_v24  ;;  %v3637_v24 = vld [vmem:[%s4655_s21 + $0x3] ss:$0 sm:$0xff] }
 0xae7   : > { %v2294_v26 = vsel %vm4840_vm8, %v2292_v22, -1e+30  ;;  %v4384_v22 = vpack.c.bf16 %v3645_v21, %v3644_v19 }
 0xae8   : > { %v2298_v27 = vsel %vm1188_vm6, %v2294_v26, -inf  ;;  %v2293_v28 = vsel %vm4844_vm10, %v2291_v25, -1e+30 }
 0xae9   : > { %2299 = vmax.xlane.f32.xlu1 %v2298_v27  ;;  %v2295_v29 = vsel %vm1184_vm7, %v2293_v28, -inf }
 0xaea   : > { %2296 = vmax.xlane.f32.xlu0 %v2295_v29  ;;  %v3657_v29 = vld [vmem:[%s4655_s21 + $0xb] ss:$0 sm:$0xff] }
 0xb76   : > { %v2300_v30 = vpop.xlane.xlu1 %2299 }
 0xb77   : > { %v2302_v31 = vsub.f32 %v2294_v26, %v2300_v30  ;;  %v2297_v32 = vpop.xlane.xlu0 %2296 }
 0xb78   : > { %v2301_v33 = vsub.f32 %v2293_v28, %v2297_v32 }
 0xb79   : > { %v2305_v34 = vmul.f32 1.442695, %v2302_v31 }
 0xb7a   : > { %v2303_v35 = vmul.f32 1.442695, %v2301_v33 }
 0xb7b   : > { %4496 = vpow2.f32 %v2305_v34  ;;  %v3647_v34 = vld [vmem:[%s4655_s21 + $0x7] ss:$0 sm:$0xff] }
 0xb7c   : > { %4498 = vpow2.f32 %v2303_v35 }
 0xb85   : > { %v4497_v36 = vpop.eup %4496 }
 0xb86   : > { %v4499_v37 = vpop.eup %4498  ;;  %v2310_v38 = vsel %vm1188_vm6, %v4497_v36, 0.0 }
 0xb87   : > { %2311 = vadd.xlane.f32.xlu1 %v2310_v38  ;;  %v2307_v39 = vsel %vm1184_vm7, %v4499_v37, 0.0 }
 0xb88   : > { %2308 = vadd.xlane.f32.xlu0 %v2307_v39 }
 0xc14   : > { %v2312_v48 = vpop.xlane.xlu1 %2311 }
 0xc15   : > { %4500 = vrcp.f32 %v2312_v48  ;;  %v2309_v50 = vpop.xlane.xlu0 %2308 }
 0xc16   : > { %4502 = vrcp.f32 %v2309_v50 }
 0xc1f   : > { %v4501_v51 = vpop.eup %4500 }
 0xc20   : > { %v4503_v56 = vpop.eup %4502  ;;  %v2316_v55 = vmul.f32 %v4501_v51, %v4497_v36 }
 0xc21   : > { %v2315_v49 = vmul.f32 %v4503_v56, %v4499_v37 }
 0xc23   : > { %4072 = vmatprep.mubr.msk.f32.mxu1 %vm1184_vm7, %v2315_v49 }
 0xc24   : > { %4073 = vmatmul.mubr.msk.f32.vlgmr.msra.gmra.mrb[18].mxu1 %vm1184_vm7, %v2316_v55  ;;  %v3667_v55 = vld [vmem:[%s4660_s15 + $0x30] sm:$0xff] }
 0xc25   : > { %4367 = vmatpush3.bf16.msra.mxu1 %v4364_v42  ;;  %4094 = vmatprep.mubr.msk.f32.mxu1 %vm777_vm5, %v4762_v13 }
 0xc26   : > { %4369 = vmatprep.subr.bf16.mxu1 %v4368_v58 }
 0xc29   : > { %4371 = vmatpush3.bf16.msra.mxu1 %v4368_v58  ;;  %v3668_v58 = vld [vmem:[%s4660_s15 + $0x38] sm:$0xf] }
 0xc2a   : > { %4373 = vmatprep.subr.bf16.mxu1 %v4372_v63  ;;  %v4412_v60 = vpack.c.bf16 %v3668_v58, %v3667_v55  ;;  %v3208_v55 = vld [vmem:[%s4684_s26 + $0x8] sm:$0xff] }
 0xc2d   : > { %4375 = vmatpush3.bf16.msra.mxu1 %v4372_v63 }
 0xc2e   : > { %4389 = vmatprep.subr.bf16.mxu1 %v4388_v53 }
 0xc30   : > { %4095 = vmatmul.mubr.msk.f32.vlgmr.msra.gmra.mrb[20].mxu1 %vm777_vm5, %v4773_v20 }
 0xc31   : > { %4391 = vmatpush3.bf16.msra.mxu1 %v4388_v53  ;;  %4124 = vmatprep.mubr.msk.f32.mxu1 %vm777_vm5, %v4762_v13 }
 0xc32   : > { %4393 = vmatprep.subr.bf16.mxu1 %v4392_v5 }
 0xc35   : > { %4395 = vmatpush3.bf16.msra.mxu1 %v4392_v5 }
 0xc36   : > { %4397 = vmatprep.subr.bf16.mxu1 %v4396_v46 }
 0xc39   : > { %4399 = vmatpush3.bf16.msra.mxu1 %v4396_v46 }
 0xc3c   : > { %4125 = vmatmul.mubr.msk.f32.vlgmr.msra.gmra.mrb[22].mxu1 %vm777_vm5, %v4773_v20 }
 0xcf7   : > { %v4074_v16 = vpop.f32.mrb[18].mxu1 }
 0xcf8   : > { %v2392_v17 = vpop.f32.mrb[19].mxu1 }
 0xcf9   : > { %4079 = vmatprep.mubr.msk.f32.mxu0 %vm5207_vm14, %v2392_v17 }
 0xcfa   : > { %4080 = vmatmul.mubr.msk.f32.vlgmr.msra.gmra.mrb[6].mxu0 %vm5208_vm15, %v4074_v16 }
 0xcfb   : > { %4379 = vmatpush3.bf16.msra.mxu0 %v4376_v62  ;;  %4109 = vmatprep.mubr.msk.f32.mxu0 %vm777_vm5, %v4762_v13  ;;  %v4520_v62 = vld [vmem:[#allocation2 + $0x8] sm:$0x3] }
 0xcfc   : > { %4381 = vmatprep.subr.bf16.mxu0 %v4380_v18 }
 0xcff   : > { %4383 = vmatpush3.bf16.msra.mxu0 %v4380_v18 }
 0xd00   : > { %4385 = vmatprep.subr.bf16.mxu0 %v4384_v22 }
 0xd03   : > { %v4096_v25 = vpop.f32.mrb[20].mxu1  ;;  %4387 = vmatpush3.bf16.msra.mxu0 %v4384_v22 }
 0xd04   : > { %v2577_v26 = vadd.f32 %v4096_v25, %v3637_v24  ;;  %v2571_v27 = vpop.f32.mrb[21].mxu1 }
 0xd05   : > { %v2572_v28 = vadd.f32 %v3637_v24, %v2571_v27 }
 0xd06   : > { %4110 = vmatmul.mubr.msk.f32.vlgmr.msra.gmra.mrb[12].mxu0 %vm777_vm5, %v4773_v20 }
 0xd07   : > { %4131 = vmatprep.mubr.msk.f32.mxu0 %vm5201_vm1, %v2572_v28 }
 0xd0f   : > { %v4126_v30 = vpop.f32.mrb[22].mxu1 }
 0xd10   : > { %v2757_v31 = vadd.f32 %v4126_v30, %v3657_v29  ;;  %v2751_v13 = vpop.f32.mrb[23].mxu1  ;;  %v3095_v30 = vld [vmem:[%s4675_s29] sm:$0xff] }
 0xd11   : > { %v2752_v32 = vadd.f32 %v3657_v29, %v2751_v13 }
 0xd13   : > { %v4406_v33 = vpack.c.bf16 %v2757_v31, %v2752_v32  ;;  %v3096_v31 = vld [vmem:[%s4675_s29 + $0x8] sm:$0xff]  ;;  %v3097_v32 = vld [vmem:[%s4675_s29 + $0x10] sm:$0xff] }
 0xd14   : > { %v4418_v13 = vpack.c.bf16 %v3096_v31, %v3095_v30 }
 0xd16   : > { %4419 = vmatprep.subr.bf16.mxu1 %v4418_v13 }
 0xd17   : > { %4421 = vmatpush3.bf16.msra.mxu1 %v4418_v13 }
 0xdd9   : > { %v4111_v35 = vpop.f32.mrb[12].mxu0 }
 0xdda   : > { %v2667_v36 = vadd.f32 %v4111_v35, %v3647_v34  ;;  %v2661_v37 = vpop.f32.mrb[13].mxu0  ;;  %v3099_v35 = vld [vmem:[%s4675_s29 + $0x20] sm:$0xff] }
 0xddb   : > { %v2662_v38 = vadd.f32 %v3647_v34, %v2661_v37 }
 0xddd   : > { %v4400_v39 = vpack.c.bf16 %v2667_v36, %v2662_v38  ;;  %v3100_v36 = vld [vmem:[%s4675_s29 + $0x28] sm:$0xff] }
 0xdde   : > { %v4426_v37 = vpack.c.bf16 %v3100_v36, %v3099_v35 }
 0xddf   : > { %4402 = vmatprep.subr.msk.bf16.mxu0 %vm4815_vm9, %v4400_v39 }
 0xde0   : > { %4405 = vmatpush3.bf16.xpose.msk.msra.mxu0 %vm4815_vm9, %v4400_v39  ;;  %vm5211_vm9 = vmmov %vm5201_vm1 }
 0xde1   : > { %4408 = vmatprep.subr.msk.bf16.mxu0 %vm4820_vm11, %v4406_v33 }
 0xde7   : > { %4132 = vmatmul.mubr.msk.f32.vlgmr.msra.gmra.mrb[14].mxu0 %vm5209_vm2, %v2577_v26 }
 0xde8   : > { %4411 = vmatpush3.bf16.msk.msra.mxu0 %vm4820_vm11, %v4406_v33  ;;  %v3098_v33 = vld [vmem:[%s4675_s29 + $0x18] sm:$0xff]  ;;  %vm3219_vm11 = vcmask 785408  }
 0xde9   : > { %4414 = vmatprep.subr.msk.bf16.mxu0 %vm4901_vm0, %v4412_v60  ;;  %v4422_v34 = vpack.c.bf16 %v3098_v33, %v3097_v32 }
 0xdeb   : > { %4423 = vmatprep.subr.bf16.mxu1 %v4422_v34 }
 0xdec   : > { %4425 = vmatpush3.bf16.msra.mxu1 %v4422_v34 }
 0xded   : > { %4427 = vmatprep.subr.bf16.mxu1 %v4426_v37 }
 0xdf0   : > { %4429 = vmatpush3.bf16.msra.mxu1 %v4426_v37 }
 0xeba   : > { %v4133_v20 = vpop.f32.mrb[14].mxu0 }
 0xebb   : > { %v2848_v40 = vmul.f32 0.28867513, %v4133_v20  ;;  %v2838_v41 = vpop.f32.mrb[15].mxu0 }
 0xebc   : > { %v2847_v42 = vmul.f32 0.28867513, %v2838_v41 }
 0xebd   : > { %v2850_v43 = vsel %vm4840_vm8, %v2848_v40, -1e+30 }
 0xebe   : > { %v2854_v44 = vsel %vm1188_vm6, %v2850_v43, -inf  ;;  %v2849_v57 = vsel %vm4844_vm10, %v2847_v42, -1e+30 }
 0xebf   : > { %2855 = vmax.xlane.f32.xlu1 %v2854_v44  ;;  %v2851_v45 = vsel %vm1184_vm7, %v2849_v57, -inf  ;;  %v3091_v44 = vsub.s32 3, %v4752_v2 }
 0xec0   : > { %2852 = vmax.xlane.f32.xlu0 %v2851_v45 }
 0xf4c   : > { %v2856_v59 = vpop.xlane.xlu1 %2855 }
 0xf4d   : > { %v2858_v48 = vsub.f32 %v2850_v43, %v2856_v59  ;;  %v2853_v50 = vpop.xlane.xlu0 %2852  ;;  %v3085_v43 = vsub.s32 2, %v4752_v2 }
 0xf4e   : > { %v2857_v51 = vsub.f32 %v2849_v57, %v2853_v50  ;;  %v4522_v57 = vld [vmem:[%s5187_s6] sm:$0xf] }
 0xf4f   : > { %v2861_v52 = vmul.f32 1.442695, %v2858_v48  ;;  %v3086_v45 = vrot.slane %v4522_v57, %v3085_v43 }
 0xf50   : > { %v2859_v54 = vmul.f32 1.442695, %v2857_v51 }
 0xf51   : > { %4504 = vpow2.f32 %v2861_v52  ;;  %v3092_v52 = vrot.slane %v4522_v57, %v3091_v44 }
 0xf52   : > { %4506 = vpow2.f32 %v2859_v54 }
 0xf5b   : > { %v4505_v10 = vpop.eup %4504 }
 0xf5c   : > { %v4507_v56 = vpop.eup %4506  ;;  %v2866_v49 = vsel %vm1188_vm6, %v4505_v10, 0.0  ;;  %vm5210_vm6 = vmmov %vm5201_vm1 }
 0xf5d   : > { %2867 = vadd.xlane.f32.xlu1 %v2866_v49  ;;  %v2863_v12 = vsel %vm1184_vm7, %v4507_v56, 0.0 }
 0xf5e   : > { %2864 = vadd.xlane.f32.xlu0 %v2863_v12  ;;  %v3207_v12 = vld [vmem:[%s4684_s26] sm:$0xff] }
 0xf5f   : > { %v4430_v58 = vpack.c.bf16 %v3208_v55, %v3207_v12 }
 0xfea   : > { %v2868_v61 = vpop.xlane.xlu1 %2867 }
 0xfeb   : > { %4508 = vrcp.f32 %v2868_v61  ;;  %v2865_v63 = vpop.xlane.xlu0 %2864  ;;  %v3210_v61 = vld [vmem:[%s4684_s26 + $0x18] sm:$0xff] }
 0xfec   : > { %4510 = vrcp.f32 %v2865_v63 }
 0xff5   : > { %v4509_v0 = vpop.eup %4508 }
 0xff6   : > { %v4511_v1 = vpop.eup %4510  ;;  %v2872_v3 = vmul.f32 %v4509_v0, %v4505_v10  ;;  %v3211_v0 = vld [vmem:[%s4684_s26 + $0x20] sm:$0xff] }
 0xff7   : > { %v2871_v53 = vmul.f32 %v4511_v1, %v4507_v56  ;;  %v3212_v1 = vld [vmem:[%s4684_s26 + $0x28] sm:$0xff] }
 0xff9   : > { %4138 = vmatprep.mubr.msk.f32.mxu0 %vm1184_vm7, %v2871_v53  ;;  %v4438_v53 = vpack.c.bf16 %v3212_v1, %v3211_v0 }
 0xffa   : > { %4139 = vmatmul.mubr.msk.f32.vlgmr.msra.gmra.mrb[16].mxu0 %vm1184_vm7, %v2872_v3  ;;  %vm5212_vm7 = vcmask 386048   ;;  %v3213_v3 = vld [vmem:[%s4684_s26 + $0x30] sm:$0xff] }
 0xffb   : > { %4417 = vmatpush3.bf16.msk.msra.mxu0 %vm4901_vm0, %v4412_v60  ;;  %vm5213_vm10 = vmmov %vm5212_vm7  ;;  %v3209_v60 = vld [vmem:[%s4684_s26 + $0x10] sm:$0xff]  ;;  %vm5216_vm0 = vcmask (!%p3679_p5), 386048  }
 0xffc   : > { %4431 = vmatprep.subr.bf16.mxu0 %v4430_v58  ;;  %v4434_v63 = vpack.c.bf16 %v3210_v61, %v3209_v60  ;;  %vm5214_vm8 = vmmov %vm5212_vm7 }
0x10cd   : > { %v4140_v47 = vpop.f32.mrb[16].mxu0 }
0x10ce   : > { %v2948_v5 = vpop.f32.mrb[17].mxu0 }
0x10cf   : > { %4145 = vmatprep.mubr.msk.f32.mxu0 %vm5210_vm6, %v2948_v5 }
0x10d0   : > { %4146 = vmatmul.mubr.msk.f32.vlgmr.msra.gmra.mrb[6].mxu0 %vm5211_vm9, %v4140_v47  ;;  %v3214_v47 = vld [vmem:[%s4684_s26 + $0x38] sm:$0xff] }
0x10d1   : > { %4433 = vmatpush3.bf16.msra.mxu0 %v4430_v58  ;;  %v4442_v5 = vpack.c.bf16 %v3214_v47, %v3213_v3 }
0x10d2   : > { %4435 = vmatprep.subr.bf16.mxu0 %v4434_v63 }
0x10d5   : > { %4437 = vmatpush3.bf16.msra.mxu0 %v4434_v63 }
0x10d6   : > { %4439 = vmatprep.subr.bf16.mxu0 %v4438_v53 }
0x10d9   : > { %4441 = vmatpush3.bf16.msra.mxu0 %v4438_v53 }
0x10da   : > { %4443 = vmatprep.subr.bf16.mxu0 %v4442_v5 }
0x10dd   : > { %4445 = vmatpush3.bf16.msra.mxu0 %v4442_v5 }
0x11a3   : > { %v4147_v8 = vpop.f32.mrb[6].mxu0 }
0x11a4   : > { %v3054_v46 = vadd.f32 %v4147_v8, %v3672_v7  ;;  %v3035_v9 = vpop.f32.mrb[7].mxu0  ;;  %v3216_v8 = vld [vmem:[%s4684_s26 + $0x48] sm:$0xff] }
0x11a5   : > { %v3053_v11 = vadd.f32 %v3672_v7, %v3035_v9  ;;  %v3215_v7 = vld [vmem:[%s4684_s26 + $0x40] sm:$0xff]  ;;  %v3217_v9 = vld [vmem:[%s4684_s26 + $0x50] sm:$0xff] }
0x11a6   : > { %v5048_v14 = vadd.f32 %v4520_v62, %v3054_v46  ;;  %v4446_v46 = vpack.c.bf16 %v3216_v8, %v3215_v7 }
0x11a7   : > { %v5050_v15 = vadd.f32 %v4521_v23, %v3053_v11  ;;  %v3218_v11 = vld [vmem:[%s4684_s26 + $0x58] sm:$0xff]  ;;  %v3673_v23 = vld [vmem:[%s632_s25] ss:$0 sm:$0xff] }
0x11a8   : > { %v3060_v16 = vsel %vm5212_vm7, %v5048_v14, 0.0  ;;  %4447 = vmatprep.subr.bf16.mxu0 %v4446_v46  ;;  %v4450_v62 = vpack.c.bf16 %v3218_v11, %v3217_v9 }
0x11a9   : > { %3061 = vadd.xlane.f32.xlu1 %v3060_v16  ;;  %v3057_v17 = vsel %vm777_vm5, %v5050_v15, 0.0  ;;  %4449 = vmatpush3.bf16.msra.mxu0 %v4446_v46 }
0x11aa   : > { %3058 = vadd.xlane.f32.xlu0 %v3057_v17  ;;  %4451 = vmatprep.subr.bf16.mxu0 %v4450_v62 }
0x11ad   : > { %4453 = vmatpush3.bf16.msra.mxu0 %v4450_v62 }
0x1236   : > { %v3062_v18 = vpop.xlane.xlu1 %3061 }
0x1237   : > { %v3064_v19 = vmul.f32 0.020833334, %v3062_v18  ;;  %v3059_v21 = vpop.xlane.xlu0 %3058 }
0x1238   : > { %v3063_v22 = vmul.f32 0.020833334, %v3059_v21 }
0x1239   : > { %v3066_v24 = vsub.f32 %v5048_v14, %v3064_v19 }
0x123a   : > { %v3065_v25 = vsub.f32 %v5050_v15, %v3063_v22 }
0x123b   : > { %v3068_v26 = vmul.f32 %v3066_v24, %v3066_v24 }
0x123c   : > { %v3067_v27 = vmul.f32 %v3065_v25, %v3065_v25 }
0x123d   : > { %v3072_v28 = vsel %vm5213_vm10, %v3068_v26, 0.0 }
0x123e   : > { %3073 = vadd.xlane.f32.xlu1 %v3072_v28  ;;  %v3069_v29 = vsel %vm777_vm5, %v3067_v27, 0.0 }
0x123f   : > { %3070 = vadd.xlane.f32.xlu0 %v3069_v29 }
0x12cb   : > { %v3074_v38 = vpop.xlane.xlu1 %3073 }
0x12cc   : > { %v3076_v39 = vmul.f32 0.020833334, %v3074_v38  ;;  %v3071_v20 = vpop.xlane.xlu0 %3070 }
0x12cd   : > { %v3075_v40 = vmul.f32 0.020833334, %v3071_v20  ;;  %v3678_v20 = vld [vmem:[%s640_s5] ss:$0 sm:$0xff] }
0x12ce   : > { %v3078_v41 = vadd.f32 1e-05, %v3076_v39 }
0x12cf   : > { %v3077_v42 = vadd.f32 1e-05, %v3075_v40 }
0x12d0   : > { %4512 = vrsqrt.f32 %v3078_v41 }
0x12d1   : > { %4514 = vrsqrt.f32 %v3077_v42 }
0x12da   : > { %v4513_v59 = vpop.eup %4512 }
0x12db   : > { %v4515_v48 = vpop.eup %4514  ;;  %v3082_v50 = vmul.f32 %v4513_v59, %v3066_v24 }
0x12dc   : > { %v3081_v51 = vmul.f32 %v4515_v48, %v3065_v25 }
0x12dd   : > { %v3088_v54 = vmul.f32 %v3086_v45, %v3082_v50 }
0x12de   : > { %v3087_v10 = vmul.f32 %v3086_v45, %v3081_v51 }
0x12df   : > { %v3094_v49 = vadd.f32 %v3092_v52, %v3088_v54 }
0x12e0   : > { %v3093_v56 = vadd.f32 %v3092_v52, %v3087_v10 }
0x12e2   : > { %4160 = vmatprep.mubr.msk.f32.mxu1 %vm777_vm5, %v3093_v56 }
0x12e3   : > { %4161 = vmatmul.mubr.msk.f32.vlgmr.msra.gmra.mrb[24].mxu1 %vm777_vm5, %v3094_v49 }
0x13b6   : > { %v4162_v16 = vpop.f32.mrb[24].mxu1 }
0x13b7   : > { %v3186_v17 = vadd.f32 %v4162_v16, %v3673_v23  ;;  %v3180_v18 = vpop.f32.mrb[25].mxu1 }
0x13b8   : > { %v3181_v19 = vadd.f32 %v3673_v23, %v3180_v18 }
0x13b9   : > { %v3190_v21 = vmul.f32 %v3186_v17, %v3186_v17 }
0x13ba   : > { %v3189_v22 = vmul.f32 %v3181_v19, %v3181_v19 }
0x13bb   : > { %v3192_v24 = vmul.f32 %v3190_v21, %v3186_v17 }
0x13bc   : > { %v3191_v25 = vmul.f32 %v3189_v22, %v3181_v19 }
0x13bd   : > { %v3194_v26 = vmul.f32 0.044715, %v3192_v24 }
0x13be   : > { %v3193_v27 = vmul.f32 0.044715, %v3191_v25 }
0x13bf   : > { %v3196_v28 = vadd.f32 %v3194_v26, %v3186_v17 }
0x13c0   : > { %v3195_v29 = vadd.f32 %v3193_v27, %v3181_v19 }
0x13c1   : > { %v3198_v30 = vmul.f32 0.7978846, %v3196_v28 }
0x13c2   : > { %v3197_v31 = vmul.f32 0.7978846, %v3195_v29 }
0x13c3   : > { %4516 = vtanh.f32 %v3198_v30 }
0x13c4   : > { %4518 = vtanh.f32 %v3197_v31 }
0x13cd   : > { %v4517_v13 = vpop.eup %4516 }
0x13ce   : > { %v4519_v32 = vpop.eup %4518  ;;  %v3202_v33 = vadd.f32 1.0, %v4517_v13 }
0x13cf   : > { %v3201_v34 = vadd.f32 1.0, %v4519_v32 }
0x13d0   : > { %v3204_v35 = vmul.f32 0.5, %v3202_v33 }
0x13d1   : > { %v3203_v36 = vmul.f32 0.5, %v3201_v34 }
0x13d2   : > { %v3206_v38 = vmul.f32 %v3204_v35, %v3186_v17 }
0x13d3   : > { %v3205_v37 = vmul.f32 %v3203_v36, %v3181_v19 }
0x13d5   : > { %4187 = vmatprep.mubr.msk.f32.mxu0 %vm3219_vm11, %v3205_v37 }
0x13d6   : > { %4188 = vmatmul.mubr.msk.f32.vlgmr.msra.gmra.mrb[18].mxu0 %vm3219_vm11, %v3206_v38 }
0x14a9   : > { %v4189_v39 = vpop.f32.mrb[18].mxu0  ;;  %3317 = sbr.rel (%p3679_p5) target bundleno = 5297 (0x14b1), region = 88 }
0x14aa   : > { %v3302_v40 = vadd.f32 %v4189_v39, %v5048_v14  ;;  %v3292_v41 = vpop.f32.mrb[19].mxu0 }
0x14ab   : > { %v3301_v42 = vadd.f32 %v3292_v41, %v5050_v15 }
0x14ac   : > { %v3311_v43 = vadd.f32 %v3678_v20, %v3302_v40 }
0x14ad   : > { %v3310_v44 = vadd.f32 %v3678_v20, %v3301_v42 }
0x14ae   : > { %3313 = vst.msk [vmem:[#allocation2 + $0x8] sm:$0x3] %vm5214_vm8, %v3311_v43 }
0x14af   : > { %3312 = vst.msk [vmem:[#allocation2] sm:$0xff] %vm777_vm5, %v3310_v44  ;;  %3318 = vst.msk [vmem:[%s5215_s19] sm:$0xff] (!%p3679_p5), %vm777_vm5, %v3310_v44 }
0x14b0   : > { %3319 = vst.msk [vmem:[%s5215_s19 + $0x8] sm:$0x3] %vm5216_vm0, %v3311_v43 }
0x14b1 PF: > { %p3680_p6 = scmp.ne.s32.totalorder %s4630_s22, 5 }
0x14b2   : > { %s5217_s18 = sld [smem:[#allocation10_spill]] (!%p3680_p6)  ;;  %vm5218_vm3 = vcmask (!%p3680_p6), 386048  }
0x14b3   : > { %3323 = sbr.rel (%p3680_p6) target bundleno = 5306 (0x14ba), region = 92 }
0x14b8   : > { %3681 = vst.msk [vmem:[%s5217_s18 + $0x10] sm:$0xff] (!%p3680_p6), %vm777_vm5, %v3310_v44 }
0x14b9   : > { %3682 = vst.msk [vmem:[%s5217_s18 + $0x18] sm:$0x3] (!%p3680_p6), %vm5218_vm3, %v3311_v43 }
0x14ba PF: > { %p3683_p7 = scmp.ne.s32.totalorder %s4630_s22, 2 }
0x14bb   : > { %s5219_s6 = sld [smem:[#allocation10_spill]] (!%p3683_p7)  ;;  %vm5220_vm4 = vcmask (!%p3683_p7), 386048  }
0x14bc   : > { %3330 = sbr.rel (%p3683_p7) target bundleno = 5315 (0x14c3), region = 96 }
0x14c1   : > { %3684 = vst.msk [vmem:[%s5219_s6 + $0x20] sm:$0xff] (!%p3683_p7), %vm777_vm5, %v3310_v44 }
0x14c2   : > { %3685 = vst.msk [vmem:[%s5219_s6 + $0x28] sm:$0x3] (!%p3683_p7), %vm5220_vm4, %v3311_v43 }
0x14c3 PF: > { %p3686_p8 = scmp.ne.s32.totalorder %s4630_s22, 11 }
0x14c4   : > { %v3339_v14 = vsel (!%p3686_p8), %vm777_vm5, %v3310_v44, 0.0  ;;  %vm5221_vm12 = vcmask (!%p3686_p8), 386048   ;;  %s5223_s29 = sld [smem:[#allocation7_spill]] (!%p3686_p8)  ;;  %s5224_s17 = sld [smem:[#allocation11_spill]] (!%p3686_p8) }
0x14c5   : > { %3337 = sbr.rel (%p3686_p8) target bundleno = 5634 (0x1602), region = 100  ;;  %3340 = vadd.xlane.f32.xlu0 (!%p3686_p8), %v3339_v14  ;;  %v3342_v15 = vsel (!%p3686_p8), %vm5221_vm12, %v3311_v43, 0.0  ;;  %vm5222_vm13 = vmmov (!%p3686_p8), %vm5221_vm12 }
0x14c6   : > { %vm5225_vm14 = vmmov (!%p3686_p8), %vm5221_vm12 }
0x14c9   : > { %3343 = vadd.xlane.f32.xlu0 (!%p3686_p8), %v3342_v15 }
0x14ca   : > { %v3338_v63 = vld [vmem:[%s5223_s29] sm:$0x3] (!%p3686_p8) }
0x14cb   : > { %v3368_v0 = vrot.slane (!%p3686_p8), %v3338_v63, %v808_v4  ;;  %v3374_v3 = vrot.slane (!%p3686_p8), %v3338_v63, %v814_v6 }
0x1552   : > { %v3341_v57 = vpop.xlane.xlu0 %3340 }
0x1553   : > { %v3345_v45 = vmul.f32 0.020833334, %v3341_v57 }
0x1555   : > { %v3347_v59 = vsub.f32 %v3310_v44, %v3345_v45 }
0x1556   : > { %v3344_v48 = vpop.xlane.xlu0 %3343 }
0x1557   : > { %v3346_v50 = vmul.f32 0.020833334, %v3344_v48  ;;  %v3349_v51 = vmul.f32 %v3347_v59, %v3347_v59 }
0x1559   : > { %v3348_v52 = vsub.f32 %v3311_v43, %v3346_v50  ;;  %v3351_v54 = vsel %vm777_vm5, %v3349_v51, 0.0 }
0x155a   : > { %3352 = vadd.xlane.f32.xlu1 %v3351_v54 }
0x155b   : > { %v3350_v10 = vmul.f32 %v3348_v52, %v3348_v52 }
0x155d   : > { %v3354_v56 = vsel %vm5222_vm13, %v3350_v10, 0.0 }
0x155e   : > { %3355 = vadd.xlane.f32.xlu1 %v3354_v56 }
0x15e7   : > { %v3353_v49 = vpop.xlane.xlu1 %3352 }
0x15e8   : > { %v3357_v12 = vmul.f32 0.020833334, %v3353_v49 }
0x15ea   : > { %v3359_v55 = vadd.f32 1e-05, %v3357_v12 }
0x15eb   : > { %v3356_v58 = vpop.xlane.xlu1 %3355 }
0x15ec   : > { %4523 = vrsqrt.f32 %v3359_v55  ;;  %v3358_v60 = vmul.f32 0.020833334, %v3356_v58 }
0x15ee   : > { %v3360_v61 = vadd.f32 1e-05, %v3358_v60 }
0x15f0   : > { %4525 = vrsqrt.f32 %v3360_v61 }
0x15f6   : > { %v4524_v1 = vpop.eup %4523 }
0x15f7   : > { %v3363_v53 = vmul.f32 %v4524_v1, %v3347_v59 }
0x15f9   : > { %v3369_v47 = vmul.f32 %v3368_v0, %v3363_v53 }
0x15fa   : > { %v4526_v5 = vpop.eup %4525 }
0x15fb   : > { %v3375_v7 = vadd.f32 %v3374_v3, %v3369_v47  ;;  %v3364_v8 = vmul.f32 %v4526_v5, %v3348_v52 }
0x15fd   : > { %3377 = vst.msk [vmem:[%s5224_s17] sm:$0xff] %vm777_vm5, %v3375_v7  ;;  %v3370_v46 = vmul.f32 %v3368_v0, %v3364_v8 }
0x15ff   : > { %v3376_v9 = vadd.f32 %v3374_v3, %v3370_v46 }
0x1601   : > { %3378 = vst.msk [vmem:[%s5224_s17 + $0x8] sm:$0x3] %vm5225_vm14, %v3376_v9 }
0x1602 PF: > { %s5226_s23 = sld [smem:[#allocation3_spill]] }
0x1608   : > { %s27_s21 = sadd.s32 1, %s5226_s23  }
0x1609   : > { %p24_p9 = scmp.ge.s32.totalorder %s27_s21, 14  }
0x160b   :  { %26 = sbr.rel (!%p24_p9) target bundleno = 7 (0x7), region = 185 }

// kernel: hi_end_mae_forward.3
= control target key start
LH: loop header
LB: loop body
LE: loop exit
PB: predicated region body
PF: predicated region fallthrough
CT: control target
= control target key end

     0   :  { %s6723_s0 = inlined_call_operand.vmem [shape: f32[10,48], index: 0, kind: input, shape index: {}]   ;;  %s6724_s1 = inlined_call_operand.vmem [shape: f32[48,24], index: 1, kind: input, shape index: {}]   ;;  %s6725_s2 = inlined_call_operand.vmem [shape: f32[1,24], index: 2, kind: input, shape index: {}]   ;;  %s6726_s3 = inlined_call_operand.vmem [shape: f32[1,24], index: 3, kind: input, shape index: {}]   ;;  %s6727_s4 = inlined_call_operand.vmem [shape: f32[16,24], index: 4, kind: input, shape index: {}]   ;;  %s6728_s5 = inlined_call_operand.vmem [shape: f32[8,64], index: 5, kind: input, shape index: {}]   ;;  %s6729_s6 = inlined_call_operand.vmem [shape: f32[2,24], index: 6, kind: input, shape index: {}]   ;;  %s6730_s7 = inlined_call_operand.vmem [shape: f32[24,64], index: 7, kind: input, shape index: {}]   ;;  %s6731_s8 = inlined_call_operand.vmem [shape: f32[1,64], index: 8, kind: input, shape index: {}]   ;;  %s6732_s9 = inlined_call_operand.vmem [shape: f32[3,10,48], index: 9, kind: input, shape index: {}]   ;;  %s6733_s10 = inlined_call_operand.vmem [shape: f32[3,48,24], index: 10, kind: input, shape index: {}]   ;;  %s6734_s11 = inlined_call_operand.vmem [shape: f32[3,1,24], index: 11, kind: input, shape index: {}]   ;;  %s6735_s12 = inlined_call_operand.vmem [shape: f32[3,8,24], index: 12, kind: input, shape index: {}]   ;;  %s6736_s13 = inlined_call_operand.vmem [shape: f32[3,6,24,12], index: 13, kind: input, shape index: {}]   ;;  %s6737_s14 = inlined_call_operand.vmem [shape: f32[3,6,1,12], index: 14, kind: input, shape index: {}]   ;;  %s6738_s15 = inlined_call_operand.vmem [shape: f32[3,2,12,24], index: 15, kind: input, shape index: {}]   ;;  %s6739_s16 = inlined_call_operand.vmem [shape: f32[3,1,24], index: 16, kind: input, shape index: {}]   ;;  %s6740_s17 = inlined_call_operand.vmem [shape: f32[3,6,24,12], index: 17, kind: input, shape index: {}]   ;;  %s6741_s18 = inlined_call_operand.vmem [shape: f32[3,6,1,12], index: 18, kind: input, shape index: {}]   ;;  %s6742_s19 = inlined_call_operand.vmem [shape: f32[3,2,12,24], index: 19, kind: input, shape index: {}]   ;;  %s6743_s20 = inlined_call_operand.vmem [shape: f32[3,1,24], index: 20, kind: input, shape index: {}]   ;;  %s6744_s21 = inlined_call_operand.vmem [shape: f32[3,24,48], index: 21, kind: input, shape index: {}]   ;;  %s6745_s22 = inlined_call_operand.vmem [shape: f32[3,1,48], index: 22, kind: input, shape index: {}]   ;;  %s6746_s23 = inlined_call_operand.vmem [shape: f32[3,48,24], index: 23, kind: input, shape index: {}]   ;;  %s6747_s24 = inlined_call_operand.vmem [shape: f32[3,1,24], index: 24, kind: input, shape index: {}]   ;;  %s6748_s25 = inlined_call_operand.hbm [shape: f32[1,1], index: 25, kind: output, shape index: {}]  }
   0x1   :  { %6764 = sst [smem:[#allocation11_spill]] %s6723_s0 }
   0x2   :  { %6765 = sst [smem:[#allocation12_spill]] %s6724_s1 }
   0x3   :  { %6766 = sst [smem:[#allocation13_spill]] %s6725_s2 }
   0x4   :  { %6767 = sst [smem:[#allocation14_spill]] %s6726_s3 }
   0x5   :  { %6768 = sst [smem:[#allocation15_spill]] %s6727_s4 }
   0x6   :  { %6769 = sst [smem:[#allocation16_spill]] %s6728_s5 }
   0x7   :  { %6770 = sst [smem:[#allocation17_spill]] %s6729_s6 }
   0x8   :  { %6771 = sst [smem:[#allocation18_spill]] %s6730_s7 }
   0x9   :  { %6772 = sst [smem:[#allocation19_spill]] %s6731_s8 }
   0xa   :  { %6773 = sst [smem:[#allocation20_spill]] %s6732_s9 }
   0xb   :  { %6774 = sst [smem:[#allocation21_spill]] %s6733_s10 }
   0xc   :  { %6775 = sst [smem:[#allocation22_spill]] %s6734_s11 }
   0xd   :  { %6776 = sst [smem:[#allocation23_spill]] %s6735_s12 }
   0xe   :  { %6777 = sst [smem:[#allocation24_spill]] %s6736_s13 }
   0xf   :  { %6778 = sst [smem:[#allocation25_spill]] %s6737_s14 }
  0x10   :  { %6779 = sst [smem:[#allocation26_spill]] %s6738_s15 }
  0x11   :  { %6780 = sst [smem:[#allocation27_spill]] %s6739_s16 }
  0x12   :  { %6781 = sst [smem:[#allocation28_spill]] %s6740_s17 }
  0x13   :  { %6782 = sst [smem:[#allocation29_spill]] %s6748_s25 }
  0x14   :  { %30 = vsyncpa [#allocation4], 0  ;;  %s5781_s29 = smov 0  }
  0x15 LB: > { %6783 = sst [smem:[#allocation6_spill]] %s5641_s29  ;;  %s5787_s2 = sadd.s32 4294967295, %s5641_s29   ;;  %s5641_s29 = sphi %s5781_s29, %s36_s29  }
  0x16   : > { %6784 = sst [smem:[#allocation7_spill]] %s5787_s2  ;;  %p4610_p0 = scmp.ge.s32.totalorder %s5641_s29, 1 }
  0x17   : > { %p820_p1 = scmp.lt.s32.totalorder %s5641_s29, 4 }
  0x19   : > { %p821_p2 = pnand %p4610_p0, %p820_p1 }
  0x1b   : > { %824 = sbr.rel (%p821_p2) target bundleno = 6335 (0x18bf), region = 120 }
  0x22   : > { %p945_p3 = scmp.lt.s32.totalorder %s5787_s2, 2  ;;  %s6785_s1 = sld [smem:[#allocation20_spill]] }
  0x23   : > { %s6788_s10 = sld [smem:[#allocation21_spill]]  ;;  %s6790_s12 = sld [smem:[#allocation23_spill]] }
  0x24   : > { %s5793_s6 = scalar_select %p945_p3, %s5787_s2, 2 }
  0x25   : > { %s6792_s13 = sld [smem:[#allocation24_spill]]  ;;  %s6793_s15 = sld [smem:[#allocation26_spill]] }
  0x26   : > { %s4792_s30 = sshll.u32 %s5793_s6, 4  ;;  %s5494_s7 = smul.u32 48, %s5793_s6 }
  0x27   : > { %s4614_s29 = sshll.u32 %s5793_s6, 3  ;;  %s5496_s26 = smul.u32 6, %s5793_s6 }
  0x28   : > { %s5800_s8 = scalar_lea.vmem %s6785_s1, %s4792_s30  ;;  %s5495_s30 = smul.u32 144, %s5793_s6 }
  0x29   : > { %6786 = sst [smem:[#allocation8_spill]] %s5800_s8  ;;  %s5809_s0 = scalar_lea.vmem %s6788_s10, %s5494_s7 }
  0x2a   : > { %6789 = sst [smem:[#allocation9_spill]] %s5809_s0  ;;  %s5815_s3 = scalar_lea.vmem %s6790_s12, %s4614_s29 }
  0x2b   : > { %6791 = sst [smem:[#allocation10_spill]] %s5815_s3  ;;  %s4793_s1 = sshll.u32 %s5793_s6, 5 }
  0x2c   : > { %s5823_s4 = scalar_lea.vmem %s6792_s13, %s5495_s30  ;;  %s5828_s5 = scalar_lea.vmem %s6793_s15, %s4793_s1 }
  0x2d   : > { %s6794_s14 = sld [smem:[#allocation25_spill]]  ;;  %s6796_s17 = sld [smem:[#allocation28_spill]] }
  0x2e   : > { %s5847_s28 = scalar_lea.vmem %s6741_s18, %s5496_s26  ;;  %s5852_s10 = scalar_lea.vmem %s6742_s19, %s4793_s1 }
  0x2f   : > { %s995_s29 = scalar_lea.vmem %s6743_s20, %s5793_s6  ;;  %s5497_s2 = smul.u32 24, %s5793_s6 }
  0x30   : > { %s5866_s13 = scalar_lea.vmem %s6746_s23, %s5494_s7  ;;  %s1011_s15 = scalar_lea.vmem %s6747_s24, %s5793_s6 }
  0x33   : > { %s5833_s25 = scalar_lea.vmem %s6794_s14, %s5496_s26  ;;  %s5842_s8 = scalar_lea.vmem %s6796_s17, %s5495_s30 }
  0x34   : > { %s5875_s17 = scalar_lea.vmem %s6744_s21, %s5497_s2  ;;  %s6797_s14 = sld [smem:[#allocation7_spill]] }
  0x3a   : > { %p4623_p4 = scmp.ne.s32.totalorder %s6797_s14, 0 }
  0x3b   : > { %s6798_s16 = sld [smem:[#allocation12_spill]] (!%p4623_p4)  ;;  %vm1031_vm0 = vcmask (!%p4623_p4), 392192   ;;  %s6799_s12 = sld [smem:[#allocation11_spill]] (!%p4623_p4)  ;;  %vm1130_vm1 = vcmask (!%p4623_p4), 195588   ;;  %vm1115_vm2 = vcmask (!%p4623_p4), 188416   ;;  %vm1133_vm3 = vcmask (!%p4623_p4), 193541  }
  0x3c   : > { %1015 = sbr.rel (%p4623_p4) target bundleno = 300 (0x12c), region = 124  ;;  %s6800_s2 = sld [smem:[#allocation14_spill]] (!%p4623_p4)  ;;  %vm1142_vm4 = vcmask (!%p4623_p4), 189440   ;;  %vm1121_vm5 = vcmask (!%p4623_p4), 192513   ;;  %vm1140_vm6 = vcmask (!%p4623_p4), 195590  }
  0x3d   : > { %s6801_s9 = sld [smem:[#allocation15_spill]] (!%p4623_p4)  ;;  %s6802_s7 = sld [smem:[#allocation13_spill]] (!%p4623_p4) }
  0x41   : > { %v1018_v0 = vld [vmem:[%s6798_s16] sm:$0xff] (!%p4623_p4)  ;;  %v1019_v1 = vld [vmem:[%s6798_s16 + $0x8] sm:$0xff] (!%p4623_p4)  ;;  %v1020_v2 = vld [vmem:[%s6798_s16 + $0x10] sm:$0xff] (!%p4623_p4) }
  0x42   : > { %v5365_v3 = vpack.c.bf16 (!%p4623_p4), %v1019_v1, %v1018_v0  ;;  %v1021_v4 = vld [vmem:[%s6798_s16 + $0x18] sm:$0xff] (!%p4623_p4)  ;;  %v1022_v6 = vld [vmem:[%s6798_s16 + $0x20] sm:$0xff] (!%p4623_p4)  ;;  %v1023_v7 = vld [vmem:[%s6798_s16 + $0x28] sm:$0xff] (!%p4623_p4) }
  0x43   : > { %v5369_v5 = vpack.c.bf16 %v1021_v4, %v1020_v2  ;;  %v1016_v8 = vld [vmem:[%s6799_s12] sm:$0xff]  ;;  %v5373_v9 = vpack.c.bf16 %v1023_v7, %v1022_v6  ;;  %v1017_v10 = vld [vmem:[%s6799_s12 + $0x8] sm:$0x3] }
  0x44   : > { %5366 = vmatprep.subr.bf16.mxu0 %v5365_v3  ;;  %4976 = vmatprep.mubr.msk.f32.mxu0 %vm1031_vm0, %v1016_v8  ;;  %v4627_v11 = vld [vmem:[%s6800_s2] ss:$0 sm:$0xff]  ;;  %v1132_v14 = vld [vmem:[%s6801_s9 + $0x8] sm:$0xff] }
  0x45   : > { %5368 = vmatpush3.bf16.msra.mxu0 %v5365_v3  ;;  %v1114_v12 = vld [vmem:[%s6801_s9] sm:$0xff]  ;;  %v1144_v15 = vadd.f32 %v4627_v11, %v1132_v14  ;;  %v1136_v17 = vrot.slane %v1132_v14, 2 }
  0x46   : > { %5370 = vmatprep.subr.bf16.mxu0 %v5369_v5  ;;  %v1129_v13 = vadd.f32 %v4627_v11, %v1114_v12  ;;  %v4624_v16 = vld [vmem:[%s6802_s7] ss:$0 sm:$0xff]  ;;  %v1118_v19 = vrot.slane %v1114_v12, 7 }
  0x47   : > { %1145 = vst.msk [vmem:[#allocation2 + $0xa] sm:$0xf0] %vm1130_vm1, %v1144_v15 }
  0x48   : > { %1131 = vst.msk [vmem:[#allocation2 + $0x1] sm:$0xf0] %vm1130_vm1, %v1129_v13 }
  0x49   : > { %5372 = vmatpush3.bf16.msra.mxu0 %v5369_v5 }
  0x4a   : > { %5374 = vmatprep.subr.bf16.mxu0 %v5373_v9 }
  0x4d   : > { %5376 = vmatpush3.bf16.msra.mxu0 %v5373_v9 }
  0x50   : > { %4977 = vmatmul.mubr.msk.f32.vlgmr.msra.gmra.mrb[0].mxu0 %vm1031_vm0, %v1017_v10 }
 0x123   : > { %v4978_v18 = vpop.f32.mrb[0].mxu0 }
 0x124   : > { %v1110_v20 = vadd.f32 %v4978_v18, %v4624_v16  ;;  %v1104_v21 = vpop.f32.mrb[1].mxu0 }
 0x125   : > { %v1105_v22 = vadd.f32 %v4624_v16, %v1104_v21 }
 0x126   : > { %v1139_v23 = vadd.f32 %v1136_v17, %v1110_v20 }
 0x127   : > { %1116 = vst.msk [vmem:[#allocation2] sm:$0x1] %vm1115_vm2, %v1105_v22  ;;  %v1120_v24 = vadd.f32 %v1118_v19, %v1105_v22  ;;  %v1138_v25 = vadd.f32 %v1136_v17, %v1105_v22 }
 0x128   : > { %1134 = vst.msk [vmem:[#allocation2 + $0x4] sm:$0x20] %vm1133_vm3, %v1105_v22 }
 0x129   : > { %1143 = vst.msk [vmem:[#allocation2 + $0xc] sm:$0x3] %vm1142_vm4, %v1139_v23 }
 0x12a   : > { %1122 = vst.msk [vmem:[#allocation2] sm:$0x1e] %vm1121_vm5, %v1120_v24 }
 0x12b   : > { %1141 = vst.msk [vmem:[#allocation2 + $0x4] sm:$0xc0] %vm1140_vm6, %v1138_v25 }
 0x12c PF: > { %vm1300_vm7 = vcmask 195584   ;;  %v5918_v27 = vld [vmem:[#allocation2 + $0x10] sm:$0x3]  ;;  %vm1307_vm8 = vcmask 189440   ;;  %s6803_s30 = sld [smem:[#allocation9_spill]]  ;;  %s6804_s26 = sld [smem:[#allocation8_spill]]  ;;  %v1147_v6 = vlaneseq }
 0x12d   : > { %v1308_v30 = vsel %vm1307_vm8, %v5918_v27, 0.0  ;;  %vm6760_vm9 = vcmask 392192   ;;  %v1356_v57 = vld [vmem:[%s5823_s4] sm:$0xff]  ;;  %v1357_v58 = vld [vmem:[%s5823_s4 + $0x8] sm:$0xff]  ;;  %v4635_v61 = vld [vmem:[%s5823_s4 + $0x30] sm:$0xff]  ;;  %v5643_v63 = vmov 0.0|0.0  }
 0x12e   : > { %1309 = vadd.xlane.f32.xlu1 %v1308_v30  ;;  %v5390_v60 = vpack.c.bf16 %v1357_v58, %v1356_v57  ;;  %v4636_v62 = vld [vmem:[%s5823_s4 + $0x38] sm:$0xff]  ;;  %5389 = vmatprep.subr.bf16.mxu1 %v5643_v63  ;;  %v5644_v1 = vmov 0.0   ;;  %v1358_v2 = vld [vmem:[%s5823_s4 + $0x10] sm:$0xff]  ;;  %v4637_v3 = vld [vmem:[%s5823_s4 + $0x40] sm:$0xff]  ;;  %vm5645_vm10 = vmmov 0   ;;  %s6805_s2 = sld [smem:[#allocation10_spill]] }
 0x12f   : > { %v5393_v0 = vpack.c.bf16 %v4636_v62, %v4635_v61  ;;  %5000 = vmatprep.mubr.msk.f32.mxu1 %vm5645_vm10, %v5644_v1  ;;  %v5973_v12 = vshrl.u32 %v1147_v6, 7  ;;  %v4643_v22 = vld [vmem:[%s5823_s4 + $0x60] sm:$0xff]  ;;  %v4644_v23 = vld [vmem:[%s5823_s4 + $0x68] sm:$0xff]  ;;  %vm1639_vm11 = vcmask 97280   ;;  %vm6762_vm13 = vcmask 1041408   ;;  %s6816_s27 = sld [smem:[#allocation22_spill]] }
 0x130   : > { %5391 = vmatpush3.bf16.msra.mxu1 %v5390_v60  ;;  %vm6043_vm12 = vmpackc.low %vm1639_vm11, %vm1639_vm11  ;;  %v4647_v60 = vld [vmem:[%s5833_s25 + $0x4] ss:$0 sm:$0xff]  ;;  %v4631_v61 = vld [vmem:[%s5833_s25] ss:$0 sm:$0xff]  ;;  %vm1744_vm5 = vcmask 146432   ;;  %s6820_s0 = sld [smem:[#allocation27_spill]] }
 0x131   : > { %v5916_v26 = vld [vmem:[#allocation2] sm:$0xff]  ;;  %4998 = vmatprep.subr.mxu1 %v5644_v1  ;;  %v1344_v15 = vsub.s32 0, %v5973_v12  ;;  %v1351_v17 = vsub.s32 1, %v5973_v12 }
 0x132   : > { %v5920_v28 = vld [vmem:[#allocation2 + $0x8] sm:$0xff]  ;;  %v1301_v29 = vsel %vm1300_vm7, %v5916_v26, 0.0  ;;  %v1202_v47 = vld [vmem:[%s6803_s30] sm:$0xff]  ;;  %v1204_v50 = vld [vmem:[%s6803_s30 + $0x10] sm:$0xff] }
 0x133   : > { %1302 = vadd.xlane.f32.xlu0 %v1301_v29  ;;  %v1304_v31 = vsel %vm1300_vm7, %v5920_v28, 0.0  ;;  %v1203_v48 = vld [vmem:[%s6803_s30 + $0x8] sm:$0xff]  ;;  %v1205_v51 = vld [vmem:[%s6803_s30 + $0x18] sm:$0xff]  ;;  %v1206_v53 = vld [vmem:[%s6803_s30 + $0x20] sm:$0xff] }
 0x134   : > { %v5377_v49 = vpack.c.bf16 %v1203_v48, %v1202_v47  ;;  %v5381_v52 = vpack.c.bf16 %v1205_v51, %v1204_v50  ;;  %v1207_v54 = vld [vmem:[%s6803_s30 + $0x28] sm:$0xff]  ;;  %v1200_v56 = vld [vmem:[%s6804_s26] sm:$0xff]  ;;  %4999 = vmatpush3.msra.mxu1 %v1358_v2 }
 0x135   : > { %v5385_v55 = vpack.c.bf16 %v1207_v54, %v1206_v53  ;;  %4991 = vmatprep.mubr.msk.f32.mxu0 %vm6760_vm9, %v1200_v56  ;;  %v1201_v59 = vld [vmem:[%s6804_s26 + $0x8] sm:$0x3]  ;;  %5395 = vmatprep.subr.bf16.mxu1 %v5643_v63  ;;  %v5977_v16 = vld [vmem:[%s6805_s2] sm:$0xff]  ;;  %s6817_s1 = scalar_lea.vmem %s6816_s27, %s5793_s6 }
 0x136   : > { %5378 = vmatprep.subr.bf16.mxu0 %v5377_v49  ;;  %v1345_v18 = vrot.slane %v5977_v16, %v1344_v15  ;;  %v1352_v21 = vrot.slane %v5977_v16, %v1351_v17  ;;  %v4662_v2 = vld [vmem:[%s5823_s4 + $0x20] sm:$0xff]  ;;  %s6821_s11 = scalar_lea.vmem %s6820_s0, %s5793_s6 }
 0x137   : > { %1305 = vadd.xlane.f32.xlu0 %v1304_v31  ;;  %5380 = vmatpush3.bf16.msra.mxu0 %v5377_v49  ;;  %v5396_v31 = vpack.c.bf16 %v4644_v23, %v4643_v22  ;;  %v4678_v22 = vld [vmem:[%s5823_s4 + $0x80] sm:$0xff] }
 0x138   : > { %5382 = vmatprep.subr.bf16.mxu0 %v5381_v52 }
 0x13b   : > { %5384 = vmatpush3.bf16.msra.mxu0 %v5381_v52 }
 0x13c   : > { %5386 = vmatprep.subr.bf16.mxu0 %v5385_v55 }
 0x13f   : > { %5388 = vmatpush3.bf16.msra.mxu0 %v5385_v55 }
 0x140   : > { %5392 = vmatprep.subr.bf16.mxu0 %v5643_v63 }
 0x142   : > { %4992 = vmatmul.mubr.msk.f32.vlgmr.msra.gmra.mrb[0].mxu0 %vm6760_vm9, %v1201_v59 }
 0x143   : > { %5394 = vmatpush3.bf16.msra.mxu0 %v5393_v0  ;;  %5015 = vmatprep.mubr.msk.f32.mxu0 %vm5645_vm10, %v5644_v1  ;;  %v4661_v0 = vld [vmem:[%s5823_s4 + $0x18] sm:$0xff] }
 0x144   : > { %5013 = vmatprep.subr.mxu0 %v5644_v1 }
 0x147   : > { %5014 = vmatpush3.msra.mxu0 %v4637_v3 }
 0x148   : > { %5398 = vmatprep.subr.bf16.mxu0 %v5643_v63 }
 0x1bb   : > { %v1310_v33 = vpop.xlane.xlu1 %1309 }
 0x1bc   : > { %v1314_v35 = vmul.f32 0.041666668, %v1310_v33 }
 0x1be   : > { %v5932_v37 = vsub.f32 %v5918_v27, %v1314_v35 }
 0x1c0   : > { %v1303_v32 = vpop.xlane.xlu0 %1302  ;;  %v1320_v41 = vmul.f32 %v5932_v37, %v5932_v37 }
 0x1c1   : > { %v1312_v34 = vmul.f32 0.041666668, %v1303_v32 }
 0x1c2   : > { %v1327_v44 = vsel %vm1307_vm8, %v1320_v41, 0.0 }
 0x1c3   : > { %v5929_v36 = vsub.f32 %v5916_v26, %v1312_v34 }
 0x1c4   : > { %v1306_v38 = vpop.xlane.xlu0 %1305 }
 0x1c5   : > { %v1313_v39 = vmul.f32 0.041666668, %v1306_v38  ;;  %v1318_v40 = vmul.f32 %v5929_v36, %v5929_v36 }
 0x1c7   : > { %v5939_v42 = vsub.f32 %v5920_v28, %v1313_v39  ;;  %v1321_v43 = vsel %vm1300_vm7, %v1318_v40, 0.0 }
 0x1c8   : > { %1322 = vadd.xlane.f32.xlu1 %v1321_v43 }
 0x1c9   : > { %v1319_v45 = vmul.f32 %v5939_v42, %v5939_v42 }
 0x1cb   : > { %v1324_v46 = vsel %vm1300_vm7, %v1319_v45, 0.0  ;;  %v4639_v45 = vld [vmem:[%s5833_s25 + $0x2] ss:$0 sm:$0xff] }
 0x1cc   : > { %1328 = vadd.xlane.f32.xlu1 %v1327_v44  ;;  %1325 = vadd.xlane.f32.xlu0 %v1324_v46 }
 0x215   : > { %v6036_v39 = vpop.f32.mrb[0].mxu0 }
 0x216   : > { %v6038_v40 = vpop.f32.mrb[1].mxu0 }
 0x255   : > { %v1323_v4 = vpop.xlane.xlu1 %1322 }
 0x256   : > { %v1330_v5 = vmul.f32 0.041666668, %v1323_v4 }
 0x258   : > { %v1333_v7 = vadd.f32 1e-05, %v1330_v5 }
 0x259   : > { %v1329_v8 = vpop.xlane.xlu1 %1328  ;;  %v1326_v9 = vpop.xlane.xlu0 %1325 }
 0x25a   : > { %5520 = vrsqrt.f32 %v1333_v7  ;;  %v1332_v10 = vmul.f32 0.041666668, %v1329_v8  ;;  %v1331_v11 = vmul.f32 0.041666668, %v1326_v9  ;;  %v5406_v9 = vpack.c.bf16 %v4662_v2, %v4661_v0  ;;  %v4681_v0 = vld [vmem:[%s5833_s25 + $0x5] ss:$0 sm:$0xff] }
 0x25c   : > { %v1335_v13 = vadd.f32 1e-05, %v1332_v10  ;;  %v1334_v14 = vadd.f32 1e-05, %v1331_v11 }
 0x25e   : > { %5522 = vrsqrt.f32 %v1335_v13 }
 0x25f   : > { %5524 = vrsqrt.f32 %v1334_v14 }
 0x264   : > { %v5521_v19 = vpop.eup %5520 }
 0x265   : > { %v1339_v20 = vmul.f32 %v5521_v19, %v5929_v36  ;;  %v4663_v19 = vld [vmem:[%s5823_s4 + $0x28] sm:$0xff] }
 0x267   : > { %v1346_v24 = vmul.f32 %v1345_v18, %v1339_v20 }
 0x268   : > { %v5523_v25 = vpop.eup %5522 }
 0x269   : > { %v5525_v29 = vpop.eup %5524  ;;  %v5989_v30 = vadd.f32 %v1352_v21, %v1346_v24  ;;  %v1341_v32 = vmul.f32 %v5523_v25, %v5932_v37  ;;  %v4645_v37 = vld [vmem:[%s5823_s4 + $0x70] sm:$0xff]  ;;  %v4679_v24 = vld [vmem:[%s5823_s4 + $0x88] sm:$0xff]  ;;  %v6101_v25 = vand.u32 127, %v1147_v6 }
 0x26a   : > { %v1340_v33 = vmul.f32 %v5525_v29, %v5939_v42  ;;  %v6104_v29 = vadd.s32 8, %v5973_v12 }
 0x26b   : > { %5001 = vmatmul.mubr.msk.f32.vlgmr.msra.gmra.mrb[0].mxu1 %vm1300_vm7, %v5989_v30  ;;  %5016 = vmatmul.mubr.msk.f32.vlgmr.msra.gmra.mrb[2].mxu0 %vm1300_vm7, %v5989_v30  ;;  %v1348_v35 = vmul.f32 %v1345_v18, %v1341_v32  ;;  %vm1177_vm14 = vcmp.ge.s32.totalorder %v6101_v25, 9  ;;  %vm1178_vm15 = vcmp.lt.s32.totalorder %v6101_v25, 18  ;;  %vm1163_vm3 = vcmp.lt.s32.totalorder %v6101_v25, 9 }
 0x26c   : > { %v1347_v34 = vmul.f32 %v1345_v18, %v1340_v33  ;;  %5003 = vmatprep.mubr.msk.f32.mxu1 %vm5645_vm10, %v5644_v1  ;;  %5018 = vmatprep.mubr.msk.f32.mxu0 %vm5645_vm10, %v5644_v1  ;;  %vm1157_vm0 = vcmp.lt.s32.totalorder %v6104_v29, 9  ;;  %vm6761_vm1 = vcmp.ge.s32.totalorder %v6104_v29, 9  ;;  %vm6110_vm2 = vmand %vm1177_vm14, %vm1178_vm15 }
 0x26d   : > { %5397 = vmatpush3.bf16.msra.mxu1 %v5396_v31  ;;  %v6013_v38 = vadd.f32 %v1352_v21, %v1348_v35  ;;  %vm6119_vm4 = vmand %vm1157_vm0, %vm1163_vm3 }
 0x26e   : > { %v6001_v36 = vadd.f32 %v1352_v21, %v1347_v34  ;;  %5028 = vmatprep.subr.mxu1 %v5644_v1  ;;  %v4677_v21 = vld [vmem:[%s5823_s4 + $0x78] sm:$0xff]  ;;  %vm6127_vm6 = vmand %vm6761_vm1, %vm6110_vm2  ;;  %vm1751_vm1 = vcmask 140288  }
 0x26f   : > { %v5412_v23 = vpack.c.bf16 %v4678_v22, %v4677_v21  ;;  %vm1184_vm14 = vmor %vm6119_vm4, %vm6127_vm6  ;;  %vm1191_vm4 = vcmp.ge.s32.totalorder %v6101_v25, 5 }
 0x270   : > { %5004 = vmatmul.mubr.msk.f32.gmra.mrb[2].mxu1 %vm1300_vm7, %v6001_v36  ;;  %5019 = vmatmul.mubr.msk.f32.gmra.mrb[4].mxu0 %vm1300_vm7, %v6001_v36 }
 0x271   : > { %5006 = vmatprep.mubr.msk.f32.mxu1 %vm5645_vm10, %v5644_v1  ;;  %5021 = vmatprep.mubr.msk.f32.mxu0 %vm5645_vm10, %v5644_v1 }
 0x272   : > { %5029 = vmatpush3.msra.mxu1 %v4645_v37  ;;  %v6132_v37 = vadd.s32 16, %v5973_v12 }
 0x273   : > { %5402 = vmatprep.subr.bf16.mxu1 %v5643_v63 }
 0x274   : > { %5007 = vmatmul.mubr.msk.f32.gmra.mrb[4].mxu1 %vm1300_vm7, %v6013_v38  ;;  %5022 = vmatmul.mubr.msk.f32.gmra.mrb[6].mxu0 %vm1300_vm7, %v6013_v38  ;;  %vm1173_vm15 = vcmp.lt.s32.totalorder %v6132_v37, 18 }
 0x275   : > { %5030 = vmatprep.mubr.msk.f32.mxu1 %vm5645_vm10, %v5644_v1  ;;  %5045 = vmatprep.mubr.msk.f32.mxu0 %vm5645_vm10, %v5644_v1  ;;  %vm6152_vm9 = vmand %vm1173_vm15, %vm6110_vm2  ;;  %vm5646_vm2 = vmmov 1  }
 0x278   : > { %5031 = vmatmul.mubr.msk.f32.vlgmr.msra.gmra.mrb[6].mxu1 %vm1300_vm7, %v5989_v30 }
 0x279   : > { %5033 = vmatprep.mubr.msk.f32.mxu1 %vm5645_vm10, %v5644_v1 }
 0x27c   : > { %5034 = vmatmul.mubr.msk.f32.gmra.mrb[8].mxu1 %vm1300_vm7, %v6001_v36 }
 0x27d   : > { %5036 = vmatprep.mubr.msk.f32.mxu1 %vm5645_vm10, %v5644_v1 }
 0x280   : > { %5037 = vmatmul.mubr.msk.f32.gmra.mrb[10].mxu1 %vm1300_vm7, %v6013_v38 }
 0x281   : > { %5060 = vmatprep.mubr.msk.f32.mxu1 %vm5645_vm10, %v5644_v1 }
 0x33e   : > { %v1441_v41 = vpop.f32.mrb[0].mxu1  ;;  %v1533_v42 = vpop.f32.mrb[2].mxu0 }
 0x33f   : > { %v5002_v43 = vpop.f32.mrb[1].mxu1  ;;  %v5017_v44 = vpop.f32.mrb[3].mxu0  ;;  %v1534_v48 = vadd.f32 %v4639_v45, %v1533_v42  ;;  %v1442_v8 = vadd.f32 %v4631_v61, %v1441_v41 }
 0x343   : > { %v1446_v46 = vpop.f32.mrb[2].mxu1  ;;  %v1538_v47 = vpop.f32.mrb[4].mxu0 }
 0x344   : > { %v1539_v49 = vadd.f32 %v4639_v45, %v1538_v47  ;;  %v5005_v50 = vpop.f32.mrb[3].mxu1  ;;  %v5020_v51 = vpop.f32.mrb[5].mxu0  ;;  %v1447_v14 = vadd.f32 %v4631_v61, %v1446_v46 }
 0x346   : > { %v5399_v53 = vpack.c.bf16 %v1539_v49, %v1534_v48 }
 0x347   : > { %v1451_v54 = vpop.f32.mrb[4].mxu1  ;;  %v1543_v55 = vpop.f32.mrb[6].mxu0 }
 0x348   : > { %v5008_v56 = vpop.f32.mrb[5].mxu1  ;;  %v5023_v57 = vpop.f32.mrb[7].mxu0  ;;  %5401 = vmatpush3.bf16.xpose.msk.msra.mxu0 %vm6043_vm12, %v5399_v53  ;;  %v1544_v62 = vadd.f32 %v4639_v45, %v1543_v55  ;;  %v1452_v20 = vadd.f32 %v4631_v61, %v1451_v54 }
 0x349   : > { %5043 = vmatprep.subr.mxu0 %v5644_v1 }
 0x34b   : > { %v1625_v58 = vpop.f32.mrb[6].mxu1 }
 0x34c   : > { %v5032_v59 = vpop.f32.mrb[7].mxu1  ;;  %v1626_v4 = vadd.f32 %v4647_v60, %v1625_v58 }
 0x34f   : > { %v1630_v3 = vpop.f32.mrb[8].mxu1 }
 0x350   : > { %v1631_v5 = vadd.f32 %v4647_v60, %v1630_v3  ;;  %v5035_v7 = vpop.f32.mrb[9].mxu1  ;;  %5044 = vmatpush3.xpose.msk.msra.mxu0 %vm1639_vm11, %v1544_v62 }
 0x351   : > { %5405 = vmatprep.subr.bf16.mxu0 %v5643_v63 }
 0x352   : > { %v5403_v10 = vpack.c.bf16 %v1631_v5, %v1626_v4 }
 0x353   : > { %v1635_v11 = vpop.f32.mrb[10].mxu1  ;;  %5046 = vmatmul.mubr.msk.f32.vlgmr.msra.gmra.mrb[8].mxu0 %vm1639_vm11, %v1442_v8 }
 0x354   : > { %v5038_v13 = vpop.f32.mrb[11].mxu1  ;;  %5404 = vmatpush3.bf16.msra.mxu1 %v5403_v10  ;;  %5048 = vmatprep.mubr.msk.f32.mxu0 %vm5645_vm10, %v5644_v1  ;;  %v1636_v18 = vadd.f32 %v4647_v60, %v1635_v11 }
 0x355   : > { %5058 = vmatprep.subr.mxu1 %v5644_v1  ;;  %5407 = vmatpush3.bf16.msra.mxu0 %v5406_v9 }
 0x356   : > { %5073 = vmatprep.subr.mxu0 %v5644_v1 }
 0x357   : > { %5049 = vmatmul.mubr.msk.f32.gmra.mrb[10].mxu0 %vm1639_vm11, %v1447_v14 }
 0x358   : > { %5059 = vmatpush3.msk.msra.mxu1 %vm6762_vm13, %v1636_v18  ;;  %5051 = vmatprep.mubr.msk.f32.mxu0 %vm5645_vm10, %v5644_v1 }
 0x359   : > { %5074 = vmatpush3.msra.mxu0 %v4663_v19  ;;  %5408 = vmatprep.subr.bf16.mxu1 %v5643_v63 }
 0x35a   : > { %5411 = vmatprep.subr.bf16.mxu0 %v5643_v63 }
 0x35b   : > { %5052 = vmatmul.mubr.msk.f32.gmra.mrb[12].mxu0 %vm1639_vm11, %v1452_v20 }
 0x35c   : > { %5075 = vmatprep.mubr.msk.f32.mxu0 %vm5645_vm10, %v5644_v1 }
 0x35f   : > { %5076 = vmatmul.mubr.msk.f32.vlgmr.msra.gmra.mrb[14].mxu0 %vm1300_vm7, %v5989_v30 }
 0x360   : > { %5078 = vmatprep.mubr.msk.f32.mxu0 %vm5645_vm10, %v5644_v1  ;;  %5413 = vmatpush3.bf16.msra.mxu0 %v5412_v23 }
 0x361   : > { %5103 = vmatprep.subr.mxu0 %v5644_v1 }
 0x363   : > { %5079 = vmatmul.mubr.msk.f32.gmra.mrb[16].mxu0 %vm1300_vm7, %v6001_v36 }
 0x364   : > { %5081 = vmatprep.mubr.msk.f32.mxu0 %vm5645_vm10, %v5644_v1  ;;  %5104 = vmatpush3.msra.mxu0 %v4679_v24 }
 0x365   : > { %5418 = vmatprep.subr.bf16.mxu0 %v5643_v63 }
 0x367   : > { %5082 = vmatmul.mubr.msk.f32.gmra.mrb[18].mxu0 %vm1300_vm7, %v6013_v38 }
 0x368   : > { %5105 = vmatprep.mubr.msk.f32.mxu0 %vm5645_vm10, %v5644_v1 }
 0x36b   : > { %5106 = vmatmul.mubr.msk.f32.vlgmr.msra.gmra.mrb[20].mxu0 %vm1300_vm7, %v5989_v30 }
 0x36c   : > { %5108 = vmatprep.mubr.msk.f32.mxu0 %vm5645_vm10, %v5644_v1 }
 0x36f   : > { %5109 = vmatmul.mubr.msk.f32.gmra.mrb[22].mxu0 %vm1300_vm7, %v6001_v36 }
 0x370   : > { %5111 = vmatprep.mubr.msk.f32.mxu0 %vm5645_vm10, %v5644_v1 }
 0x373   : > { %5112 = vmatmul.mubr.msk.f32.gmra.mrb[24].mxu0 %vm1300_vm7, %v6013_v38 }
 0x374   : > { %5135 = vmatprep.mubr.msk.f32.mxu0 %vm5645_vm10, %v5644_v1 }
 0x426   : > { %v1724_v32 = vpop.f32.mrb[8].mxu0 }
 0x427   : > { %v1738_v33 = vmul.f32 0.28867513, %v1724_v32  ;;  %v5047_v34 = vpop.f32.mrb[9].mxu0 }
 0x429   : > { %v1741_v41 = vsel %vm1163_vm3, %v1738_v33, -1e+30 }
 0x42a   : > { %v1729_v42 = vpop.f32.mrb[10].mxu0  ;;  %v1745_v43 = vsel %vm1744_vm5, %v1741_v41, -inf }
 0x42b   : > { %v1739_v44 = vmul.f32 0.28867513, %v1729_v42  ;;  %1746 = vmax.xlane.f32.xlu0 %v1745_v43  ;;  %v5050_v45 = vpop.f32.mrb[11].mxu0 }
 0x42c   : > { %v4669_v45 = vld [vmem:[%s5823_s4 + $0x48] sm:$0xff] }
 0x42d   : > { %v1742_v46 = vsel %vm1184_vm14, %v1739_v44, -1e+30 }
 0x42e   : > { %v1734_v47 = vpop.f32.mrb[12].mxu0  ;;  %v1748_v48 = vsel %vm1744_vm5, %v1742_v46, -inf }
 0x42f   : > { %v1740_v50 = vmul.f32 0.28867513, %v1734_v47  ;;  %1749 = vmax.xlane.f32.xlu1 %v1748_v48  ;;  %v5053_v51 = vpop.f32.mrb[13].mxu0 }
 0x431   : > { %v1743_v53 = vsel %vm6152_vm9, %v1740_v50, -1e+30 }
 0x432   : > { %v6158_v54 = vpop.f32.mrb[14].mxu0  ;;  %v1752_v55 = vsel %vm1751_vm1, %v1743_v53, -inf }
 0x433   : > { %1753 = vmax.xlane.f32.xlu0 %v1752_v55  ;;  %v5077_v56 = vpop.f32.mrb[15].mxu0  ;;  %v4671_v55 = vld [vmem:[%s5823_s4 + $0x58] sm:$0xff] }
 0x436   : > { %v6161_v57 = vpop.f32.mrb[16].mxu0 }
 0x437   : > { %v5080_v58 = vpop.f32.mrb[17].mxu0 }
 0x43a   : > { %v6163_v59 = vpop.f32.mrb[18].mxu0 }
 0x43b   : > { %v5083_v60 = vpop.f32.mrb[19].mxu0 }
 0x43e   : > { %v2136_v61 = vpop.f32.mrb[20].mxu0 }
 0x43f   : > { %v5107_v62 = vpop.f32.mrb[21].mxu0  ;;  %v2137_v3 = vadd.f32 %v4681_v0, %v2136_v61 }
 0x442   : > { %v2141_v2 = vpop.f32.mrb[22].mxu0 }
 0x443   : > { %v2142_v4 = vadd.f32 %v4681_v0, %v2141_v2  ;;  %v5110_v5 = vpop.f32.mrb[23].mxu0 }
 0x445   : > { %v5419_v7 = vpack.c.bf16 %v2142_v4, %v2137_v3  ;;  %v4673_v4 = vld [vmem:[%s5833_s25 + $0x3] ss:$0 sm:$0xff] }
 0x446   : > { %v2146_v8 = vpop.f32.mrb[24].mxu0 }
 0x447   : > { %v5113_v9 = vpop.f32.mrb[25].mxu0  ;;  %5420 = vmatpush3.bf16.msra.mxu0 %v5419_v7  ;;  %v2147_v10 = vadd.f32 %v4681_v0, %v2146_v8 }
 0x448   : > { %5133 = vmatprep.subr.mxu0 %v5644_v1 }
 0x44b   : > { %5134 = vmatpush3.msk.msra.mxu0 %vm6762_vm13, %v2147_v10 }
 0x44c   : > { %5425 = vmatprep.subr.bf16.mxu0 %v5643_v63 }
 0x4b8   : > { %v1747_v11 = vpop.xlane.xlu0 %1746 }
 0x4b9   : > { %v1755_v13 = vsub.f32 %v1741_v41, %v1747_v11 }
 0x4bb   : > { %v1758_v14 = vmul.f32 1.442695, %v1755_v13  ;;  %v4665_v13 = vld [vmem:[%s5833_s25 + $0x1] ss:$0 sm:$0xff] }
 0x4bc   : > { %v1750_v18 = vpop.xlane.xlu1 %1749 }
 0x4bd   : > { %5526 = vpow2.f32 %v1758_v14  ;;  %v1756_v19 = vsub.f32 %v1742_v46, %v1750_v18  ;;  %v4670_v46 = vld [vmem:[%s5823_s4 + $0x50] sm:$0xff]  ;;  %v1953_v18 = vadd.f32 %v4665_v13, %v6158_v54 }
 0x4be   : > { %v5409_v48 = vpack.c.bf16 %v4670_v46, %v4669_v45 }
 0x4bf   : > { %v1760_v20 = vmul.f32 1.442695, %v1756_v19  ;;  %v1958_v19 = vadd.f32 %v4665_v13, %v6161_v57 }
 0x4c0   : > { %v1754_v21 = vpop.xlane.xlu0 %1753 }
 0x4c1   : > { %5528 = vpow2.f32 %v1760_v20  ;;  %v1757_v22 = vsub.f32 %v1743_v53, %v1754_v21  ;;  %v1963_v20 = vadd.f32 %v4665_v13, %v6163_v59  ;;  %v1873_v13 = vld [vmem:[%s5828_s5 + $0x8] sm:$0xf] }
 0x4c3   : > { %v1762_v23 = vmul.f32 1.442695, %v1757_v22 }
 0x4c5   : > { %5530 = vpow2.f32 %v1762_v23 }
 0x4c7   : > { %v5527_v24 = vpop.eup %5526 }
 0x4c8   : > { %v1764_v31 = vsel %vm1744_vm5, %v5527_v24, 0.0 }
 0x4c9   : > { %1765 = vadd.xlane.f32.xlu1 %v1764_v31 }
 0x4cb   : > { %v5529_v32 = vpop.eup %5528 }
 0x4cc   : > { %v1767_v33 = vsel %vm1744_vm5, %v5529_v32, 0.0 }
 0x4cd   : > { %1768 = vadd.xlane.f32.xlu0 %v1767_v33 }
 0x4cf   : > { %v5531_v34 = vpop.eup %5530 }
 0x4d0   : > { %v1770_v41 = vsel %vm1751_vm1, %v5531_v34, 0.0 }
 0x4d1   : > { %1771 = vadd.xlane.f32.xlu1 %v1770_v41 }
 0x556   : > { %v1766_v42 = vpop.xlane.xlu1 %1765 }
 0x557   : > { %5532 = vrcp.f32 %v1766_v42 }
 0x55a   : > { %v1769_v43 = vpop.xlane.xlu0 %1768 }
 0x55b   : > { %5534 = vrcp.f32 %v1769_v43 }
 0x55e   : > { %v1772_v44 = vpop.xlane.xlu1 %1771 }
 0x55f   : > { %5536 = vrcp.f32 %v1772_v44 }
 0x561   : > { %v5533_v47 = vpop.eup %5532 }
 0x562   : > { %v1776_v50 = vmul.f32 %v5533_v47, %v5527_v24 }
 0x564   : > { %5061 = vmatmul.mubr.msk.f32.vlgmr.msra.gmra.mrb[12].mxu1 %vm1744_vm5, %v1776_v50 }
 0x565   : > { %v5535_v51 = vpop.eup %5534  ;;  %5063 = vmatprep.mubr.msk.f32.mxu1 %vm5645_vm10, %v5644_v1  ;;  %5410 = vmatpush3.bf16.msra.mxu1 %v5409_v48 }
 0x566   : > { %v1777_v53 = vmul.f32 %v5535_v51, %v5529_v32  ;;  %5088 = vmatprep.subr.mxu1 %v5644_v1 }
 0x568   : > { %5064 = vmatmul.mubr.msk.f32.gmra.mrb[14].mxu1 %vm1744_vm5, %v1777_v53 }
 0x569   : > { %v5537_v56 = vpop.eup %5536  ;;  %5066 = vmatprep.mubr.msk.f32.mxu1 %vm5645_vm10, %v5644_v1  ;;  %5089 = vmatpush3.msra.mxu1 %v4671_v55 }
 0x56a   : > { %v1778_v58 = vmul.f32 %v5537_v56, %v5531_v34  ;;  %5414 = vmatprep.subr.bf16.mxu1 %v5643_v63  ;;  %v4628_v56 = vld [vmem:[%s6817_s1] ss:$0 sm:$0xff] }
 0x56c   : > { %5067 = vmatmul.mubr.msk.f32.gmra.mrb[16].mxu1 %vm1744_vm5, %v1778_v58 }
 0x56d   : > { %5090 = vmatprep.mubr.msk.f32.mxu1 %vm5645_vm10, %v5644_v1 }
 0x570   : > { %5091 = vmatmul.mubr.msk.f32.vlgmr.msra.gmra.mrb[18].mxu1 %vm1300_vm7, %v5989_v30 }
 0x571   : > { %5093 = vmatprep.mubr.msk.f32.mxu1 %vm5645_vm10, %v5644_v1 }
 0x574   : > { %5094 = vmatmul.mubr.msk.f32.gmra.mrb[20].mxu1 %vm1300_vm7, %v6001_v36 }
 0x575   : > { %5096 = vmatprep.mubr.msk.f32.mxu1 %vm5645_vm10, %v5644_v1 }
 0x578   : > { %5097 = vmatmul.mubr.msk.f32.gmra.mrb[22].mxu1 %vm1300_vm7, %v6013_v38 }
 0x579   : > { %5120 = vmatprep.mubr.msk.f32.mxu1 %vm5645_vm10, %v5644_v1 }
 0x637   : > { %v6198_v60 = vpop.f32.mrb[12].mxu1 }
 0x638   : > { %v5062_v61 = vpop.f32.mrb[13].mxu1 }
 0x639   : > { %v6242_v61 = vadd.f32 %v4628_v56, %v6038_v40  ;;  %v4695_v40 = vld [vmem:[%s5828_s5 + $0x10] sm:$0xff] }
 0x63b   : > { %v6200_v62 = vpop.f32.mrb[14].mxu1 }
 0x63c   : > { %v5065_v30 = vpop.f32.mrb[15].mxu1 }
 0x63f   : > { %v6202_v0 = vpop.f32.mrb[16].mxu1 }
 0x640   : > { %v5068_v2 = vpop.f32.mrb[17].mxu1 }
 0x643   : > { %v2044_v36 = vpop.f32.mrb[18].mxu1 }
 0x644   : > { %v5092_v3 = vpop.f32.mrb[19].mxu1  ;;  %v2045_v7 = vadd.f32 %v4673_v4, %v2044_v36  ;;  %v6246_v36 = vadd.f32 %v6036_v39, %v4628_v56 }
 0x645   : > { %v2633_v3 = vsel %vm1300_vm7, %v6242_v61, 0.0 }
 0x647   : > { %v2049_v5 = vpop.f32.mrb[20].mxu1 }
 0x648   : > { %v2050_v8 = vadd.f32 %v4673_v4, %v2049_v5  ;;  %v5095_v38 = vpop.f32.mrb[21].mxu1  ;;  %v2636_v5 = vsel %vm1307_vm8, %v6246_v36, 0.0 }
 0x64a   : > { %v5415_v9 = vpack.c.bf16 %v2050_v8, %v2045_v7  ;;  %v4696_v7 = vld [vmem:[%s5828_s5 + $0x18] sm:$0xf] }
 0x64b   : > { %v2054_v10 = vpop.f32.mrb[22].mxu1  ;;  %v5422_v8 = vpack.c.bf16 %v4696_v7, %v4695_v40 }
 0x64c   : > { %v5098_v11 = vpop.f32.mrb[23].mxu1  ;;  %5417 = vmatpush3.bf16.xpose.msk.msra.mxu1 %vm6043_vm12, %v5415_v9  ;;  %v2055_v14 = vadd.f32 %v4673_v4, %v2054_v10 }
 0x64d   : > { %5118 = vmatprep.subr.mxu1 %v5644_v1  ;;  %v1872_v11 = vld [vmem:[%s5828_s5] sm:$0xff] }
 0x654   : > { %5119 = vmatpush3.xpose.msk.msra.mxu1 %vm1639_vm11, %v2055_v14 }
 0x655   : > { %5421 = vmatprep.subr.bf16.mxu1 %v5643_v63 }
 0x657   : > { %5121 = vmatmul.mubr.msk.f32.vlgmr.msra.gmra.mrb[24].mxu1 %vm1639_vm11, %v1953_v18  ;;  %v5426_v18 = vpack.c.bf16 %v1873_v13, %v1872_v11  ;;  %v4712_v13 = vld [vmem:[%s5842_s8 + $0x40] sm:$0xff] }
 0x658   : > { %5123 = vmatprep.mubr.msk.f32.mxu1 %vm5645_vm10, %v5644_v1 }
 0x65b   : > { %5124 = vmatmul.mubr.msk.f32.gmra.mrb[26].mxu1 %vm1639_vm11, %v1958_v19 }
 0x65c   : > { %5126 = vmatprep.mubr.msk.f32.mxu1 %vm5645_vm10, %v5644_v1 }
 0x65f   : > { %5127 = vmatmul.mubr.msk.f32.gmra.mrb[28].mxu1 %vm1639_vm11, %v1963_v20 }
 0x660   : > { %5148 = vmatprep.mubr.msk.f32.mxu1 %vm5645_vm10, %v5644_v1 }
 0x72a   : > { %v2234_v54 = vpop.f32.mrb[24].mxu1 }
 0x72b   : > { %v2248_v21 = vmul.f32 0.28867513, %v2234_v54  ;;  %v5122_v22 = vpop.f32.mrb[25].mxu1 }
 0x72d   : > { %v2251_v23 = vsel %vm1163_vm3, %v2248_v21, -1e+30 }
 0x72e   : > { %v2239_v24 = vpop.f32.mrb[26].mxu1  ;;  %v2254_v57 = vsel %vm1744_vm5, %v2251_v23, -inf }
 0x72f   : > { %v2249_v31 = vmul.f32 0.28867513, %v2239_v24  ;;  %2255 = vmax.xlane.f32.xlu0 %v2254_v57  ;;  %v5125_v32 = vpop.f32.mrb[27].mxu1 }
 0x731   : > { %v2252_v59 = vsel %vm1184_vm14, %v2249_v31, -1e+30  ;;  %vm1186_vm14 = vcmp.lt.s32.totalorder %v6101_v25, 5 }
 0x732   : > { %v2244_v33 = vpop.f32.mrb[28].mxu1  ;;  %v2257_v34 = vsel %vm1744_vm5, %v2252_v59, -inf }
 0x733   : > { %v2250_v41 = vmul.f32 0.28867513, %v2244_v33  ;;  %2258 = vmax.xlane.f32.xlu1 %v2257_v34  ;;  %v5128_v42 = vpop.f32.mrb[29].mxu1 }
 0x735   : > { %v2253_v43 = vsel %vm6152_vm9, %v2250_v41, -1e+30  ;;  %vm6763_vm9 = vcmask 1043456  }
 0x736   : > { %v2260_v44 = vsel %vm1751_vm1, %v2253_v43, -inf  ;;  %vm6257_vm3 = vmpackc.low %vm6763_vm9, %vm5646_vm2  ;;  %vm3058_vm9 = vcmask 74752  }
 0x737   : > { %2261 = vmax.xlane.f32.xlu0 %v2260_v44  ;;  %5424 = vmatpush3.bf16.msk.msra.mxu1 %vm6257_vm3, %v5422_v8  ;;  %v4705_v44 = vld [vmem:[%s6821_s11] ss:$0 sm:$0xff] }
 0x738   : > { %5429 = vmatprep.subr.bf16.mxu1 %v5643_v63 }
 0x7bc   : > { %v2256_v45 = vpop.xlane.xlu0 %2255 }
 0x7bd   : > { %v2263_v46 = vsub.f32 %v2251_v23, %v2256_v45 }
 0x7bf   : > { %v2266_v6 = vmul.f32 1.442695, %v2263_v46 }
 0x7c0   : > { %v2259_v47 = vpop.xlane.xlu1 %2258 }
 0x7c1   : > { %5538 = vpow2.f32 %v2266_v6  ;;  %v2264_v35 = vsub.f32 %v2252_v59, %v2259_v47 }
 0x7c3   : > { %v2268_v48 = vmul.f32 1.442695, %v2264_v35 }
 0x7c4   : > { %v2262_v50 = vpop.xlane.xlu0 %2261 }
 0x7c5   : > { %5540 = vpow2.f32 %v2268_v48  ;;  %v2265_v51 = vsub.f32 %v2253_v43, %v2262_v50 }
 0x7c7   : > { %v2270_v53 = vmul.f32 1.442695, %v2265_v51 }
 0x7c9   : > { %5542 = vpow2.f32 %v2270_v53 }
 0x7cb   : > { %v5539_v55 = vpop.eup %5538 }
 0x7cc   : > { %v2272_v49 = vsel %vm1744_vm5, %v5539_v55, 0.0 }
 0x7cd   : > { %2273 = vadd.xlane.f32.xlu1 %v2272_v49 }
 0x7cf   : > { %v5541_v58 = vpop.eup %5540 }
 0x7d0   : > { %v2275_v30 = vsel %vm1744_vm5, %v5541_v58, 0.0 }
 0x7d1   : > { %2276 = vadd.xlane.f32.xlu0 %v2275_v30 }
 0x7d3   : > { %v5543_v2 = vpop.eup %5542 }
 0x7d4   : > { %v2278_v4 = vsel %vm1751_vm1, %v5543_v2, 0.0  ;;  %vm6417_vm1 = vmpackc.low %vm6762_vm13, %vm5646_vm2  ;;  %vm3051_vm13 = vcmask 80896  }
 0x7d5   : > { %2634 = vadd.xlane.f32.xlu0 %v2633_v3  ;;  %2279 = vadd.xlane.f32.xlu1 %v2278_v4  ;;  %vm6442_vm2 = vmand %vm1157_vm0, %vm1186_vm14 }
 0x7d9   : > { %2637 = vadd.xlane.f32.xlu1 %v2636_v5 }
 0x85a   : > { %v2274_v38 = vpop.xlane.xlu1 %2273 }
 0x85b   : > { %5544 = vrcp.f32 %v2274_v38 }
 0x85e   : > { %v2277_v9 = vpop.xlane.xlu0 %2276 }
 0x85f   : > { %5546 = vrcp.f32 %v2277_v9  ;;  %v4710_v9 = vld [vmem:[%s5842_s8 + $0x30] sm:$0xff] }
 0x862   : > { %v2280_v10 = vpop.xlane.xlu1 %2279  ;;  %v2635_v42 = vpop.xlane.xlu0 %2634 }
 0x863   : > { %5548 = vrcp.f32 %v2280_v10  ;;  %v2639_v6 = vmul.f32 0.041666668, %v2635_v42  ;;  %v4711_v10 = vld [vmem:[%s5842_s8 + $0x38] sm:$0xff] }
 0x864   : > { %v5432_v11 = vpack.c.bf16 %v4711_v10, %v4710_v9 }
 0x865   : > { %v5545_v14 = vpop.eup %5544 }
 0x866   : > { %v2284_v19 = vmul.f32 %v5545_v14, %v5539_v55  ;;  %v2638_v35 = vpop.xlane.xlu1 %2637  ;;  %v2641_v55 = vsub.f32 %v6242_v61, %v2639_v6 }
 0x867   : > { %v2640_v49 = vmul.f32 0.041666668, %v2638_v35 }
 0x868   : > { %5136 = vmatmul.mubr.msk.f32.vlgmr.msra.gmra.mrb[26].mxu0 %vm1744_vm5, %v2284_v19  ;;  %v2643_v40 = vmul.f32 %v2641_v55, %v2641_v55 }
 0x869   : > { %v5547_v20 = vpop.eup %5546  ;;  %5138 = vmatprep.mubr.msk.f32.mxu0 %vm5645_vm10, %v5644_v1  ;;  %5428 = vmatpush3.bf16.msk.msra.mxu0 %vm6257_vm3, %v5426_v18 }
 0x86a   : > { %v2285_v54 = vmul.f32 %v5547_v20, %v5541_v58  ;;  %v2645_v8 = vsel %vm1300_vm7, %v2643_v40, 0.0  ;;  %5433 = vmatprep.subr.bf16.mxu0 %v5432_v11 }
 0x86c   : > { %5139 = vmatmul.mubr.msk.f32.gmra.mrb[28].mxu0 %vm1744_vm5, %v2285_v54 }
 0x86d   : > { %v5549_v21 = vpop.eup %5548  ;;  %5141 = vmatprep.mubr.msk.f32.mxu0 %vm5645_vm10, %v5644_v1 }
 0x86e   : > { %v2286_v22 = vmul.f32 %v5549_v21, %v5543_v2 }
 0x870   : > { %5142 = vmatmul.mubr.msk.f32.gmra.mrb[30].mxu0 %vm1744_vm5, %v2286_v22  ;;  %vm1192_vm5 = vcmp.lt.s32.totalorder %v6101_v25, 10 }
 0x871   : > { %5161 = vmatprep.mubr.msk.f32.mxu0 %vm5645_vm10, %v5644_v1  ;;  %vm6433_vm6 = vmand %vm1191_vm4, %vm1192_vm5  ;;  %vm6828_vm4 = vcmp.ge.s32.totalorder %v6104_v29, 9 }
 0x872   : > { %vm6450_vm5 = vmand %vm6828_vm4, %vm6433_vm6 }
 0x873   : > { %vm1198_vm0 = vmor %vm6442_vm2, %vm6450_vm5 }
 0x874   : > { %5162 = vmatmul.mubr.msk.f32.vlgmr.msra.gmra.mrb[32].mxu0 %vm1639_vm11, %v6198_v60  ;;  %vm6471_vm4 = vmand %vm1173_vm15, %vm6433_vm6 }
 0x875   : > { %5164 = vmatprep.mubr.msk.f32.mxu0 %vm5645_vm10, %v5644_v1  ;;  %5435 = vmatpush3.bf16.msra.mxu0 %v5432_v11  ;;  %v2621_v11 = vsub.s32 2, %v5973_v12 }
 0x876   : > { %5189 = vmatprep.subr.mxu0 %v4712_v13 }
 0x878   : > { %5165 = vmatmul.mubr.msk.f32.gmra.mrb[34].mxu0 %vm1639_vm11, %v6200_v62 }
 0x879   : > { %5167 = vmatprep.mubr.msk.f32.mxu0 %vm5645_vm10, %v5644_v1  ;;  %5190 = vmatpush3.msra.mxu0 %v4712_v13 }
 0x87a   : > { %5440 = vmatprep.subr.bf16.mxu0 %v5643_v63 }
 0x87c   : > { %5168 = vmatmul.mubr.msk.f32.gmra.mrb[36].mxu0 %vm1639_vm11, %v6202_v0 }
 0x93b   : > { %v2365_v23 = vpop.f32.mrb[26].mxu0 }
 0x93c   : > { %v5137_v24 = vpop.f32.mrb[27].mxu0  ;;  %5149 = vmatmul.mubr.msk.f32.vlgmr.msra.gmra.mrb[30].mxu1 %vm1639_vm11, %v2365_v23 }
 0x93d   : > { %5151 = vmatprep.mubr.msk.f32.mxu1 %vm5645_vm10, %v5644_v1 }
 0x93f   : > { %v2370_v60 = vpop.f32.mrb[28].mxu0 }
 0x940   : > { %v5140_v57 = vpop.f32.mrb[29].mxu0  ;;  %5152 = vmatmul.mubr.msk.f32.gmra.mrb[32].mxu1 %vm1639_vm11, %v2370_v60 }
 0x941   : > { %5154 = vmatprep.mubr.msk.f32.mxu1 %vm5645_vm10, %v5644_v1 }
 0x943   : > { %v2375_v62 = vpop.f32.mrb[30].mxu0 }
 0x944   : > { %v5143_v31 = vpop.f32.mrb[31].mxu0  ;;  %5155 = vmatmul.mubr.msk.f32.gmra.mrb[34].mxu1 %vm1639_vm11, %v2375_v62 }
 0x945   : > { %5176 = vmatprep.mubr.msk.f32.mxu1 %vm5645_vm10, %v5644_v1 }
 0x947   : > { %v2553_v0 = vpop.f32.mrb[32].mxu0 }
 0x948   : > { %v5163_v32 = vpop.f32.mrb[33].mxu0 }
 0x94b   : > { %v2558_v59 = vpop.f32.mrb[34].mxu0 }
 0x94c   : > { %v5166_v33 = vpop.f32.mrb[35].mxu0 }
 0x94f   : > { %v2563_v34 = vpop.f32.mrb[36].mxu0 }
 0x950   : > { %v5169_v41 = vpop.f32.mrb[37].mxu0 }
 0xa0f   : > { %v2461_v43 = vpop.f32.mrb[30].mxu1 }
 0xa10   : > { %v2554_v45 = vadd.f32 %v2553_v0, %v2461_v43  ;;  %v5150_v46 = vpop.f32.mrb[31].mxu1  ;;  %v2661_v43 = vsub.s32 4, %v5973_v12 }
 0xa12   : > { %v2574_v47 = vadd.f32 %v4705_v44, %v2554_v45  ;;  %v2662_v45 = vrot.slane %v5977_v16, %v2661_v43  ;;  %v4741_v43 = vld [vmem:[%s5842_s8 + $0x48] sm:$0xff] }
 0xa13   : > { %v2466_v48 = vpop.f32.mrb[32].mxu1 }
 0xa14   : > { %v6302_v50 = vadd.f32 %v2574_v47, %v5916_v26  ;;  %v2559_v51 = vadd.f32 %v2558_v59, %v2466_v48  ;;  %v5153_v53 = vpop.f32.mrb[33].mxu1  ;;  %v2642_v26 = vsub.f32 %v6246_v36, %v2640_v49 }
 0xa16   : > { %v2575_v56 = vadd.f32 %v4705_v44, %v2559_v51  ;;  %v2580_v58 = vsel %vm1300_vm7, %v6302_v50, 0.0  ;;  %v2644_v38 = vmul.f32 %v2642_v26, %v2642_v26 }
 0xa17   : > { %2581 = vadd.xlane.f32.xlu0 %v2580_v58  ;;  %v2471_v30 = vpop.f32.mrb[34].mxu1  ;;  %v2672_v58 = vld [vmem:[%s5842_s8 + $0x8] sm:$0xff] }
 0xa18   : > { %v6308_v2 = vadd.f32 %v2575_v56, %v5920_v28  ;;  %v2564_v3 = vadd.f32 %v2563_v34, %v2471_v30  ;;  %v5156_v4 = vpop.f32.mrb[35].mxu1  ;;  %v2648_v36 = vsel %vm1307_vm8, %v2644_v38, 0.0 }
 0xa19   : > { %v4717_v4 = vld [vmem:[%s5842_s8 + $0x60] sm:$0xff] }
 0xa1a   : > { %v2576_v5 = vadd.f32 %v4705_v44, %v2564_v3  ;;  %v2583_v61 = vsel %vm1300_vm7, %v6308_v2, 0.0  ;;  %v2667_v44 = vsub.s32 5, %v5973_v12  ;;  %v2673_v3 = vld [vmem:[%s5842_s8 + $0x10] sm:$0xff] }
 0xa1b   : > { %2584 = vadd.xlane.f32.xlu1 %v2583_v61 }
 0xa1c   : > { %v6314_v7 = vadd.f32 %v2576_v5, %v5918_v27  ;;  %v2668_v47 = vrot.slane %v5977_v16, %v2667_v44  ;;  %v4742_v44 = vld [vmem:[%s5842_s8 + $0x50] sm:$0xff] }
 0xa1e   : > { %v2586_v28 = vsel %vm1307_vm8, %v6314_v7, 0.0 }
 0xa1f   : > { %2646 = vadd.xlane.f32.xlu1 %v2645_v8  ;;  %2587 = vadd.xlane.f32.xlu0 %v2586_v28 }
 0xa23   : > { %2649 = vadd.xlane.f32.xlu0 %v2648_v36 }
 0xaa4   : > { %v2582_v27 = vpop.xlane.xlu0 %2581 }
 0xaa5   : > { %v2589_v14 = vmul.f32 0.041666668, %v2582_v27  ;;  %v2628_v27 = vsub.s32 3, %v5973_v12 }
 0xaa7   : > { %v6325_v18 = vsub.f32 %v6302_v50, %v2589_v14  ;;  %v2622_v14 = vrot.slane %v5977_v16, %v2621_v11 }
 0xaa8   : > { %v2585_v19 = vpop.xlane.xlu1 %2584 }
 0xaa9   : > { %v2590_v20 = vmul.f32 0.041666668, %v2585_v19  ;;  %v2595_v54 = vmul.f32 %v6325_v18, %v6325_v18 }
 0xaab   : > { %v6330_v21 = vsub.f32 %v6308_v2, %v2590_v20  ;;  %v2598_v22 = vsel %vm1300_vm7, %v2595_v54, 0.0  ;;  %v2629_v20 = vrot.slane %v5977_v16, %v2628_v27 }
 0xaac   : > { %2599 = vadd.xlane.f32.xlu1 %v2598_v22  ;;  %v2647_v23 = vpop.xlane.xlu1 %2646  ;;  %v2588_v24 = vpop.xlane.xlu0 %2587 }
 0xaad   : > { %v2651_v60 = vmul.f32 0.041666668, %v2647_v23  ;;  %v2591_v57 = vmul.f32 0.041666668, %v2588_v24  ;;  %v2596_v62 = vmul.f32 %v6330_v21, %v6330_v21 }
 0xaaf   : > { %v2653_v31 = vadd.f32 1e-05, %v2651_v60  ;;  %v6336_v0 = vsub.f32 %v6314_v7, %v2591_v57  ;;  %v2601_v32 = vsel %vm1300_vm7, %v2596_v62, 0.0  ;;  %v4719_v57 = vld [vmem:[%s5842_s8 + $0x70] sm:$0xff] }
 0xab0   : > { %2602 = vadd.xlane.f32.xlu0 %v2601_v32  ;;  %v2650_v59 = vpop.xlane.xlu0 %2649 }
 0xab1   : > { %5550 = vrsqrt.f32 %v2653_v31  ;;  %v2652_v33 = vmul.f32 0.041666668, %v2650_v59  ;;  %v2597_v34 = vmul.f32 %v6336_v0, %v6336_v0 }
 0xab3   : > { %v2654_v41 = vadd.f32 1e-05, %v2652_v33  ;;  %v2604_v42 = vsel %vm1307_vm8, %v2597_v34, 0.0 }
 0xab4   : > { %2605 = vadd.xlane.f32.xlu1 %v2604_v42 }
 0xab5   : > { %5552 = vrsqrt.f32 %v2654_v41 }
 0xabb   : > { %v5551_v46 = vpop.eup %5550 }
 0xabc   : > { %v2657_v6 = vmul.f32 %v5551_v46, %v2641_v55  ;;  %v2671_v55 = vld [vmem:[%s5842_s8] sm:$0xff] }
 0xabd   : > { %v5430_v30 = vpack.c.bf16 %v2672_v58, %v2671_v55  ;;  %v4706_v46 = vld [vmem:[%s5847_s28] ss:$0 sm:$0xff] }
 0xabe   : > { %v2663_v35 = vmul.f32 %v2662_v45, %v2657_v6 }
 0xabf   : > { %v5553_v48 = vpop.eup %5552  ;;  %5431 = vmatpush3.bf16.msra.mxu1 %v5430_v30 }
 0xac0   : > { %v2658_v51 = vmul.f32 %v5553_v48, %v2642_v26  ;;  %v6346_v53 = vadd.f32 %v2668_v47, %v2663_v35  ;;  %5174 = vmatprep.subr.mxu1 %v5644_v1  ;;  %v4718_v26 = vld [vmem:[%s5842_s8 + $0x68] sm:$0xff]  ;;  %v4743_v48 = vld [vmem:[%s5842_s8 + $0x58] sm:$0xff] }
 0xac1   : > { %v5436_v5 = vpack.c.bf16 %v4718_v26, %v4717_v4 }
 0xac2   : > { %v2664_v49 = vmul.f32 %v2662_v45, %v2658_v51  ;;  %5191 = vmatprep.mubr.msk.f32.mxu0 %vm1300_vm7, %v6346_v53  ;;  %v5451_v45 = vpack.c.bf16 %v4742_v44, %v4741_v43  ;;  %v4748_v51 = vld [vmem:[%s5842_s8 + $0x78] sm:$0xff]  ;;  %v4752_v43 = vld [vmem:[%s5847_s28 + $0x5] ss:$0 sm:$0xff] }
 0xac3   : > { %5175 = vmatpush3.msra.mxu1 %v2673_v3 }
 0xac4   : > { %v6350_v56 = vadd.f32 %v2668_v47, %v2664_v49  ;;  %5437 = vmatprep.subr.bf16.mxu1 %v5436_v5  ;;  %v4749_v49 = vld [vmem:[%s5842_s8 + $0x80] sm:$0xff] }
 0xac5   : > { %v5455_v3 = vpack.c.bf16 %v4749_v49, %v4748_v51 }
 0xac6   : > { %5192 = vmatmul.mubr.msk.f32.vlgmr.msra.gmra.mrb[38].mxu0 %vm1300_vm7, %v6350_v56 }
 0xac7   : > { %5207 = vmatprep.mubr.msk.f32.mxu0 %vm5645_vm10, %v5644_v1 }
 0xb39   : > { %v2600_v61 = vpop.xlane.xlu1 %2599 }
 0xb3a   : > { %v2607_v40 = vmul.f32 0.041666668, %v2600_v61  ;;  %v4721_v61 = vld [vmem:[%s5847_s28 + $0x4] ss:$0 sm:$0xff] }
 0xb3c   : > { %v2610_v8 = vadd.f32 1e-05, %v2607_v40 }
 0xb3d   : > { %v2603_v28 = vpop.xlane.xlu0 %2602 }
 0xb3e   : > { %5554 = vrsqrt.f32 %v2610_v8  ;;  %v2608_v38 = vmul.f32 0.041666668, %v2603_v28 }
 0xb40   : > { %v2611_v36 = vadd.f32 1e-05, %v2608_v38 }
 0xb41   : > { %v2606_v9 = vpop.xlane.xlu1 %2605 }
 0xb42   : > { %5556 = vrsqrt.f32 %v2611_v36  ;;  %v2609_v10 = vmul.f32 0.041666668, %v2606_v9  ;;  %v4750_v36 = vld [vmem:[%s5842_s8 + $0x88] sm:$0xff] }
 0xb44   : > { %v2612_v13 = vadd.f32 1e-05, %v2609_v10 }
 0xb46   : > { %5558 = vrsqrt.f32 %v2612_v13 }
 0xb48   : > { %v5555_v19 = vpop.eup %5554 }
 0xb49   : > { %v2616_v54 = vmul.f32 %v5555_v19, %v6325_v18 }
 0xb4b   : > { %v2623_v22 = vmul.f32 %v2622_v14, %v2616_v54 }
 0xb4c   : > { %v5557_v23 = vpop.eup %5556 }
 0xb4d   : > { %v6367_v24 = vadd.f32 %v2629_v20, %v2623_v22  ;;  %v2617_v60 = vmul.f32 %v5557_v23, %v6330_v21 }
 0xb4f   : > { %5177 = vmatmul.mubr.msk.f32.vlgmr.msra.gmra.mrb[36].mxu1 %vm1300_vm7, %v6367_v24  ;;  %v2624_v62 = vmul.f32 %v2622_v14, %v2617_v60 }
 0xb50   : > { %v5559_v31 = vpop.eup %5558  ;;  %5179 = vmatprep.mubr.msk.f32.mxu1 %vm5645_vm10, %v5644_v1  ;;  %5439 = vmatpush3.bf16.msra.mxu1 %v5436_v5 }
 0xb51   : > { %v6375_v16 = vadd.f32 %v2629_v20, %v2624_v62  ;;  %v2618_v18 = vmul.f32 %v5559_v31, %v6336_v0  ;;  %5198 = vmatprep.subr.mxu1 %v4719_v57  ;;  %v4714_v0 = vld [vmem:[%s5847_s28 + $0x2] ss:$0 sm:$0xff] }
 0xb53   : > { %5180 = vmatmul.mubr.msk.f32.gmra.mrb[38].mxu1 %vm1300_vm7, %v6375_v16  ;;  %v2625_v21 = vmul.f32 %v2622_v14, %v2618_v18 }
 0xb54   : > { %5182 = vmatprep.mubr.msk.f32.mxu1 %vm5645_vm10, %v5644_v1  ;;  %5199 = vmatpush3.msra.mxu1 %v4719_v57 }
 0xb55   : > { %v6382_v32 = vadd.f32 %v2629_v20, %v2625_v21  ;;  %5444 = vmatprep.subr.bf16.mxu1 %v5643_v63  ;;  %v4745_v21 = vld [vmem:[%s5847_s28 + $0x3] ss:$0 sm:$0xff] }
 0xb57   : > { %5183 = vmatmul.mubr.msk.f32.gmra.mrb[40].mxu1 %vm1300_vm7, %v6382_v32 }
 0xb58   : > { %5200 = vmatprep.mubr.msk.f32.mxu1 %vm1300_vm7, %v6346_v53 }
 0xb5b   : > { %5201 = vmatmul.mubr.msk.f32.vlgmr.msra.gmra.mrb[42].mxu1 %vm1300_vm7, %v6350_v56 }
 0xb5c   : > { %5220 = vmatprep.mubr.msk.f32.mxu1 %vm5645_vm10, %v5644_v1 }
 0xb99   : > { %v5193_v59 = vpop.f32.mrb[38].mxu0 }
 0xb9a   : > { %v2860_v33 = vadd.f32 %v5193_v59, %v4714_v0  ;;  %v2854_v34 = vpop.f32.mrb[39].mxu0 }
 0xb9b   : > { %v2855_v41 = vadd.f32 %v4714_v0, %v2854_v34 }
 0xb9d   : > { %v5441_v42 = vpack.c.bf16 %v2860_v33, %v2855_v41 }
 0xb9f   : > { %5443 = vmatpush3.bf16.xpose.msk.msra.mxu0 %vm6043_vm12, %v5441_v42 }
 0xba0   : > { %5452 = vmatprep.subr.bf16.mxu0 %v5451_v45 }
 0xc22   : > { %v2756_v6 = vpop.f32.mrb[36].mxu1 }
 0xc23   : > { %v2757_v47 = vadd.f32 %v4706_v46, %v2756_v6  ;;  %v5178_v35 = vpop.f32.mrb[37].mxu1 }
 0xc25   : > { %5208 = vmatmul.mubr.msk.f32.vlgmr.msra.gmra.mrb[40].mxu0 %vm1639_vm11, %v2757_v47 }
 0xc26   : > { %v2761_v55 = vpop.f32.mrb[38].mxu1  ;;  %5210 = vmatprep.mubr.msk.f32.mxu0 %vm5645_vm10, %v5644_v1  ;;  %5454 = vmatpush3.bf16.msra.mxu0 %v5451_v45 }
 0xc27   : > { %v2762_v58 = vadd.f32 %v4706_v46, %v2761_v55  ;;  %v5181_v30 = vpop.f32.mrb[39].mxu1  ;;  %5248 = vmatprep.subr.mxu0 %v4743_v48 }
 0xc29   : > { %5211 = vmatmul.mubr.msk.f32.gmra.mrb[42].mxu0 %vm1639_vm11, %v2762_v58 }
 0xc2a   : > { %v2766_v4 = vpop.f32.mrb[40].mxu1  ;;  %5213 = vmatprep.mubr.msk.f32.mxu0 %vm5645_vm10, %v5644_v1  ;;  %5249 = vmatpush3.msra.mxu0 %v4743_v48 }
 0xc2b   : > { %v2767_v26 = vadd.f32 %v4706_v46, %v2766_v4  ;;  %v5184_v5 = vpop.f32.mrb[41].mxu1  ;;  %5456 = vmatprep.subr.bf16.mxu0 %v5455_v3 }
 0xc2d   : > { %5214 = vmatmul.mubr.msk.f32.gmra.mrb[44].mxu0 %vm1639_vm11, %v2767_v26 }
 0xc2e   : > { %v5202_v40 = vpop.f32.mrb[42].mxu1  ;;  %5250 = vmatprep.mubr.msk.f32.mxu0 %vm1300_vm7, %v6346_v53 }
 0xc2f   : > { %v2947_v8 = vadd.f32 %v5202_v40, %v4721_v61  ;;  %v2941_v28 = vpop.f32.mrb[43].mxu1 }
 0xc30   : > { %v2942_v38 = vadd.f32 %v4721_v61, %v2941_v28 }
 0xc31   : > { %5251 = vmatmul.mubr.msk.f32.vlgmr.msra.gmra.mrb[46].mxu0 %vm1300_vm7, %v6350_v56 }
 0xc32   : > { %v5445_v10 = vpack.c.bf16 %v2947_v8, %v2942_v38  ;;  %5458 = vmatpush3.bf16.msra.mxu0 %v5455_v3  ;;  %5259 = vmatprep.mubr.msk.f32.mxu0 %vm1300_vm7, %v6346_v53  ;;  %v4734_v53 = vld [vmem:[%s5842_s8 + $0x20] sm:$0xff] }
 0xc33   : > { %5257 = vmatprep.subr.mxu0 %v4750_v36 }
 0xc34   : > { %5447 = vmatpush3.bf16.msk.msra.mxu1 %vm6417_vm1, %v5445_v10  ;;  %v4733_v10 = vld [vmem:[%s5842_s8 + $0x18] sm:$0xff] }
 0xc35   : > { %5448 = vmatprep.subr.bf16.mxu1 %v5643_v63 }
 0xc36   : > { %5258 = vmatpush3.msra.mxu0 %v4750_v36 }
 0xc37   : > { %5260 = vmatmul.mubr.msk.f32.vlgmr.msra.gmra.mrb[48].mxu0 %vm1300_vm7, %v6350_v56  ;;  %5463 = vmatprep.subr.bf16.mxu0 %v5643_v63 }
 0xc38   : > { %5279 = vmatprep.mubr.msk.f32.mxu0 %vm5645_vm10, %v5644_v1 }
 0xcf8   : > { %v3031_v11 = vpop.f32.mrb[40].mxu0 }
 0xcf9   : > { %v3045_v13 = vmul.f32 0.28867513, %v3031_v11  ;;  %v5209_v27 = vpop.f32.mrb[41].mxu0 }
 0xcfb   : > { %v3048_v19 = vsel %vm1186_vm14, %v3045_v13, -1e+30  ;;  %v5449_v13 = vpack.c.bf16 %v4734_v53, %v4733_v10  ;;  %v4764_v53 = vld [vmem:[%s5852_s10 + $0x10] sm:$0xff] }
 0xcfc   : > { %v3036_v20 = vpop.f32.mrb[42].mxu0  ;;  %v3052_v54 = vsel %vm3051_vm13, %v3048_v19, -inf }
 0xcfd   : > { %v3046_v22 = vmul.f32 0.28867513, %v3036_v20  ;;  %3053 = vmax.xlane.f32.xlu0 %v3052_v54  ;;  %v5212_v23 = vpop.f32.mrb[43].mxu0  ;;  %v4735_v54 = vld [vmem:[%s5842_s8 + $0x28] sm:$0xff] }
 0xcff   : > { %v3049_v29 = vsel %vm1198_vm0, %v3046_v22, -1e+30 }
 0xd00   : > { %v3041_v60 = vpop.f32.mrb[44].mxu0  ;;  %v3055_v57 = vsel %vm3051_vm13, %v3049_v29, -inf }
 0xd01   : > { %v3047_v31 = vmul.f32 0.28867513, %v3041_v60  ;;  %3056 = vmax.xlane.f32.xlu1 %v3055_v57  ;;  %v5215_v18 = vpop.f32.mrb[45].mxu0 }
 0xd02   : > { %v4737_v18 = vld [vmem:[%s5847_s28 + $0x1] ss:$0 sm:$0xff] }
 0xd03   : > { %v3050_v0 = vsel %vm6471_vm4, %v3047_v31, -1e+30 }
 0xd04   : > { %v5252_v59 = vpop.f32.mrb[46].mxu0  ;;  %v3059_v33 = vsel %vm3058_vm9, %v3050_v0, -inf }
 0xd05   : > { %v3356_v34 = vadd.f32 %v5252_v59, %v4745_v21  ;;  %3060 = vmax.xlane.f32.xlu0 %v3059_v33  ;;  %v3350_v41 = vpop.f32.mrb[47].mxu0 }
 0xd06   : > { %v3351_v42 = vadd.f32 %v4745_v21, %v3350_v41 }
 0xd08   : > { %v5460_v37 = vpack.c.bf16 %v3356_v34, %v3351_v42 }
 0xd0a   : > { %v5261_v44 = vpop.f32.mrb[48].mxu0 }
 0xd0b   : > { %v3443_v45 = vadd.f32 %v5261_v44, %v4752_v43  ;;  %v3437_v46 = vpop.f32.mrb[49].mxu0 }
 0xd0c   : > { %v3438_v6 = vadd.f32 %v4752_v43, %v3437_v46 }
 0xd0e   : > { %v5464_v47 = vpack.c.bf16 %v3443_v45, %v3438_v6 }
 0xd10   : > { %5466 = vmatpush3.bf16.msk.msra.mxu0 %vm6417_vm1, %v5464_v47 }
 0xd11   : > { %5471 = vmatprep.subr.bf16.mxu0 %v5643_v63 }
 0xd8a   : > { %v3054_v35 = vpop.xlane.xlu0 %3053 }
 0xd8b   : > { %v3062_v48 = vsub.f32 %v3048_v19, %v3054_v35 }
 0xd8d   : > { %v3065_v51 = vmul.f32 1.442695, %v3062_v48 }
 0xd8e   : > { %v3057_v49 = vpop.xlane.xlu1 %3056 }
 0xd8f   : > { %5560 = vpow2.f32 %v3065_v51  ;;  %v3063_v55 = vsub.f32 %v3049_v29, %v3057_v49 }
 0xd91   : > { %v3067_v58 = vmul.f32 1.442695, %v3063_v55 }
 0xd92   : > { %v3061_v30 = vpop.xlane.xlu0 %3060 }
 0xd93   : > { %5562 = vpow2.f32 %v3067_v58  ;;  %v3064_v3 = vsub.f32 %v3050_v0, %v3061_v30 }
 0xd95   : > { %v3069_v4 = vmul.f32 1.442695, %v3064_v3 }
 0xd97   : > { %5564 = vpow2.f32 %v3069_v4 }
 0xd99   : > { %v5561_v26 = vpop.eup %5560 }
 0xd9a   : > { %v3071_v5 = vsel %vm3051_vm13, %v5561_v26, 0.0 }
 0xd9b   : > { %3072 = vadd.xlane.f32.xlu1 %v3071_v5 }
 0xd9d   : > { %v5563_v61 = vpop.eup %5562 }
 0xd9e   : > { %v3074_v40 = vsel %vm3051_vm13, %v5563_v61, 0.0 }
 0xd9f   : > { %3075 = vadd.xlane.f32.xlu0 %v3074_v40 }
 0xda1   : > { %v5565_v8 = vpop.eup %5564 }
 0xda2   : > { %v3077_v28 = vsel %vm3058_vm9, %v5565_v8, 0.0 }
 0xda3   : > { %3078 = vadd.xlane.f32.xlu1 %v3077_v28 }
 0xe28   : > { %v3073_v38 = vpop.xlane.xlu1 %3072 }
 0xe29   : > { %5566 = vrcp.f32 %v3073_v38 }
 0xe2c   : > { %v3076_v36 = vpop.xlane.xlu0 %3075 }
 0xe2d   : > { %5568 = vrcp.f32 %v3076_v36 }
 0xe30   : > { %v3079_v9 = vpop.xlane.xlu1 %3078 }
 0xe31   : > { %5570 = vrcp.f32 %v3079_v9 }
 0xe33   : > { %v5567_v11 = vpop.eup %5566 }
 0xe34   : > { %v3083_v27 = vmul.f32 %v5567_v11, %v5561_v26  ;;  %v4765_v11 = vld [vmem:[%s5852_s10 + $0x18] sm:$0xf] }
 0xe36   : > { %5221 = vmatmul.mubr.msk.f32.vlgmr.msra.gmra.mrb[44].mxu1 %vm3051_vm13, %v3083_v27 }
 0xe37   : > { %v5569_v19 = vpop.eup %5568  ;;  %5450 = vmatpush3.bf16.msra.mxu1 %v5449_v13  ;;  %5223 = vmatprep.mubr.msk.f32.mxu1 %vm5645_vm10, %v5644_v1  ;;  %v5468_v13 = vpack.c.bf16 %v4765_v11, %v4764_v53 }
 0xe38   : > { %v3084_v20 = vmul.f32 %v5569_v19, %v5563_v61  ;;  %5233 = vmatprep.subr.mxu1 %v5644_v1 }
 0xe3a   : > { %5224 = vmatmul.mubr.msk.f32.gmra.mrb[46].mxu1 %vm3051_vm13, %v3084_v20 }
 0xe3b   : > { %v5571_v22 = vpop.eup %5570  ;;  %5234 = vmatpush3.msra.mxu1 %v4735_v54  ;;  %5226 = vmatprep.mubr.msk.f32.mxu1 %vm5645_vm10, %v5644_v1  ;;  %v3178_v54 = vld [vmem:[%s5852_s10] sm:$0xff] }
 0xe3c   : > { %v3085_v23 = vmul.f32 %v5571_v22, %v5565_v8  ;;  %5459 = vmatprep.subr.bf16.mxu1 %v5643_v63  ;;  %v3179_v22 = vld [vmem:[%s5852_s10 + $0x8] sm:$0xf] }
 0xe3e   : > { %5227 = vmatmul.mubr.msk.f32.gmra.mrb[48].mxu1 %vm3051_vm13, %v3085_v23 }
 0xe3f   : > { %5235 = vmatprep.mubr.msk.f32.mxu1 %vm5645_vm10, %v5644_v1 }
 0xe42   : > { %5236 = vmatmul.mubr.msk.f32.vlgmr.msra.gmra.mrb[50].mxu1 %vm1300_vm7, %v6367_v24 }
 0xe43   : > { %5462 = vmatpush3.bf16.xpose.msk.msra.mxu1 %vm6043_vm12, %v5460_v37  ;;  %5238 = vmatprep.mubr.msk.f32.mxu1 %vm5645_vm10, %v5644_v1 }
 0xe44   : > { %5467 = vmatprep.subr.bf16.mxu1 %v5643_v63 }
 0xe46   : > { %5239 = vmatmul.mubr.msk.f32.gmra.mrb[52].mxu1 %vm1300_vm7, %v6375_v16 }
 0xe47   : > { %5241 = vmatprep.mubr.msk.f32.mxu1 %vm5645_vm10, %v5644_v1 }
 0xe4a   : > { %5242 = vmatmul.mubr.msk.f32.gmra.mrb[54].mxu1 %vm1300_vm7, %v6382_v32 }
 0xe4b   : > { %5266 = vmatprep.mubr.msk.f32.mxu1 %vm5645_vm10, %v5644_v1 }
 0xf09   : > { %v6515_v24 = vpop.f32.mrb[44].mxu1 }
 0xf0a   : > { %v5222_v52 = vpop.f32.mrb[45].mxu1 }
 0xf0b   : > { %v5472_v52 = vpack.c.bf16 %v3179_v22, %v3178_v54 }
 0xf0d   : > { %v6517_v29 = vpop.f32.mrb[46].mxu1 }
 0xf0e   : > { %v5225_v60 = vpop.f32.mrb[47].mxu1 }
 0xf11   : > { %v6519_v57 = vpop.f32.mrb[48].mxu1 }
 0xf12   : > { %v5228_v31 = vpop.f32.mrb[49].mxu1 }
 0xf15   : > { %v3258_v16 = vpop.f32.mrb[50].mxu1 }
 0xf16   : > { %v3259_v21 = vadd.f32 %v4737_v18, %v3258_v16  ;;  %v5237_v0 = vpop.f32.mrb[51].mxu1 }
 0xf18   : > { %5267 = vmatmul.mubr.msk.f32.vlgmr.msra.gmra.mrb[56].mxu1 %vm1639_vm11, %v3259_v21 }
 0xf19   : > { %v3263_v59 = vpop.f32.mrb[52].mxu1  ;;  %5269 = vmatprep.mubr.msk.f32.mxu1 %vm5645_vm10, %v5644_v1  ;;  %5470 = vmatpush3.bf16.msk.msra.mxu1 %vm6257_vm3, %v5468_v13  ;;  %v3925_v13 = vld [vmem:[%s5875_s17] sm:$0xff] }
 0xf1a   : > { %v3264_v32 = vadd.f32 %v4737_v18, %v3263_v59  ;;  %v5240_v33 = vpop.f32.mrb[53].mxu1  ;;  %5475 = vmatprep.subr.bf16.mxu1 %v5643_v63 }
 0xf1c   : > { %5270 = vmatmul.mubr.msk.f32.gmra.mrb[58].mxu1 %vm1639_vm11, %v3264_v32 }
 0xf1d   : > { %v3268_v34 = vpop.f32.mrb[54].mxu1  ;;  %5272 = vmatprep.mubr.msk.f32.mxu1 %vm5645_vm10, %v5644_v1 }
 0xf1e   : > { %v3269_v41 = vadd.f32 %v4737_v18, %v3268_v34  ;;  %v5243_v42 = vpop.f32.mrb[55].mxu1 }
 0xf20   : > { %5273 = vmatmul.mubr.msk.f32.gmra.mrb[60].mxu1 %vm1639_vm11, %v3269_v41 }
 0xf21   : > { %5292 = vmatprep.mubr.msk.f32.mxu1 %vm5645_vm10, %v5644_v1 }
 0xfeb   : > { %v3527_v37 = vpop.f32.mrb[56].mxu1 }
 0xfec   : > { %v3541_v43 = vmul.f32 0.28867513, %v3527_v37  ;;  %v5268_v44 = vpop.f32.mrb[57].mxu1 }
 0xfed   : > { %v4774_v44 = vld [vmem:[%s995_s29] ss:$0 sm:$0xff]  ;;  %s6833_s29 = scalar_lea.vmem %s6745_s22, %s5793_s6  ;;  %s6837_s6 = sld [smem:[#allocation7_spill]] }
 0xfee   : > { %v3544_v45 = vsel %vm1186_vm14, %v3541_v43, -1e+30 }
 0xfef   : > { %v3532_v46 = vpop.f32.mrb[58].mxu1  ;;  %v3547_v6 = vsel %vm3051_vm13, %v3544_v45, -inf }
 0xff0   : > { %v3542_v47 = vmul.f32 0.28867513, %v3532_v46  ;;  %3548 = vmax.xlane.f32.xlu0 %v3547_v6  ;;  %v5271_v35 = vpop.f32.mrb[59].mxu1 }
 0xff2   : > { %v3545_v48 = vsel %vm1198_vm0, %v3542_v47, -1e+30 }
 0xff3   : > { %v3537_v51 = vpop.f32.mrb[60].mxu1  ;;  %v3550_v49 = vsel %vm3051_vm13, %v3545_v48, -inf  ;;  %p4783_p5 = scmp.ne.s32.totalorder %s6837_s6, 2 }
 0xff4   : > { %v3543_v55 = vmul.f32 0.28867513, %v3537_v51  ;;  %3551 = vmax.xlane.f32.xlu1 %v3550_v49  ;;  %v5274_v58 = vpop.f32.mrb[61].mxu1  ;;  %s6838_s30 = sld [smem:[#allocation16_spill]] (!%p4783_p5)  ;;  %s6839_s4 = sld [smem:[#allocation18_spill]] (!%p4783_p5)  ;;  %vm4346_vm15 = vcmask (!%p4783_p5), 516096  }
 0xff5   : > { %s6840_s11 = sld [smem:[#allocation17_spill]] (!%p4783_p5)  ;;  %vm4352_vm1 = vcmask (!%p4783_p5), 1042432   ;;  %vm6842_vm6 = vcmask (!%p4783_p5), 1043456   ;;  %vm6843_vm14 = vcmask (!%p4783_p5), 1041408   ;;  %vm4394_vm5 = vcmask (!%p4783_p5), 0  }
 0xff6   : > { %v3546_v25 = vsel %vm6471_vm4, %v3543_v55, -1e+30  ;;  %vm6844_vm2 = vmmov (!%p4783_p5), %vm6842_vm6 }
 0xff7   : > { %v3553_v30 = vsel %vm3058_vm9, %v3546_v25, -inf }
 0xff8   : > { %3554 = vmax.xlane.f32.xlu0 %v3553_v30 }
0x107d   : > { %v3549_v3 = vpop.xlane.xlu0 %3548 }
0x107e   : > { %v3556_v4 = vsub.f32 %v3544_v45, %v3549_v3 }
0x1080   : > { %v3559_v26 = vmul.f32 1.442695, %v3556_v4 }
0x1081   : > { %v3552_v56 = vpop.xlane.xlu1 %3551 }
0x1082   : > { %5572 = vpow2.f32 %v3559_v26  ;;  %v3557_v14 = vsub.f32 %v3545_v48, %v3552_v56 }
0x1084   : > { %v3561_v5 = vmul.f32 1.442695, %v3557_v14 }
0x1085   : > { %v3555_v61 = vpop.xlane.xlu0 %3554 }
0x1086   : > { %5574 = vpow2.f32 %v3561_v5  ;;  %v3558_v40 = vsub.f32 %v3546_v25, %v3555_v61 }
0x1088   : > { %v3563_v8 = vmul.f32 1.442695, %v3558_v40 }
0x108a   : > { %5576 = vpow2.f32 %v3563_v8 }
0x108c   : > { %v5573_v28 = vpop.eup %5572 }
0x108d   : > { %v3565_v62 = vsel %vm3051_vm13, %v5573_v28, 0.0 }
0x108e   : > { %3566 = vadd.xlane.f32.xlu1 %v3565_v62 }
0x1090   : > { %v5575_v38 = vpop.eup %5574 }
0x1091   : > { %v3568_v36 = vsel %vm3051_vm13, %v5575_v38, 0.0 }
0x1092   : > { %3569 = vadd.xlane.f32.xlu0 %v3568_v36 }
0x1094   : > { %v5577_v9 = vpop.eup %5576 }
0x1095   : > { %v3571_v10 = vsel %vm3058_vm9, %v5577_v9, 0.0  ;;  %vm4342_vm9 = vcmask (!%p4783_p5), 523269  }
0x1096   : > { %3572 = vadd.xlane.f32.xlu1 %v3571_v10 }
0x111b   : > { %v3567_v27 = vpop.xlane.xlu1 %3566 }
0x111c   : > { %5578 = vrcp.f32 %v3567_v27  ;;  %v3926_v27 = vld [vmem:[%s5875_s17 + $0x8] sm:$0xff] }
0x111f   : > { %v3570_v19 = vpop.xlane.xlu0 %3569 }
0x1120   : > { %5580 = vrcp.f32 %v3570_v19  ;;  %v5476_v19 = vpack.c.bf16 %v3926_v27, %v3925_v13 }
0x1123   : > { %v3573_v20 = vpop.xlane.xlu1 %3572 }
0x1124   : > { %5582 = vrcp.f32 %v3573_v20  ;;  %v3927_v20 = vld [vmem:[%s5875_s17 + $0x10] sm:$0xff]  ;;  %s6841_s17 = sld [smem:[#allocation19_spill]] (!%p4783_p5) }
0x1126   : > { %v5579_v23 = vpop.eup %5578 }
0x1127   : > { %v3577_v60 = vmul.f32 %v5579_v23, %v5573_v28 }
0x1129   : > { %5280 = vmatmul.mubr.msk.f32.vlgmr.msra.gmra.mrb[50].mxu0 %vm3051_vm13, %v3577_v60 }
0x112a   : > { %v5581_v31 = vpop.eup %5580  ;;  %5282 = vmatprep.mubr.msk.f32.mxu0 %vm5645_vm10, %v5644_v1  ;;  %5474 = vmatpush3.bf16.msk.msra.mxu0 %vm6257_vm3, %v5472_v52  ;;  %vm4371_vm3 = vcmask (!%p4783_p5), 523270  }
0x112b   : > { %v3578_v18 = vmul.f32 %v5581_v31, %v5575_v38  ;;  %5478 = vmatprep.subr.bf16.mxu0 %v5643_v63 }
0x112d   : > { %5283 = vmatmul.mubr.msk.f32.gmra.mrb[52].mxu0 %vm3051_vm13, %v3578_v18 }
0x112e   : > { %v5583_v16 = vpop.eup %5582  ;;  %5285 = vmatprep.mubr.msk.f32.mxu0 %vm5645_vm10, %v5644_v1 }
0x112f   : > { %v3579_v21 = vmul.f32 %v5583_v16, %v5577_v9 }
0x1131   : > { %5286 = vmatmul.mubr.msk.f32.gmra.mrb[54].mxu0 %vm3051_vm13, %v3579_v21  ;;  %v3913_v21 = vsub.s32 6, %v5973_v12 }
0x1132   : > { %5305 = vmatprep.mubr.msk.f32.mxu0 %vm5645_vm10, %v5644_v1 }
0x1135   : > { %5306 = vmatmul.mubr.msk.f32.vlgmr.msra.gmra.mrb[56].mxu0 %vm1639_vm11, %v6515_v24 }
0x1136   : > { %5308 = vmatprep.mubr.msk.f32.mxu0 %vm5645_vm10, %v5644_v1 }
0x1139   : > { %5309 = vmatmul.mubr.msk.f32.gmra.mrb[58].mxu0 %vm1639_vm11, %v6517_v29 }
0x113a   : > { %5311 = vmatprep.mubr.msk.f32.mxu0 %vm5645_vm10, %v5644_v1 }
0x113d   : > { %5312 = vmatmul.mubr.msk.f32.gmra.mrb[60].mxu0 %vm1639_vm11, %v6519_v57 }
0x113e   : > { %5341 = vmatprep.mubr.msk.f32.mxu0 %vm5645_vm10, %v5644_v1 }
0x11fc   : > { %v3658_v39 = vpop.f32.mrb[50].mxu0 }
0x11fd   : > { %v5281_v0 = vpop.f32.mrb[51].mxu0  ;;  %5293 = vmatmul.mubr.msk.f32.vlgmr.msra.gmra.mrb[62].mxu1 %vm1639_vm11, %v3658_v39 }
0x11fe   : > { %5295 = vmatprep.mubr.msk.f32.mxu1 %vm5645_vm10, %v5644_v1  ;;  %5477 = vmatpush3.bf16.msra.mxu1 %v5476_v19  ;;  %v3920_v0 = vsub.s32 7, %v5973_v12 }
0x11ff   : > { %5318 = vmatprep.subr.mxu1 %v5644_v1 }
0x1200   : > { %v3663_v24 = vpop.f32.mrb[52].mxu0 }
0x1201   : > { %v5284_v59 = vpop.f32.mrb[53].mxu0  ;;  %5296 = vmatmul.mubr.msk.f32.gmra.mrb[64].mxu1 %vm1639_vm11, %v3663_v24  ;;  %v5596_v24 = vld [vmem:[%s6805_s2] sm:$0xff] }
0x1202   : > { %5298 = vmatprep.mubr.msk.f32.mxu1 %vm5645_vm10, %v5644_v1  ;;  %5319 = vmatpush3.msra.mxu1 %v3927_v20  ;;  %v3914_v59 = vrot.slane %v5596_v24, %v3913_v21 }
0x1204   : > { %v3668_v29 = vpop.f32.mrb[54].mxu0 }
0x1205   : > { %v5287_v57 = vpop.f32.mrb[55].mxu0  ;;  %5299 = vmatmul.mubr.msk.f32.gmra.mrb[66].mxu1 %vm1639_vm11, %v3668_v29  ;;  %vm6834_vm11 = vcmask 392192  }
0x1206   : > { %5320 = vmatprep.mubr.msk.f32.mxu1 %vm5645_vm10, %v5644_v1  ;;  %v3921_v57 = vrot.slane %v5596_v24, %v3920_v0  ;;  %vm6835_vm12 = vmmov %vm6834_vm11 }
0x1207   : > { %vm6836_vm13 = vmmov %vm6834_vm11 }
0x1208   : > { %v3845_v32 = vpop.f32.mrb[56].mxu0 }
0x1209   : > { %v5307_v33 = vpop.f32.mrb[57].mxu0 }
0x120c   : > { %v3850_v34 = vpop.f32.mrb[58].mxu0 }
0x120d   : > { %v5310_v41 = vpop.f32.mrb[59].mxu0 }
0x1210   : > { %v3855_v42 = vpop.f32.mrb[60].mxu0 }
0x1211   : > { %v5313_v37 = vpop.f32.mrb[61].mxu0 }
0x12d0   : > { %v3753_v43 = vpop.f32.mrb[62].mxu1 }
0x12d1   : > { %v3846_v45 = vadd.f32 %v3845_v32, %v3753_v43  ;;  %v5294_v46 = vpop.f32.mrb[63].mxu1 }
0x12d3   : > { %v3866_v6 = vadd.f32 %v4774_v44, %v3846_v45 }
0x12d4   : > { %v3758_v47 = vpop.f32.mrb[64].mxu1 }
0x12d5   : > { %v6592_v35 = vadd.f32 %v3866_v6, %v6302_v50  ;;  %v3851_v48 = vadd.f32 %v3850_v34, %v3758_v47  ;;  %v5297_v51 = vpop.f32.mrb[65].mxu1  ;;  %v4051_v47 = vld [vmem:[%s5866_s13] sm:$0xff] }
0x12d7   : > { %v3867_v49 = vadd.f32 %v4774_v44, %v3851_v48  ;;  %v3872_v55 = vsel %vm1300_vm7, %v6592_v35, 0.0  ;;  %v4052_v48 = vld [vmem:[%s5866_s13 + $0x8] sm:$0xff] }
0x12d8   : > { %3873 = vadd.xlane.f32.xlu0 %v3872_v55  ;;  %v3763_v58 = vpop.f32.mrb[66].mxu1  ;;  %v5479_v51 = vpack.c.bf16 %v4052_v48, %v4051_v47  ;;  %v4054_v55 = vld [vmem:[%s5866_s13 + $0x18] sm:$0xff] }
0x12d9   : > { %v6597_v25 = vadd.f32 %v3867_v49, %v6308_v2  ;;  %v3856_v30 = vadd.f32 %v3855_v42, %v3763_v58  ;;  %v5300_v3 = vpop.f32.mrb[67].mxu1  ;;  %v4053_v49 = vld [vmem:[%s5866_s13 + $0x10] sm:$0xff] }
0x12da   : > { %5480 = vmatpush3.bf16.msra.mxu0 %v5479_v51  ;;  %v5482_v58 = vpack.c.bf16 %v4054_v55, %v4053_v49  ;;  %v4056_v3 = vld [vmem:[%s5866_s13 + $0x28] sm:$0xff] }
0x12db   : > { %v3868_v4 = vadd.f32 %v4774_v44, %v3856_v30  ;;  %v3875_v26 = vsel %vm1300_vm7, %v6597_v25, 0.0  ;;  %5481 = vmatprep.subr.bf16.mxu0 %v5643_v63  ;;  %v4055_v30 = vld [vmem:[%s5866_s13 + $0x20] sm:$0xff] }
0x12dc   : > { %3876 = vadd.xlane.f32.xlu1 %v3875_v26  ;;  %v4775_v26 = vld [vmem:[%s6833_s29] ss:$0 sm:$0xff] }
0x12dd   : > { %v6602_v50 = vadd.f32 %v3868_v4, %v6314_v7  ;;  %v5485_v4 = vpack.c.bf16 %v4056_v3, %v4055_v30 }
0x12de   : > { %5483 = vmatpush3.bf16.msra.mxu0 %v5482_v58 }
0x12df   : > { %v3878_v56 = vsel %vm1307_vm8, %v6602_v50, 0.0  ;;  %5484 = vmatprep.subr.bf16.mxu0 %v5643_v63 }
0x12e0   : > { %3879 = vadd.xlane.f32.xlu0 %v3878_v56 }
0x12e2   : > { %5486 = vmatpush3.bf16.msra.mxu0 %v5485_v4 }
0x1365   : > { %v3874_v14 = vpop.xlane.xlu0 %3873 }
0x1366   : > { %v3881_v5 = vmul.f32 0.041666668, %v3874_v14 }
0x1368   : > { %v3884_v61 = vsub.f32 %v6592_v35, %v3881_v5 }
0x1369   : > { %v3877_v2 = vpop.xlane.xlu1 %3876 }
0x136a   : > { %v3882_v40 = vmul.f32 0.041666668, %v3877_v2  ;;  %v3887_v8 = vmul.f32 %v3884_v61, %v3884_v61 }
0x136c   : > { %v3885_v28 = vsub.f32 %v6597_v25, %v3882_v40  ;;  %v3890_v62 = vsel %vm1300_vm7, %v3887_v8, 0.0 }
0x136d   : > { %3891 = vadd.xlane.f32.xlu1 %v3890_v62  ;;  %v3880_v7 = vpop.xlane.xlu0 %3879 }
0x136e   : > { %v3883_v38 = vmul.f32 0.041666668, %v3880_v7  ;;  %v3888_v36 = vmul.f32 %v3885_v28, %v3885_v28 }
0x1370   : > { %v3886_v9 = vsub.f32 %v6602_v50, %v3883_v38  ;;  %v3893_v10 = vsel %vm1300_vm7, %v3888_v36, 0.0 }
0x1371   : > { %3894 = vadd.xlane.f32.xlu0 %v3893_v10 }
0x1372   : > { %v3889_v53 = vmul.f32 %v3886_v9, %v3886_v9 }
0x1374   : > { %v3896_v11 = vsel %vm1307_vm8, %v3889_v53, 0.0 }
0x1375   : > { %3897 = vadd.xlane.f32.xlu1 %v3896_v11 }
0x13fa   : > { %v3892_v54 = vpop.xlane.xlu1 %3891 }
0x13fb   : > { %v3899_v22 = vmul.f32 0.041666668, %v3892_v54 }
0x13fd   : > { %v3902_v23 = vadd.f32 1e-05, %v3899_v22 }
0x13fe   : > { %v3895_v52 = vpop.xlane.xlu0 %3894 }
0x13ff   : > { %5584 = vrsqrt.f32 %v3902_v23  ;;  %v3900_v60 = vmul.f32 0.041666668, %v3895_v52 }
0x1401   : > { %v3903_v31 = vadd.f32 1e-05, %v3900_v60 }
0x1402   : > { %v3898_v18 = vpop.xlane.xlu1 %3897 }
0x1403   : > { %5586 = vrsqrt.f32 %v3903_v31  ;;  %v3901_v16 = vmul.f32 0.041666668, %v3898_v18 }
0x1405   : > { %v3904_v39 = vadd.f32 1e-05, %v3901_v16 }
0x1407   : > { %5588 = vrsqrt.f32 %v3904_v39 }
0x1409   : > { %v5585_v29 = vpop.eup %5584 }
0x140a   : > { %v3908_v32 = vmul.f32 %v5585_v29, %v3884_v61 }
0x140c   : > { %v3915_v33 = vmul.f32 %v3914_v59, %v3908_v32 }
0x140d   : > { %v5587_v34 = vpop.eup %5586 }
0x140e   : > { %v3922_v41 = vadd.f32 %v3921_v57, %v3915_v33  ;;  %v3909_v42 = vmul.f32 %v5587_v34, %v3885_v28  ;;  %v4782_v33 = vld [vmem:[%s1011_s15] ss:$0 sm:$0xff] }
0x1410   : > { %5321 = vmatmul.mubr.msk.f32.vlgmr.msra.gmra.mrb[68].mxu1 %vm1300_vm7, %v3922_v41  ;;  %v3916_v37 = vmul.f32 %v3914_v59, %v3909_v42 }
0x1411   : > { %v5589_v43 = vpop.eup %5588  ;;  %5323 = vmatprep.mubr.msk.f32.mxu1 %vm5645_vm10, %v5644_v1 }
0x1412   : > { %v3923_v44 = vadd.f32 %v3921_v57, %v3916_v37  ;;  %v3910_v45 = vmul.f32 %v5589_v43, %v3886_v9 }
0x1414   : > { %5324 = vmatmul.mubr.msk.f32.gmra.mrb[70].mxu1 %vm1300_vm7, %v3923_v44  ;;  %v3917_v46 = vmul.f32 %v3914_v59, %v3910_v45 }
0x1415   : > { %5326 = vmatprep.mubr.msk.f32.mxu1 %vm5645_vm10, %v5644_v1 }
0x1416   : > { %v3924_v6 = vadd.f32 %v3921_v57, %v3917_v46 }
0x1418   : > { %5327 = vmatmul.mubr.msk.f32.gmra.mrb[72].mxu1 %vm1300_vm7, %v3924_v6 }
0x14e3   : > { %v4010_v56 = vpop.f32.mrb[68].mxu1 }
0x14e4   : > { %v4011_v14 = vadd.f32 %v4775_v26, %v4010_v56  ;;  %v5322_v5 = vpop.f32.mrb[69].mxu1 }
0x14e6   : > { %v4024_v61 = vmul.f32 %v4011_v14, %v4011_v14 }
0x14e7   : > { %v4015_v2 = vpop.f32.mrb[70].mxu1 }
0x14e8   : > { %v4027_v40 = vmul.f32 %v4024_v61, %v4011_v14  ;;  %v4016_v8 = vadd.f32 %v4775_v26, %v4015_v2  ;;  %v5325_v28 = vpop.f32.mrb[71].mxu1 }
0x14ea   : > { %v4030_v62 = vmul.f32 0.044715, %v4027_v40  ;;  %v4025_v7 = vmul.f32 %v4016_v8, %v4016_v8  ;;  %v4319_v40 = vld [vmem:[%s6838_s30] sm:$0xff] (!%p4783_p5) }
0x14eb   : > { %v4020_v63 = vpop.f32.mrb[72].mxu1 }
0x14ec   : > { %v4033_v38 = vadd.f32 %v4030_v62, %v4011_v14  ;;  %v4028_v36 = vmul.f32 %v4025_v7, %v4016_v8  ;;  %v4021_v9 = vadd.f32 %v4775_v26, %v4020_v63  ;;  %v5328_v10 = vpop.f32.mrb[73].mxu1  ;;  %v5647_v62 = vmov (!%p4783_p5), 0.0|0.0   ;;  %v4220_v7 = vld [vmem:[%s6839_s4] sm:$0xff] (!%p4783_p5)  ;;  %v4221_v63 = vld [vmem:[%s6839_s4 + $0x8] sm:$0xff] (!%p4783_p5) }
0x14ed   : > { %5490 = vmatprep.subr.bf16.mxu1 (!%p4783_p5), %v5647_v62  ;;  %5487 = vmatprep.subr.bf16.mxu0 (!%p4783_p5), %v5647_v62 }
0x14ee   : > { %v4036_v53 = vmul.f32 0.7978846, %v4033_v38  ;;  %v4031_v11 = vmul.f32 0.044715, %v4028_v36  ;;  %v4026_v13 = vmul.f32 %v4021_v9, %v4021_v9  ;;  %v5488_v38 = vpack.c.bf16 (!%p4783_p5), %v4221_v63, %v4220_v7 }
0x14ef   : > { %v5649_v36 = vmov (!%p4783_p5), 0.0  }
0x14f0   : > { %5590 = vtanh.f32 %v4036_v53  ;;  %v4034_v27 = vadd.f32 %v4031_v11, %v4016_v8  ;;  %v4029_v19 = vmul.f32 %v4026_v13, %v4021_v9  ;;  %5492 = vmatpush3.bf16.msra.mxu1 (!%p4783_p5), %v5488_v38 }
0x14f1   : > { %5491 = vmatprep.subr.mxu1 (!%p4783_p5), %v5649_v36 }
0x14f2   : > { %v4037_v20 = vmul.f32 0.7978846, %v4034_v27  ;;  %v4032_v54 = vmul.f32 0.044715, %v4029_v19 }
0x14f4   : > { %5592 = vtanh.f32 %v4037_v20  ;;  %v4035_v22 = vadd.f32 %v4032_v54, %v4021_v9 }
0x14f6   : > { %v4038_v23 = vmul.f32 0.7978846, %v4035_v22 }
0x14f8   : > { %5594 = vtanh.f32 %v4038_v23 }
0x14fa   : > { %v5591_v52 = vpop.eup %5590 }
0x14fb   : > { %v4042_v60 = vadd.f32 1.0, %v5591_v52 }
0x14fd   : > { %v4045_v31 = vmul.f32 0.5, %v4042_v60 }
0x14fe   : > { %v5593_v18 = vpop.eup %5592 }
0x14ff   : > { %v4048_v16 = vmul.f32 %v4045_v31, %v4011_v14  ;;  %v4043_v21 = vadd.f32 1.0, %v5593_v18  ;;  %v4166_v31 = vld [vmem:[%s6840_s11] sm:$0x3] (!%p4783_p5) }
0x1501   : > { %5342 = vmatmul.mubr.msk.f32.vlgmr.msra.gmra.mrb[62].mxu0 %vm6834_vm11, %v4048_v16  ;;  %v4046_v39 = vmul.f32 0.5, %v4043_v21  ;;  %v4209_v16 = vrot.slane (!%p4783_p5), %v4166_v31, %v1344_v15 }
0x1502   : > { %v5595_v0 = vpop.eup %5594  ;;  %5344 = vmatprep.mubr.msk.f32.mxu0 %vm5645_vm10, %v5644_v1  ;;  %5489 = vmatpush3.bf16.msra.mxu0 (!%p4783_p5), %v5488_v38 }
0x1503   : > { %v4049_v24 = vmul.f32 %v4046_v39, %v4016_v8  ;;  %v4044_v59 = vadd.f32 1.0, %v5595_v0  ;;  %5354 = vmatprep.subr.mxu0 (!%p4783_p5), %v5649_v36 }
0x1505   : > { %5345 = vmatmul.mubr.msk.f32.gmra.mrb[64].mxu0 %vm6835_vm12, %v4049_v24  ;;  %v4047_v29 = vmul.f32 0.5, %v4044_v59  ;;  %v4216_v24 = vrot.slane (!%p4783_p5), %v4166_v31, %v1351_v17 }
0x1506   : > { %5347 = vmatprep.mubr.msk.f32.mxu0 %vm5645_vm10, %v5644_v1  ;;  %vm4320_vm10 = vcmask (!%p4783_p5), 523264  }
0x1507   : > { %v4050_v57 = vmul.f32 %v4047_v29, %v4021_v9  ;;  %v4321_v28 = vsel (!%p4783_p5), %vm4320_vm10, %v4319_v40, 0.0  ;;  %v4222_v9 = vld [vmem:[%s6839_s4 + $0x10] sm:$0xff] (!%p4783_p5) }
0x1508   : > { %5493 = vmatpush3.msra.mxu1 (!%p4783_p5), %v4222_v9  ;;  %5355 = vmatpush3.msra.mxu0 (!%p4783_p5), %v4222_v9 }
0x1509   : > { %5348 = vmatmul.mubr.msk.f32.gmra.mrb[66].mxu0 %vm6836_vm13, %v4050_v57 }
0x15d4   : > { %v4132_v32 = vpop.f32.mrb[62].mxu0 }
0x15d5   : > { %v4146_v34 = vadd.f32 %v4132_v32, %v6592_v35  ;;  %v5343_v41 = vpop.f32.mrb[63].mxu0 }
0x15d7   : > { %v4156_v42 = vadd.f32 %v4782_v33, %v4146_v34 }
0x15d8   : > { %v4137_v37 = vpop.f32.mrb[64].mxu0 }
0x15d9   : > { %4159 = vst.msk [vmem:[#allocation2] sm:$0xff] %vm1300_vm7, %v4156_v42  ;;  %v4147_v43 = vadd.f32 %v4137_v37, %v6597_v25  ;;  %v5346_v44 = vpop.f32.mrb[65].mxu0  ;;  %v4167_v25 = vsel (!%p4783_p5), %vm1300_vm7, %v4156_v42, 0.0 }
0x15db   : > { %v4157_v1 = vadd.f32 %v4782_v33, %v4147_v43  ;;  %4165 = sbr.rel (%p4783_p5) target bundleno = 6301 (0x189d), region = 128 }
0x15dc   : > { %v4142_v45 = vpop.f32.mrb[66].mxu0 }
0x15dd   : > { %4160 = vst.msk [vmem:[#allocation2 + $0x8] sm:$0xff] %vm1300_vm7, %v4157_v1  ;;  %v4148_v46 = vadd.f32 %v4142_v45, %v6602_v50  ;;  %v5349_v6 = vpop.f32.mrb[67].mxu0  ;;  %v4170_v35 = vsel (!%p4783_p5), %vm1300_vm7, %v4157_v1, 0.0  ;;  %v4784_v45 = vld [vmem:[%s6841_s17] ss:$0 sm:$0xff] (!%p4783_p5) }
0x15de   : > { %4171 = vadd.xlane.f32.xlu0 (!%p4783_p5), %v4170_v35 }
0x15df   : > { %v4158_v47 = vadd.f32 %v4782_v33, %v4148_v46 }
0x15e1   : > { %4161 = vst.msk [vmem:[#allocation2 + $0x10] sm:$0x3] %vm1307_vm8, %v4158_v47  ;;  %v4173_v48 = vsel (!%p4783_p5), %vm1307_vm8, %v4158_v47, 0.0 }
0x15e2   : > { %4174 = vadd.xlane.f32.xlu1 %v4173_v48  ;;  %4168 = vadd.xlane.f32.xlu0 %v4167_v25 }
0x166b   : > { %v4172_v51 = vpop.xlane.xlu0 %4171 }
0x166c   : > { %v4177_v55 = vmul.f32 0.041666668, %v4172_v51 }
0x166e   : > { %v4180_v58 = vsub.f32 %v4157_v1, %v4177_v55 }
0x166f   : > { %v4175_v49 = vpop.xlane.xlu1 %4174  ;;  %v4169_v3 = vpop.xlane.xlu0 %4168 }
0x1670   : > { %v4178_v50 = vmul.f32 0.041666668, %v4175_v49  ;;  %v4176_v4 = vmul.f32 0.041666668, %v4169_v3  ;;  %v4183_v26 = vmul.f32 %v4180_v58, %v4180_v58 }
0x1672   : > { %v4181_v30 = vsub.f32 %v4158_v47, %v4178_v50  ;;  %v4179_v14 = vsub.f32 %v4156_v42, %v4176_v4  ;;  %v4188_v5 = vsel %vm1300_vm7, %v4183_v26, 0.0 }
0x1673   : > { %4189 = vadd.xlane.f32.xlu1 %v4188_v5 }
0x1674   : > { %v4184_v56 = vmul.f32 %v4181_v30, %v4181_v30  ;;  %v4182_v2 = vmul.f32 %v4179_v14, %v4179_v14 }
0x1676   : > { %v4191_v61 = vsel %vm1307_vm8, %v4184_v56, 0.0  ;;  %v4185_v8 = vsel %vm1300_vm7, %v4182_v2, 0.0  ;;  %vm5648_vm8 = vmmov 0  }
0x1677   : > { %4192 = vadd.xlane.f32.xlu1 %v4191_v61  ;;  %4186 = vadd.xlane.f32.xlu0 %v4185_v8 }
0x1678   : > { %5359 = vmatprep.mubr.msk.f32.mxu1 %vm5648_vm8, %v5649_v36  ;;  %5356 = vmatprep.mubr.msk.f32.mxu0 %vm5648_vm8, %v5649_v36 }
0x167b   : > { %4322 = vadd.xlane.f32.xlu0 %v4321_v28 }
0x1700   : > { %v4190_v10 = vpop.xlane.xlu1 %4189 }
0x1701   : > { %v4195_v53 = vmul.f32 0.041666668, %v4190_v10 }
0x1703   : > { %v4198_v11 = vadd.f32 1e-05, %v4195_v53 }
0x1704   : > { %v4193_v13 = vpop.xlane.xlu1 %4192  ;;  %v4187_v27 = vpop.xlane.xlu0 %4186 }
0x1705   : > { %5597 = vrsqrt.f32 %v4198_v11  ;;  %v4196_v19 = vmul.f32 0.041666668, %v4193_v13  ;;  %v4194_v20 = vmul.f32 0.041666668, %v4187_v27 }
0x1707   : > { %v4199_v54 = vadd.f32 1e-05, %v4196_v19  ;;  %v4197_v22 = vadd.f32 1e-05, %v4194_v20 }
0x1708   : > { %v4323_v23 = vpop.xlane.xlu0 %4322 }
0x1709   : > { %5599 = vrsqrt.f32 %v4199_v54  ;;  %v4325_v52 = vmul.f32 0.015625, %v4323_v23 }
0x170a   : > { %5601 = vrsqrt.f32 %v4197_v22 }
0x170b   : > { %v4326_v60 = vsub.f32 %v4319_v40, %v4325_v52 }
0x170d   : > { %v4327_v18 = vmul.f32 %v4326_v60, %v4326_v60 }
0x170f   : > { %v5598_v21 = vpop.eup %5597  ;;  %v4328_v39 = vsel %vm4320_vm10, %v4327_v18, 0.0 }
0x1710   : > { %4329 = vadd.xlane.f32.xlu1 %v4328_v39  ;;  %v4204_v0 = vmul.f32 %v5598_v21, %v4180_v58 }
0x1712   : > { %v4211_v59 = vmul.f32 %v4209_v16, %v4204_v0 }
0x1713   : > { %v5600_v29 = vpop.eup %5599 }
0x1714   : > { %v5602_v57 = vpop.eup %5601  ;;  %v4218_v32 = vadd.f32 %v4216_v24, %v4211_v59  ;;  %v4205_v33 = vmul.f32 %v5600_v29, %v4181_v30 }
0x1715   : > { %v4203_v34 = vmul.f32 %v5602_v57, %v4179_v14 }
0x1716   : > { %5360 = vmatmul.mubr.msk.f32.vlgmr.msra.gmra.mrb[0].mxu1 %vm1300_vm7, %v4218_v32  ;;  %v4212_v41 = vmul.f32 %v4209_v16, %v4205_v33 }
0x1717   : > { %5362 = vmatprep.mubr.msk.f32.mxu1 %vm5648_vm8, %v5649_v36  ;;  %v4210_v15 = vmul.f32 %v4209_v16, %v4203_v34 }
0x1718   : > { %v4219_v42 = vadd.f32 %v4216_v24, %v4212_v41 }
0x1719   : > { %v4217_v37 = vadd.f32 %v4216_v24, %v4210_v15 }
0x171a   : > { %5363 = vmatmul.mubr.msk.f32.gmra.mrb[2].mxu1 %vm1300_vm7, %v4219_v42 }
0x171b   : > { %5357 = vmatmul.mubr.msk.f32.vlgmr.msra.gmra.mrb[0].mxu0 %vm1300_vm7, %v4217_v37  ;;  %vm4375_vm7 = vcmask 517120  }
0x179d   : > { %v4330_v12 = vpop.xlane.xlu1 %4329 }
0x179e   : > { %v4331_v17 = vmul.f32 0.015625, %v4330_v12 }
0x17a0   : > { %v4332_v43 = vadd.f32 1e-06, %v4331_v17 }
0x17a2   : > { %5603 = vrsqrt.f32 %v4332_v43 }
0x17ac   : > { %v5604_v44 = vpop.eup %5603 }
0x17ad   : > { %v4334_v1 = vmul.f32 %v5604_v44, %v4326_v60 }
0x17af   : > { %v4336_v47 = vrot.slane %v4334_v1, 3  ;;  %v4365_v51 = vrot.slane %v4334_v1, 6 }
0x17e9   : > { %v4310_v46 = vpop.f32.mrb[0].mxu1 }
0x17ea   : > { %v4311_v6 = vadd.f32 %v4784_v45, %v4310_v46  ;;  %v5361_v35 = vpop.f32.mrb[1].mxu1 }
0x17ec   : > { %v4339_v48 = vsub.f32 %v4311_v6, %v4336_v47  ;;  %v4367_v56 = vsub.f32 %v4311_v6, %v4365_v51 }
0x17ed   : > { %v4315_v25 = vpop.f32.mrb[2].mxu1 }
0x17ee   : > { %v4305_v49 = vpop.f32.mrb[0].mxu0  ;;  %v4316_v55 = vadd.f32 %v4784_v45, %v4315_v25  ;;  %v5364_v50 = vpop.f32.mrb[3].mxu1  ;;  %v4341_v58 = vmul.f32 %v4339_v48, %v4339_v48  ;;  %v4369_v8 = vmul.f32 %v4367_v56, %v4367_v56 }
0x17ef   : > { %v4306_v30 = vadd.f32 %v4784_v45, %v4305_v49  ;;  %v5358_v3 = vpop.f32.mrb[1].mxu0 }
0x17f0   : > { %v4368_v4 = vsub.f32 %v4316_v55, %v4365_v51  ;;  %v4347_v26 = vsel %vm4346_vm15, %v4341_v58, 0.0  ;;  %v4372_v28 = vsel %vm4371_vm3, %v4369_v8, 0.0 }
0x17f1   : > { %v4338_v14 = vsub.f32 %v4306_v30, %v4336_v47  ;;  %4348 = vadd.xlane.f32.xlu1 %v4347_v26 }
0x17f2   : > { %v4370_v5 = vmul.f32 %v4368_v4, %v4368_v4 }
0x17f3   : > { %v4340_v61 = vmul.f32 %v4338_v14, %v4338_v14 }
0x17f4   : > { %v4376_v2 = vsel %vm4375_vm7, %v4370_v5, 0.0 }
0x17f5   : > { %4377 = vadd.xlane.f32.xlu1 %v4376_v2  ;;  %v4343_v40 = vsel %vm4342_vm9, %v4340_v61, 0.0 }
0x17f6   : > { %4344 = vadd.xlane.f32.xlu0 %v4343_v40 }
0x17fa   : > { %4373 = vadd.xlane.f32.xlu0 %v4372_v28 }
0x187e   : > { %v4349_v62 = vpop.xlane.xlu1 %4348 }
0x187f   : > { %v4354_v63 = vrot.slane %v4349_v62, 5 }
0x1882   : > { %v4378_v36 = vpop.xlane.xlu1 %4377 }
0x1883   : > { %v4345_v7 = vpop.xlane.xlu0 %4344  ;;  %v4382_v11 = vrot.slane %v4378_v36, 6 }
0x1884   : > { %v4353_v38 = vrot.slane %v4345_v7, 5 }
0x1886   : > { %v4355_v9 = vsel %vm4352_vm1, %v4353_v38, %v4354_v63 }
0x1887   : > { %v4357_v10 = vsel %vm6842_vm6, %v4355_v9, 0.0  ;;  %v4374_v53 = vpop.xlane.xlu0 %4373 }
0x1888   : > { %v4358_v13 = vrot.slane %v4357_v10, 4  ;;  %v4381_v27 = vrot.slane %v4374_v53, 6 }
0x188a   : > { %v4359_v19 = vadd.f32 %v4358_v13, %v4357_v10  ;;  %v4383_v20 = vsel %vm6843_vm14, %v4381_v27, %v4382_v11 }
0x188b   : > { %v4385_v54 = vsel %vm6844_vm2, %v4383_v20, 0.0 }
0x188c   : > { %v4360_v22 = vrot.slane %v4359_v19, 2  ;;  %v4386_v23 = vrot.slane %v4385_v54, 4 }
0x188e   : > { %v4361_v52 = vadd.f32 %v4360_v22, %v4359_v19  ;;  %v4387_v60 = vadd.f32 %v4386_v23, %v4385_v54 }
0x1890   : > { %v4388_v31 = vrot.slane %v4387_v60, 2  ;;  %v4362_v18 = vrot.slane %v4361_v52, 1 }
0x1892   : > { %v4389_v16 = vadd.f32 %v4388_v31, %v4387_v60  ;;  %v4363_v39 = vadd.f32 %v4362_v18, %v4361_v52 }
0x1894   : > { %v4390_v21 = vrot.slane %v4389_v16, 1 }
0x1896   : > { %v4391_v0 = vadd.f32 %v4390_v21, %v4389_v16 }
0x1898   : > { %v4392_v24 = vadd.f32 %v4391_v0, %v4363_v39 }
0x189a   : > { %v4393_v59 = vmul.f32 0.001953125, %v4392_v24 }
0x189c   : > { %4395 = vst.msk [vmem:[#allocation3] sm:$0x1] %vm4394_vm5, %v4393_v59 }
0x189d PF: > { %s6845_s10 = sld [smem:[#allocation7_spill]]  ;;  %s5650_s29 = smov [#allocation3]  }
0x189e   : > { %s4403_s13 = sshll.u32 %s5650_s29, 4  ;;  %s4404_s13 = int_to_ptr.vmem [resolvable:$true] %s4403_s13 }
0x189f   : > { %s5605_s3 = scalar_lea.vmem %s4404_s13, 16  ;;  %s5611_s6 = scalar_lea.vmem %s4404_s13, 32 }
0x18a0   : > { %p5606_p7 = scmp.ne.s32.totalorder %s4404_s13, %s5605_s3  ;;  %p5612_p10 = scmp.lt.s32.totalorder %s4404_s13, %s4404_s13 }
0x18a1   : > { %p5613_p11 = scmp.lt.s32.totalorder %s5611_s6, %s5605_s3 }
0x18a3   : > { %p5502_p6 = scmp.eq.s32.totalorder %s6845_s10, 2  ;;  %p5614_p12 = por %p5613_p11, %p5612_p10 }
0x18a5   : > { %p5607_p8 = pnand %p5606_p7, %p5502_p6 }
0x18a7   : > { %p5608_p9 = pneg %p5607_p8 }
0x18a9   : > { %p5615_p13 = pnand %p5614_p12, %p5608_p9 }
0x18ab   : > { %5618 = shalt.err (!%p5615_p13)
}
0x18ac   : > { %s6846_s30 = sld [smem:[#allocation29_spill]] }
0x18b2   : > { %s5619_s26 = scalar_lea.hbm %s6846_s30, 16 }
0x18b3   : > { %p5620_p0 = scmp.ne.s32.totalorder %s6846_s30, %s5619_s26  ;;  %p5625_p3 = scmp.lt.u32.totalorder %s5619_s26, %s6846_s30 }
0x18b5   : > { %p5621_p1 = pnand %p5620_p0, %p5502_p6 }
0x18b7   : > { %p5622_p2 = pneg %p5621_p1 }
0x18b9   : > { %p5627_p4 = pnand %p5625_p3, %p5622_p2 }
0x18bb   : > { %5630 = shalt.err (!%p5627_p4)
}
0x18bc   : > { %5499 = dma.vmem_to_hbm [thread:$0]  (%p5502_p6), %s4404_s13, 16, %s6846_s30, [#allocation4]  }
0x18bd   : > { %5636 = dma.done.wait (%p5502_p6), [#allocation4], 16  }
0x18be   : > { %5638 = vsyncadd (%p5502_p6), [#allocation4], 4294967280 }
0x18bf PF: > { %s6847_s0 = sld [smem:[#allocation6_spill]] }
0x18c5   : > { %s36_s29 = sadd.s32 1, %s6847_s0  }
0x18c6   : > { %p33_p5 = scmp.ge.s32.totalorder %s36_s29, 5  }
0x18c8   :  { %35 = sbr.rel (!%p33_p5) target bundleno = 21 (0x15), region = 222 }
0x18cf   :  { %4416 = vsyncpa [#allocation4], 1 }
0x18d0   :  { %4418 = vsyncpa [#allocation4 + $0x1], 1 }

</bundles_post_ra>
